<compile_context>
chip_gen: v6e
topology: v6e:2x2x1
jax: 0.10.0
libtpu: 0.0.40
codegen_flags: <defaults>
</compile_context>

<pallas_src>
import math
from functools import partial

import jax
import jax.numpy as jnp
from jax import lax
from jax.experimental import pallas as pl
from jax.experimental.pallas import tpu as pltpu


# ----------------------------------------------------------------------------
# Kernel 1: fused fc + all-heads GAT attention + aggregation + bias + ELU per
#           meta-path, with the semantic-attention projection score fused in.
# ----------------------------------------------------------------------------
def _gat_metapath_kernel(h_ref, w_ref, adj_ref, al_ref, ar_ref, gb_ref,
                         w1_ref, b1_ref, q_ref, z_ref, score_ref, z_acc,
                         *, heads, hidden):
    # h_ref:   [N, IN] bf16 (resident across the P grid)
    # w_ref:   [IN, D] bf16 column block p of the stacked fc weight (D = heads*hidden)
    # adj_ref: [1, N, N] int8 0/1 mask, adj[dst, src]
    # al_ref:  [1, H, D] bf16  (attn_l, zero outside each head's column block)
    # ar_ref:  [1, D, H] bf16  (attn_r, zero outside each head's row block)
    # gb_ref:  [1, 1, D] f32   (GATConv bias)
    # w1/b1/q: [D, Hs] bf16, [1, Hs] f32, [1, Hs] f32 (semantic-attention projection)
    # z_ref:   [1, N, D] bf16 out;  score_ref: [1, 1, 128] f32 out (broadcast scalar)
    # z_acc:   [N, D] f32 VMEM scratch accumulator
    n = h_ref.shape[0]

    # Fused feature transform on the MXU (f32 accumulate, keep only the bf16 copy).
    feat = jnp.dot(h_ref[...], w_ref[...],
                   preferred_element_type=jnp.float32).astype(jnp.bfloat16)   # [N, D]

    # Additive adjacency bias, built once per meta-path and shared by all heads:
    # 0 where there is an edge, -3e4 where there is not (exp underflows to 0).
    adj_bias = (adj_ref[0].astype(jnp.float32) - 1.0) * 30000.0               # [N, N]

    # Batched attention projections for all heads (two well-shaped matmuls).
    el_all = lax.dot_general(al_ref[0], feat, (((1,), (1,)), ((), ())),
                             preferred_element_type=jnp.float32)              # [H, N] (src)
    er_all = jnp.dot(feat, ar_ref[0], preferred_element_type=jnp.float32)     # [N, H] (dst)

    for hd in range(heads):
        lo = hd * hidden
        e = er_all[:, hd:hd + 1] + el_all[hd:hd + 1, :]       # [N, N]  e[dst, src]
        e = jnp.maximum(e, 0.2 * e)                           # LeakyReLU(0.2)
        e = e + adj_bias                                      # mask as a single add
        m = jnp.max(e, axis=-1, keepdims=True)
        p = jnp.exp(e - m)
        denom = jnp.sum(p, axis=-1, keepdims=True)            # [N, 1]
        rst = jnp.dot(p.astype(jnp.bfloat16), feat[:, lo:lo + hidden],
                      preferred_element_type=jnp.float32)     # [N, hid]
        # normalize the small [N, hid] result (EUP reciprocal), not the [N, N] probs
        z_acc[:, lo:lo + hidden] = rst * pl.reciprocal(denom, approx=True)

    z = z_acc[...] + gb_ref[0]                                               # [N, D]
    z = jnp.where(z > 0.0, z, jnp.exp(jnp.minimum(z, 0.0)) - 1.0)            # ELU
    z_bf = z.astype(jnp.bfloat16)
    z_ref[0] = z_bf

    # Fused semantic-attention projection score for this meta-path:
    #   s_p = mean_n ( tanh(z @ W1 + b1) @ q )
    t = jnp.tanh(jnp.dot(z_bf, w1_ref[...],
                         preferred_element_type=jnp.float32) + b1_ref[...])  # [N, Hs]
    s = jnp.sum(t * q_ref[...], axis=-1, keepdims=True)                      # [N, 1]
    score = jnp.sum(s, axis=0, keepdims=True) * (1.0 / n)                    # [1, 1]
    score_ref[0] = jnp.broadcast_to(score, (1, 128))


def gat_multihead(h_bf, fc_w_bf, adj_i8, al_bf, ar_bf, gat_bias,
                  sem_w1_bf, sem_b1, sem_q, *, heads, hidden):
    N, IN = h_bf.shape
    P = adj_i8.shape[0]
    D = heads * hidden
    Hs = sem_w1_bf.shape[1]
    kernel = partial(_gat_metapath_kernel, heads=heads, hidden=hidden)
    return pl.pallas_call(
        kernel,
        out_shape=(jax.ShapeDtypeStruct((P, N, D), jnp.bfloat16),
                   jax.ShapeDtypeStruct((P, 1, 128), jnp.float32)),
        grid_spec=pltpu.PrefetchScalarGridSpec(
            num_scalar_prefetch=0,
            grid=(P,),
            in_specs=[
                pl.BlockSpec((N, IN), lambda p: (0, 0)),           # h (resident)
                pl.BlockSpec((IN, D), lambda p: (0, p)),           # fc_w column block p
                pl.BlockSpec((1, N, N), lambda p: (p, 0, 0)),      # adj (int8, once/path)
                pl.BlockSpec((1, heads, D), lambda p: (p, 0, 0)),  # attn_l (block-masked)
                pl.BlockSpec((1, D, heads), lambda p: (p, 0, 0)),  # attn_r (block-masked)
                pl.BlockSpec((1, 1, D), lambda p: (p, 0, 0)),      # GATConv bias
                pl.BlockSpec((D, Hs), lambda p: (0, 0)),           # sem W1 (resident)
                pl.BlockSpec((1, Hs), lambda p: (0, 0)),           # sem b1
                pl.BlockSpec((1, Hs), lambda p: (0, 0)),           # sem q
            ],
            out_specs=[
                pl.BlockSpec((1, N, D), lambda p: (p, 0, 0)),
                pl.BlockSpec((1, 1, 128), lambda p: (p, 0, 0)),
            ],
            scratch_shapes=[pltpu.VMEM((N, D), jnp.float32)],
        ),
        compiler_params=pltpu.CompilerParams(
            dimension_semantics=("parallel",)),
    )(h_bf, fc_w_bf, adj_i8, al_bf, ar_bf, gat_bias, sem_w1_bf, sem_b1, sem_q)


# ----------------------------------------------------------------------------
# Kernel 2: semantic softmax over meta-paths + weighted fusion + final Linear
# ----------------------------------------------------------------------------
def _fuse_predict_kernel(scores_ref, z_ref, pw_ref, pb_ref, out_ref):
    # scores_ref: [P, 1, 128] (scalar score broadcast across lanes per meta-path)
    # z_ref: [P, Nb, D] bf16;  pw: [D, OUT] bf16;  pb: [1, OUT] f32;  out: [Nb, OUT] f32
    P, nb, d = z_ref.shape

    s = scores_ref[...]                                      # [P, 1, 128]
    m = jnp.max(s, axis=0, keepdims=True)
    e = jnp.exp(s - m)
    beta = e * pl.reciprocal(jnp.sum(e, axis=0, keepdims=True), approx=True)  # [P, 1, 128]

    fused = jnp.zeros((nb, d), jnp.float32)
    for p in range(P):
        fused = fused + z_ref[p].astype(jnp.float32) * beta[p, :, 0:1]        # [Nb, D]

    out = jnp.dot(fused.astype(jnp.bfloat16), pw_ref[...],
                  preferred_element_type=jnp.float32) + pb_ref[...]
    out_ref[...] = out.astype(out_ref.dtype)


def fuse_predict(scores, z, pred_w_bf, pred_b):
    P, N, D = z.shape
    OUT = pred_w_bf.shape[1]
    # >=4 node blocks so both TensorCores get pipelined work; tile_n must be 8-aligned
    nb = max(4, N // 128)
    while nb > 1 and (N % nb != 0 or (N // nb) % 8 != 0):
        nb -= 1
    tile_n = N // nb
    return pl.pallas_call(
        _fuse_predict_kernel,
        out_shape=jax.ShapeDtypeStruct((N, OUT), jnp.float32),
        grid_spec=pltpu.PrefetchScalarGridSpec(
            num_scalar_prefetch=0,
            grid=(nb,),
            in_specs=[
                pl.BlockSpec((P, 1, 128), lambda i: (0, 0, 0)),
                pl.BlockSpec((P, tile_n, D), lambda i: (0, i, 0)),
                pl.BlockSpec((D, OUT), lambda i: (0, 0)),
                pl.BlockSpec((1, OUT), lambda i: (0, 0)),
            ],
            out_specs=pl.BlockSpec((tile_n, OUT), lambda i: (i, 0)),
        ),
        compiler_params=pltpu.CompilerParams(
            dimension_semantics=("parallel",)),
    )(scores, z, pred_w_bf, pred_b)


# ----------------------------------------------------------------------------
# GATEncoder forward (glue around the kernels)
# ----------------------------------------------------------------------------
def gat_encoder_forward(h, adj_i8, kparams, cui1, cui2, *, heads, hidden):
    h_bf = h.astype(jnp.bfloat16)                            # single tiny cast, once

    # All-heads GAT per meta-path (fc fused in) + semantic-attention scores.
    z, scores = gat_multihead(h_bf, kparams["fc_w"], adj_i8,
                              kparams["attn_l_blk"], kparams["attn_r_blk"],
                              kparams["gat_bias"], kparams["sem_w1"],
                              kparams["sem_b1"], kparams["sem_q"],
                              heads=heads, hidden=hidden)    # [P,N,D] bf16, [P,1,128]

    # Semantic softmax + fusion + final Linear(D -> out), all in one kernel.
    v = fuse_predict(scores, z, kparams["pred_w"], kparams["pred_b"])   # [N, out] f32

    return v[cui1], v[cui2]


def init_params(key, *, P, in_size, heads, hidden, sem_hidden, out_size):
    D = heads * hidden
    ks = jax.random.split(key, 6)
    return {
        "fc_w": jax.random.normal(ks[0], (in_size, P * D), jnp.float32)
                * (1.0 / math.sqrt(in_size)),
        "attn_l": jax.random.normal(ks[1], (P, 1, D), jnp.float32) * 0.1,
        "attn_r": jax.random.normal(ks[2], (P, 1, D), jnp.float32) * 0.1,
        "gat_bias": jnp.zeros((P, 1, D), jnp.float32),       # DGL GATConv bias (zeros init)
        "sem_w1": jax.random.normal(ks[3], (D, sem_hidden), jnp.float32)
                  * (1.0 / math.sqrt(D)),
        "sem_b1": jnp.zeros((1, sem_hidden), jnp.float32),
        "sem_q": jax.random.normal(ks[4], (1, sem_hidden), jnp.float32)
                 * (1.0 / math.sqrt(sem_hidden)),
        "pred_w": jax.random.normal(ks[5], (D, out_size), jnp.float32)
                  * (1.0 / math.sqrt(D)),
        "pred_b": jnp.zeros((1, out_size), jnp.float32),
    }


def pack_params(params, *, heads, hidden):
    """Host-side precompute: head-block-masked attn matrices and bf16 casts of all
    constant MXU operands (done once, outside the kernels)."""
    D = heads * hidden
    head_id = jnp.arange(D) // hidden                        # [D]
    head_mask = (head_id[None, :] == jnp.arange(heads)[:, None]).astype(jnp.float32)  # [H,D]
    al = params["attn_l"][:, 0, :][:, None, :] * head_mask[None]        # [P, H, D]
    ar = params["attn_r"][:, 0, :][:, None, :] * head_mask[None]        # [P, H, D]
    return {
        "fc_w": params["fc_w"].astype(jnp.bfloat16),
        "attn_l_blk": al.astype(jnp.bfloat16),                           # [P, H, D]
        "attn_r_blk": jnp.swapaxes(ar, 1, 2).astype(jnp.bfloat16),       # [P, D, H]
        "gat_bias": params["gat_bias"],
        "sem_w1": params["sem_w1"].astype(jnp.bfloat16),
        "sem_b1": params["sem_b1"],
        "sem_q": params["sem_q"],
        "pred_w": params["pred_w"].astype(jnp.bfloat16),
        "pred_b": params["pred_b"],
    }


if __name__ == "__main__":
    # Small, TPU-tile-friendly shapes consistent with the module structure
    # (module: 10 meta-paths, in=1000, hidden=100, heads=20, out=100 — scaled down).
    P = 10          # number of meta-paths
    N_NODES = 128
    IN_SIZE = 256
    HEADS = 4
    HIDDEN = 32     # heads * hidden = 128
    SEM_HIDDEN = 128
    OUT_SIZE = 128

    key = jax.random.PRNGKey(0)
    k_h, k_adj, k_p = jax.random.split(key, 3)

    # Node features (self.h) and synthetic meta-path adjacency masks (self.g).
    h = jax.random.normal(k_h, (N_NODES, IN_SIZE), jnp.float32)
    adj_bool = jax.random.uniform(k_adj, (P, N_NODES, N_NODES)) < 0.1
    adj_bool = jnp.logical_or(adj_bool, jnp.eye(N_NODES, dtype=bool)[None])  # self-loops
    adj_i8 = adj_bool.astype(jnp.int8)   # 0/1 mask -> int8 halves the [P,N,N] DMA

    params = init_params(k_p, P=P, in_size=IN_SIZE, heads=HEADS, hidden=HIDDEN,
                         sem_hidden=SEM_HIDDEN, out_size=OUT_SIZE)
    kparams = pack_params(params, heads=HEADS, hidden=HIDDEN)

    cui1 = jnp.array([0, 5, 17, 42], dtype=jnp.int32)
    cui2 = jnp.array([3, 9, 64, 100], dtype=jnp.int32)

    fwd = jax.jit(partial(gat_encoder_forward, heads=HEADS, hidden=HIDDEN))
    v1, v2 = fwd(h, adj_i8, kparams, cui1, cui2)
    jax.block_until_ready((v1, v2))
    assert v1.shape == (cui1.shape[0], OUT_SIZE)
    assert v2.shape == (cui2.shape[0], OUT_SIZE)
    assert bool(jnp.all(jnp.isfinite(v1))) and bool(jnp.all(jnp.isfinite(v2)))
    print("KERNEL_OK")
</pallas_src>

<mosaic_0001>
module attributes {stable_mosaic.version = 11 : i64} {
  func.func @_gat_metapath_kernel(%arg0: i32, %arg1: memref<128x256xbf16, #tpu.memory_space<vmem>>, %arg2: memref<256x128xbf16, #tpu.memory_space<vmem>>, %arg3: memref<1x128x128xi8, #tpu.memory_space<vmem>>, %arg4: memref<1x4x128xbf16, #tpu.memory_space<vmem>>, %arg5: memref<1x128x4xbf16, #tpu.memory_space<vmem>>, %arg6: memref<1x1x128xf32, #tpu.memory_space<vmem>>, %arg7: memref<128x128xbf16, #tpu.memory_space<vmem>>, %arg8: memref<1x128xf32, #tpu.memory_space<vmem>>, %arg9: memref<1x128xf32, #tpu.memory_space<vmem>>, %arg10: memref<1x128x128xbf16, #tpu.memory_space<vmem>>, %arg11: memref<1x1x128xf32, #tpu.memory_space<vmem>>, %arg12: memref<128x128xf32, #tpu.memory_space<vmem>>) attributes {dimension_semantics = [#tpu.dimension_semantics<parallel>], iteration_bounds = array<i64: 10>, scalar_prefetch = 0 : i64, scratch_operands = 1 : i64, tpu.core_type = #tpu.core_type<tc>, window_params = [{pipeline_mode = #tpu.pipeline_mode<synchronous>, transform_indices = @transform_0, window_bounds = array<i64: 128, 256>}, {transform_indices = @transform_1, window_bounds = array<i64: 256, 128>}, {transform_indices = @transform_2, window_bounds = array<i64: 1, 128, 128>}, {transform_indices = @transform_3, window_bounds = array<i64: 1, 4, 128>}, {transform_indices = @transform_4, window_bounds = array<i64: 1, 128, 4>}, {transform_indices = @transform_5, window_bounds = array<i64: 1, 1, 128>}, {pipeline_mode = #tpu.pipeline_mode<synchronous>, transform_indices = @transform_6, window_bounds = array<i64: 128, 128>}, {pipeline_mode = #tpu.pipeline_mode<synchronous>, transform_indices = @transform_7, window_bounds = array<i64: 1, 128>}, {pipeline_mode = #tpu.pipeline_mode<synchronous>, transform_indices = @transform_8, window_bounds = array<i64: 1, 128>}, {transform_indices = @transform_9, window_bounds = array<i64: 1, 128, 128>}, {transform_indices = @transform_10, window_bounds = array<i64: 1, 1, 128>}]} {
    %c0 = arith.constant 0 : index
    %c0_0 = arith.constant 0 : index
    %0 = vector.load %arg1[%c0, %c0_0] : memref<128x256xbf16, #tpu.memory_space<vmem>>, vector<128x256xbf16>
    %c0_1 = arith.constant 0 : index
    %c0_2 = arith.constant 0 : index
    %1 = vector.load %arg2[%c0_1, %c0_2] : memref<256x128xbf16, #tpu.memory_space<vmem>>, vector<256x128xbf16>
    %cst = arith.constant dense<0.000000e+00> : vector<128x128xf32>
    %2 = tpu.matmul %0, %1, %cst {dimension_numbers = #tpu.dot_dimension_numbers<[1], [0], [0], [1], [0, 0, 1, 1], [], []>} : vector<128x256xbf16>, vector<256x128xbf16>, vector<128x128xf32> -> vector<128x128xf32>
    %3 = arith.truncf %2 : vector<128x128xf32> to vector<128x128xbf16>
    %c0_3 = arith.constant 0 : index
    %c0_4 = arith.constant 0 : index
    %c0_5 = arith.constant 0 : index
    %4 = vector.load %arg3[%c0_3, %c0_4, %c0_5] : memref<1x128x128xi8, #tpu.memory_space<vmem>>, vector<1x128x128xi8>
    %5 = vector.shape_cast %4 : vector<1x128x128xi8> to vector<128x128xi8>
    %6 = arith.sitofp %5 : vector<128x128xi8> to vector<128x128xf32>
    %cst_6 = arith.constant 1.000000e+00 : f32
    %7 = vector.broadcast %cst_6 : f32 to vector<128x128xf32>
    %8 = arith.subf %6, %7 : vector<128x128xf32>
    %cst_7 = arith.constant 3.000000e+04 : f32
    %9 = vector.broadcast %cst_7 : f32 to vector<128x128xf32>
    %10 = arith.mulf %8, %9 : vector<128x128xf32>
    %c0_8 = arith.constant 0 : index
    %c0_9 = arith.constant 0 : index
    %c0_10 = arith.constant 0 : index
    %11 = vector.load %arg4[%c0_8, %c0_9, %c0_10] : memref<1x4x128xbf16, #tpu.memory_space<vmem>>, vector<1x4x128xbf16>
    %12 = vector.shape_cast %11 : vector<1x4x128xbf16> to vector<4x128xbf16>
    %cst_11 = arith.constant dense<0.000000e+00> : vector<4x128xf32>
    %13 = tpu.matmul %12, %3, %cst_11 {dimension_numbers = #tpu.dot_dimension_numbers<[1], [1], [0], [0], [0, 0, 1, 0], [], []>} : vector<4x128xbf16>, vector<128x128xbf16>, vector<4x128xf32> -> vector<4x128xf32>
    %c0_12 = arith.constant 0 : index
    %c0_13 = arith.constant 0 : index
    %c0_14 = arith.constant 0 : index
    %14 = vector.load %arg5[%c0_12, %c0_13, %c0_14] : memref<1x128x4xbf16, #tpu.memory_space<vmem>>, vector<1x128x4xbf16>
    %15 = vector.shape_cast %14 : vector<1x128x4xbf16> to vector<128x4xbf16>
    %cst_15 = arith.constant dense<0.000000e+00> : vector<128x4xf32>
    %16 = tpu.matmul %3, %15, %cst_15 {dimension_numbers = #tpu.dot_dimension_numbers<[1], [0], [0], [1], [0, 0, 1, 1], [], []>} : vector<128x128xbf16>, vector<128x4xbf16>, vector<128x4xf32> -> vector<128x4xf32>
    %17 = vector.extract_strided_slice %16 {offsets = [0, 0], sizes = [128, 1], strides = [1, 1]} : vector<128x4xf32> to vector<128x1xf32>
    %18 = vector.extract_strided_slice %13 {offsets = [0, 0], sizes = [1, 128], strides = [1, 1]} : vector<4x128xf32> to vector<1x128xf32>
    %19 = vector.broadcast %17 : vector<128x1xf32> to vector<128x128xf32>
    %20 = vector.broadcast %18 : vector<1x128xf32> to vector<128x128xf32>
    %21 = arith.addf %19, %20 : vector<128x128xf32>
    %cst_16 = arith.constant 2.000000e-01 : f32
    %22 = vector.broadcast %cst_16 : f32 to vector<128x128xf32>
    %23 = arith.mulf %22, %21 : vector<128x128xf32>
    %24 = arith.maximumf %21, %23 : vector<128x128xf32>
    %25 = arith.addf %24, %10 : vector<128x128xf32>
    %cst_17 = arith.constant dense<0xFF800000> : vector<128xf32>
    %26 = vector.multi_reduction <maximumf>, %25, %cst_17 [1] : vector<128x128xf32> to vector<128xf32>
    %27 = vector.shape_cast %26 : vector<128xf32> to vector<128x1xf32>
    %28 = vector.broadcast %27 : vector<128x1xf32> to vector<128x128xf32>
    %29 = arith.subf %25, %28 : vector<128x128xf32>
    %30 = math.exp %29 : vector<128x128xf32>
    %cst_18 = arith.constant dense<0.000000e+00> : vector<128xf32>
    %31 = vector.multi_reduction <add>, %30, %cst_18 [1] : vector<128x128xf32> to vector<128xf32>
    %32 = vector.shape_cast %31 : vector<128xf32> to vector<128x1xf32>
    %33 = arith.truncf %30 : vector<128x128xf32> to vector<128x128xbf16>
    %34 = vector.extract_strided_slice %3 {offsets = [0, 0], sizes = [128, 32], strides = [1, 1]} : vector<128x128xbf16> to vector<128x32xbf16>
    %cst_19 = arith.constant dense<0.000000e+00> : vector<128x32xf32>
    %35 = tpu.matmul %33, %34, %cst_19 {dimension_numbers = #tpu.dot_dimension_numbers<[1], [0], [0], [1], [0, 0, 1, 1], [], []>} : vector<128x128xbf16>, vector<128x32xbf16>, vector<128x32xf32> -> vector<128x32xf32>
    %36 = tpu.reciprocal %32 {approx = true} : vector<128x1xf32> -> vector<128x1xf32>
    %37 = vector.broadcast %36 : vector<128x1xf32> to vector<128x32xf32>
    %38 = arith.mulf %35, %37 : vector<128x32xf32>
    %c0_20 = arith.constant 0 : index
    %c0_21 = arith.constant 0 : index
    %39 = vector.load %arg12[%c0_20, %c0_21] : memref<128x128xf32, #tpu.memory_space<vmem>>, vector<128x32xf32>
    tpu.vector_store %arg12[%c0_20, %c0_21], %38 {strides = array<i32>} : memref<128x128xf32, #tpu.memory_space<vmem>>, vector<128x32xf32>,
    %40 = vector.extract_strided_slice %16 {offsets = [0, 1], sizes = [128, 1], strides = [1, 1]} : vector<128x4xf32> to vector<128x1xf32>
    %41 = vector.extract_strided_slice %13 {offsets = [1, 0], sizes = [1, 128], strides = [1, 1]} : vector<4x128xf32> to vector<1x128xf32>
    %42 = vector.broadcast %40 : vector<128x1xf32> to vector<128x128xf32>
    %43 = vector.broadcast %41 : vector<1x128xf32> to vector<128x128xf32>
    %44 = arith.addf %42, %43 : vector<128x128xf32>
    %cst_22 = arith.constant 2.000000e-01 : f32
    %45 = vector.broadcast %cst_22 : f32 to vector<128x128xf32>
    %46 = arith.mulf %45, %44 : vector<128x128xf32>
    %47 = arith.maximumf %44, %46 : vector<128x128xf32>
    %48 = arith.addf %47, %10 : vector<128x128xf32>
    %cst_23 = arith.constant dense<0xFF800000> : vector<128xf32>
    %49 = vector.multi_reduction <maximumf>, %48, %cst_23 [1] : vector<128x128xf32> to vector<128xf32>
    %50 = vector.shape_cast %49 : vector<128xf32> to vector<128x1xf32>
    %51 = vector.broadcast %50 : vector<128x1xf32> to vector<128x128xf32>
    %52 = arith.subf %48, %51 : vector<128x128xf32>
    %53 = math.exp %52 : vector<128x128xf32>
    %cst_24 = arith.constant dense<0.000000e+00> : vector<128xf32>
    %54 = vector.multi_reduction <add>, %53, %cst_24 [1] : vector<128x128xf32> to vector<128xf32>
    %55 = vector.shape_cast %54 : vector<128xf32> to vector<128x1xf32>
    %56 = arith.truncf %53 : vector<128x128xf32> to vector<128x128xbf16>
    %57 = vector.extract_strided_slice %3 {offsets = [0, 32], sizes = [128, 32], strides = [1, 1]} : vector<128x128xbf16> to vector<128x32xbf16>
    %cst_25 = arith.constant dense<0.000000e+00> : vector<128x32xf32>
    %58 = tpu.matmul %56, %57, %cst_25 {dimension_numbers = #tpu.dot_dimension_numbers<[1], [0], [0], [1], [0, 0, 1, 1], [], []>} : vector<128x128xbf16>, vector<128x32xbf16>, vector<128x32xf32> -> vector<128x32xf32>
    %59 = tpu.reciprocal %55 {approx = true} : vector<128x1xf32> -> vector<128x1xf32>
    %60 = vector.broadcast %59 : vector<128x1xf32> to vector<128x32xf32>
    %61 = arith.mulf %58, %60 : vector<128x32xf32>
    %c0_26 = arith.constant 0 : index
    %c32 = arith.constant 32 : index
    %62 = vector.load %arg12[%c0_26, %c32] : memref<128x128xf32, #tpu.memory_space<vmem>>, vector<128x32xf32>
    tpu.vector_store %arg12[%c0_26, %c32], %61 {strides = array<i32>} : memref<128x128xf32, #tpu.memory_space<vmem>>, vector<128x32xf32>,
    %63 = vector.extract_strided_slice %16 {offsets = [0, 2], sizes = [128, 1], strides = [1, 1]} : vector<128x4xf32> to vector<128x1xf32>
    %64 = vector.extract_strided_slice %13 {offsets = [2, 0], sizes = [1, 128], strides = [1, 1]} : vector<4x128xf32> to vector<1x128xf32>
    %65 = vector.broadcast %63 : vector<128x1xf32> to vector<128x128xf32>
    %66 = vector.broadcast %64 : vector<1x128xf32> to vector<128x128xf32>
    %67 = arith.addf %65, %66 : vector<128x128xf32>
    %cst_27 = arith.constant 2.000000e-01 : f32
    %68 = vector.broadcast %cst_27 : f32 to vector<128x128xf32>
    %69 = arith.mulf %68, %67 : vector<128x128xf32>
    %70 = arith.maximumf %67, %69 : vector<128x128xf32>
    %71 = arith.addf %70, %10 : vector<128x128xf32>
    %cst_28 = arith.constant dense<0xFF800000> : vector<128xf32>
    %72 = vector.multi_reduction <maximumf>, %71, %cst_28 [1] : vector<128x128xf32> to vector<128xf32>
    %73 = vector.shape_cast %72 : vector<128xf32> to vector<128x1xf32>
    %74 = vector.broadcast %73 : vector<128x1xf32> to vector<128x128xf32>
    %75 = arith.subf %71, %74 : vector<128x128xf32>
    %76 = math.exp %75 : vector<128x128xf32>
    %cst_29 = arith.constant dense<0.000000e+00> : vector<128xf32>
    %77 = vector.multi_reduction <add>, %76, %cst_29 [1] : vector<128x128xf32> to vector<128xf32>
    %78 = vector.shape_cast %77 : vector<128xf32> to vector<128x1xf32>
    %79 = arith.truncf %76 : vector<128x128xf32> to vector<128x128xbf16>
    %80 = vector.extract_strided_slice %3 {offsets = [0, 64], sizes = [128, 32], strides = [1, 1]} : vector<128x128xbf16> to vector<128x32xbf16>
    %cst_30 = arith.constant dense<0.000000e+00> : vector<128x32xf32>
    %81 = tpu.matmul %79, %80, %cst_30 {dimension_numbers = #tpu.dot_dimension_numbers<[1], [0], [0], [1], [0, 0, 1, 1], [], []>} : vector<128x128xbf16>, vector<128x32xbf16>, vector<128x32xf32> -> vector<128x32xf32>
    %82 = tpu.reciprocal %78 {approx = true} : vector<128x1xf32> -> vector<128x1xf32>
    %83 = vector.broadcast %82 : vector<128x1xf32> to vector<128x32xf32>
    %84 = arith.mulf %81, %83 : vector<128x32xf32>
    %c0_31 = arith.constant 0 : index
    %c64 = arith.constant 64 : index
    %85 = vector.load %arg12[%c0_31, %c64] : memref<128x128xf32, #tpu.memory_space<vmem>>, vector<128x32xf32>
    tpu.vector_store %arg12[%c0_31, %c64], %84 {strides = array<i32>} : memref<128x128xf32, #tpu.memory_space<vmem>>, vector<128x32xf32>,
    %86 = vector.extract_strided_slice %16 {offsets = [0, 3], sizes = [128, 1], strides = [1, 1]} : vector<128x4xf32> to vector<128x1xf32>
    %87 = vector.extract_strided_slice %13 {offsets = [3, 0], sizes = [1, 128], strides = [1, 1]} : vector<4x128xf32> to vector<1x128xf32>
    %88 = vector.broadcast %86 : vector<128x1xf32> to vector<128x128xf32>
    %89 = vector.broadcast %87 : vector<1x128xf32> to vector<128x128xf32>
    %90 = arith.addf %88, %89 : vector<128x128xf32>
    %cst_32 = arith.constant 2.000000e-01 : f32
    %91 = vector.broadcast %cst_32 : f32 to vector<128x128xf32>
    %92 = arith.mulf %91, %90 : vector<128x128xf32>
    %93 = arith.maximumf %90, %92 : vector<128x128xf32>
    %94 = arith.addf %93, %10 : vector<128x128xf32>
    %cst_33 = arith.constant dense<0xFF800000> : vector<128xf32>
    %95 = vector.multi_reduction <maximumf>, %94, %cst_33 [1] : vector<128x128xf32> to vector<128xf32>
    %96 = vector.shape_cast %95 : vector<128xf32> to vector<128x1xf32>
    %97 = vector.broadcast %96 : vector<128x1xf32> to vector<128x128xf32>
    %98 = arith.subf %94, %97 : vector<128x128xf32>
    %99 = math.exp %98 : vector<128x128xf32>
    %cst_34 = arith.constant dense<0.000000e+00> : vector<128xf32>
    %100 = vector.multi_reduction <add>, %99, %cst_34 [1] : vector<128x128xf32> to vector<128xf32>
    %101 = vector.shape_cast %100 : vector<128xf32> to vector<128x1xf32>
    %102 = arith.truncf %99 : vector<128x128xf32> to vector<128x128xbf16>
    %103 = vector.extract_strided_slice %3 {offsets = [0, 96], sizes = [128, 32], strides = [1, 1]} : vector<128x128xbf16> to vector<128x32xbf16>
    %cst_35 = arith.constant dense<0.000000e+00> : vector<128x32xf32>
    %104 = tpu.matmul %102, %103, %cst_35 {dimension_numbers = #tpu.dot_dimension_numbers<[1], [0], [0], [1], [0, 0, 1, 1], [], []>} : vector<128x128xbf16>, vector<128x32xbf16>, vector<128x32xf32> -> vector<128x32xf32>
    %105 = tpu.reciprocal %101 {approx = true} : vector<128x1xf32> -> vector<128x1xf32>
    %106 = vector.broadcast %105 : vector<128x1xf32> to vector<128x32xf32>
    %107 = arith.mulf %104, %106 : vector<128x32xf32>
    %c0_36 = arith.constant 0 : index
    %c96 = arith.constant 96 : index
    %108 = vector.load %arg12[%c0_36, %c96] : memref<128x128xf32, #tpu.memory_space<vmem>>, vector<128x32xf32>
    tpu.vector_store %arg12[%c0_36, %c96], %107 {strides = array<i32>} : memref<128x128xf32, #tpu.memory_space<vmem>>, vector<128x32xf32>,
    %c0_37 = arith.constant 0 : index
    %c0_38 = arith.constant 0 : index
    %109 = vector.load %arg12[%c0_37, %c0_38] : memref<128x128xf32, #tpu.memory_space<vmem>>, vector<128x128xf32>
    %c0_39 = arith.constant 0 : index
    %c0_40 = arith.constant 0 : index
    %c0_41 = arith.constant 0 : index
    %110 = vector.load %arg6[%c0_39, %c0_40, %c0_41] : memref<1x1x128xf32, #tpu.memory_space<vmem>>, vector<1x1x128xf32>
    %111 = vector.shape_cast %110 : vector<1x1x128xf32> to vector<1x128xf32>
    %112 = vector.broadcast %111 : vector<1x128xf32> to vector<128x128xf32>
    %113 = arith.addf %109, %112 : vector<128x128xf32>
    %cst_42 = arith.constant 0.000000e+00 : f32
    %114 = vector.broadcast %cst_42 : f32 to vector<128x128xf32>
    %115 = arith.cmpf ogt, %113, %114 : vector<128x128xf32>
    %cst_43 = arith.constant 0.000000e+00 : f32
    %116 = vector.broadcast %cst_43 : f32 to vector<128x128xf32>
    %117 = arith.minimumf %113, %116 : vector<128x128xf32>
    %118 = math.exp %117 : vector<128x128xf32>
    %cst_44 = arith.constant 1.000000e+00 : f32
    %119 = vector.broadcast %cst_44 : f32 to vector<128x128xf32>
    %120 = arith.subf %118, %119 : vector<128x128xf32>
    %121 = arith.select %115, %113, %120 : vector<128x128xi1>, vector<128x128xf32>
    %122 = arith.truncf %121 : vector<128x128xf32> to vector<128x128xbf16>
    %c0_45 = arith.constant 0 : index
    %c0_46 = arith.constant 0 : index
    %c0_47 = arith.constant 0 : index
    %123 = vector.load %arg10[%c0_45, %c0_46, %c0_47] : memref<1x128x128xbf16, #tpu.memory_space<vmem>>, vector<1x128x128xbf16>
    %124 = vector.shape_cast %123 : vector<1x128x128xbf16> to vector<128x128xbf16>
    %125 = vector.shape_cast %122 : vector<128x128xbf16> to vector<1x128x128xbf16>
    tpu.vector_store %arg10[%c0_45, %c0_46, %c0_47], %125 {strides = array<i32>} : memref<1x128x128xbf16, #tpu.memory_space<vmem>>, vector<1x128x128xbf16>,
    %c0_48 = arith.constant 0 : index
    %c0_49 = arith.constant 0 : index
    %126 = vector.load %arg7[%c0_48, %c0_49] : memref<128x128xbf16, #tpu.memory_space<vmem>>, vector<128x128xbf16>
    %cst_50 = arith.constant dense<0.000000e+00> : vector<128x128xf32>
    %127 = tpu.matmul %122, %126, %cst_50 {dimension_numbers = #tpu.dot_dimension_numbers<[1], [0], [0], [1], [0, 0, 1, 1], [], []>} : vector<128x128xbf16>, vector<128x128xbf16>, vector<128x128xf32> -> vector<128x128xf32>
    %c0_51 = arith.constant 0 : index
    %c0_52 = arith.constant 0 : index
    %128 = vector.load %arg8[%c0_51, %c0_52] : memref<1x128xf32, #tpu.memory_space<vmem>>, vector<1x128xf32>
    %129 = vector.broadcast %128 : vector<1x128xf32> to vector<128x128xf32>
    %130 = arith.addf %127, %129 : vector<128x128xf32>
    %131 = math.tanh %130 : vector<128x128xf32>
    %c0_53 = arith.constant 0 : index
    %c0_54 = arith.constant 0 : index
    %132 = vector.load %arg9[%c0_53, %c0_54] : memref<1x128xf32, #tpu.memory_space<vmem>>, vector<1x128xf32>
    %133 = vector.broadcast %132 : vector<1x128xf32> to vector<128x128xf32>
    %134 = arith.mulf %131, %133 : vector<128x128xf32>
    %cst_55 = arith.constant dense<0.000000e+00> : vector<128xf32>
    %135 = vector.multi_reduction <add>, %134, %cst_55 [1] : vector<128x128xf32> to vector<128xf32>
    %136 = vector.shape_cast %135 : vector<128xf32> to vector<128x1xf32>
    %cst_56 = arith.constant dense<0.000000e+00> : vector<1xf32>
    %137 = vector.multi_reduction <add>, %136, %cst_56 [0] : vector<128x1xf32> to vector<1xf32>
    %138 = vector.shape_cast %137 : vector<1xf32> to vector<1x1xf32>
    %cst_57 = arith.constant 7.812500e-03 : f32
    %139 = vector.broadcast %cst_57 : f32 to vector<1x1xf32>
    %140 = arith.mulf %138, %139 : vector<1x1xf32>
    %141 = vector.shape_cast %140 : vector<1x1xf32> to vector<1x1xf32>
    %142 = vector.broadcast %141 : vector<1x1xf32> to vector<1x128xf32>
    %c0_58 = arith.constant 0 : index
    %c0_59 = arith.constant 0 : index
    %c0_60 = arith.constant 0 : index
    %143 = vector.load %arg11[%c0_58, %c0_59, %c0_60] : memref<1x1x128xf32, #tpu.memory_space<vmem>>, vector<1x1x128xf32>
    %144 = vector.shape_cast %143 : vector<1x1x128xf32> to vector<1x128xf32>
    %145 = vector.shape_cast %142 : vector<1x128xf32> to vector<1x1x128xf32>
    tpu.vector_store %arg11[%c0_58, %c0_59, %c0_60], %145 {strides = array<i32>} : memref<1x1x128xf32, #tpu.memory_space<vmem>>, vector<1x1x128xf32>,
    return
  }
  func.func @transform_0(%arg0: i32) -> (i32, i32) {
    %c0_i32 = arith.constant 0 : i32
    %c0_i32_0 = arith.constant 0 : i32
    %c0_i32_1 = arith.constant 0 : i32
    return %c0_i32, %c0_i32_0 : i32, i32
  }
  func.func @transform_1(%arg0: i32) -> (i32, i32) {
    %c0_i32 = arith.constant 0 : i32
    %c0_i32_0 = arith.constant 0 : i32
    return %c0_i32, %arg0 : i32, i32
  }
  func.func @transform_2(%arg0: i32) -> (i32, i32, i32) {
    %c0_i32 = arith.constant 0 : i32
    %c0_i32_0 = arith.constant 0 : i32
    %c0_i32_1 = arith.constant 0 : i32
    return %arg0, %c0_i32, %c0_i32_0 : i32, i32, i32
  }
  func.func @transform_3(%arg0: i32) -> (i32, i32, i32) {
    %c0_i32 = arith.constant 0 : i32
    %c0_i32_0 = arith.constant 0 : i32
    %c0_i32_1 = arith.constant 0 : i32
    return %arg0, %c0_i32, %c0_i32_0 : i32, i32, i32
  }
  func.func @transform_4(%arg0: i32) -> (i32, i32, i32) {
    %c0_i32 = arith.constant 0 : i32
    %c0_i32_0 = arith.constant 0 : i32
    %c0_i32_1 = arith.constant 0 : i32
    return %arg0, %c0_i32, %c0_i32_0 : i32, i32, i32
  }
  func.func @transform_5(%arg0: i32) -> (i32, i32, i32) {
    %c0_i32 = arith.constant 0 : i32
    %c0_i32_0 = arith.constant 0 : i32
    %c0_i32_1 = arith.constant 0 : i32
    return %arg0, %c0_i32, %c0_i32_0 : i32, i32, i32
  }
  func.func @transform_6(%arg0: i32) -> (i32, i32) {
    %c0_i32 = arith.constant 0 : i32
    %c0_i32_0 = arith.constant 0 : i32
    %c0_i32_1 = arith.constant 0 : i32
    return %c0_i32, %c0_i32_0 : i32, i32
  }
  func.func @transform_7(%arg0: i32) -> (i32, i32) {
    %c0_i32 = arith.constant 0 : i32
    %c0_i32_0 = arith.constant 0 : i32
    %c0_i32_1 = arith.constant 0 : i32
    return %c0_i32, %c0_i32_0 : i32, i32
  }
  func.func @transform_8(%arg0: i32) -> (i32, i32) {
    %c0_i32 = arith.constant 0 : i32
    %c0_i32_0 = arith.constant 0 : i32
    %c0_i32_1 = arith.constant 0 : i32
    return %c0_i32, %c0_i32_0 : i32, i32
  }
  func.func @transform_9(%arg0: i32) -> (i32, i32, i32) {
    %c0_i32 = arith.constant 0 : i32
    %c0_i32_0 = arith.constant 0 : i32
    %c0_i32_1 = arith.constant 0 : i32
    return %arg0, %c0_i32, %c0_i32_0 : i32, i32, i32
  }
  func.func @transform_10(%arg0: i32) -> (i32, i32, i32) {
    %c0_i32 = arith.constant 0 : i32
    %c0_i32_0 = arith.constant 0 : i32
    %c0_i32_1 = arith.constant 0 : i32
    return %arg0, %c0_i32, %c0_i32_0 : i32, i32, i32
  }
}

module attributes {stable_mosaic.version = 11 : i64} {
  func.func @_fuse_predict_kernel(%arg0: i32, %arg1: memref<10x1x128xf32, #tpu.memory_space<vmem>>, %arg2: memref<10x32x128xbf16, #tpu.memory_space<vmem>>, %arg3: memref<128x128xbf16, #tpu.memory_space<vmem>>, %arg4: memref<1x128xf32, #tpu.memory_space<vmem>>, %arg5: memref<32x128xf32, #tpu.memory_space<vmem>>) attributes {dimension_semantics = [#tpu.dimension_semantics<parallel>], iteration_bounds = array<i64: 4>, scalar_prefetch = 0 : i64, scratch_operands = 0 : i64, tpu.core_type = #tpu.core_type<tc>, window_params = [{pipeline_mode = #tpu.pipeline_mode<synchronous>, transform_indices = @transform_0, window_bounds = array<i64: 10, 1, 128>}, {transform_indices = @transform_1, window_bounds = array<i64: 10, 32, 128>}, {pipeline_mode = #tpu.pipeline_mode<synchronous>, transform_indices = @transform_2, window_bounds = array<i64: 128, 128>}, {pipeline_mode = #tpu.pipeline_mode<synchronous>, transform_indices = @transform_3, window_bounds = array<i64: 1, 128>}, {transform_indices = @transform_4, window_bounds = array<i64: 32, 128>}]} {
    %c0 = arith.constant 0 : index
    %c0_0 = arith.constant 0 : index
    %c0_1 = arith.constant 0 : index
    %0 = vector.load %arg1[%c0, %c0_0, %c0_1] : memref<10x1x128xf32, #tpu.memory_space<vmem>>, vector<10x1x128xf32>
    %cst = arith.constant dense<0xFF800000> : vector<1x128xf32>
    %1 = vector.multi_reduction <maximumf>, %0, %cst [0] : vector<10x1x128xf32> to vector<1x128xf32>
    %2 = vector.shape_cast %1 : vector<1x128xf32> to vector<1x1x128xf32>
    %3 = vector.broadcast %2 : vector<1x1x128xf32> to vector<10x1x128xf32>
    %4 = arith.subf %0, %3 : vector<10x1x128xf32>
    %5 = math.exp %4 : vector<10x1x128xf32>
    %cst_2 = arith.constant dense<0.000000e+00> : vector<1x128xf32>
    %6 = vector.multi_reduction <add>, %5, %cst_2 [0] : vector<10x1x128xf32> to vector<1x128xf32>
    %7 = vector.shape_cast %6 : vector<1x128xf32> to vector<1x1x128xf32>
    %8 = tpu.reciprocal %7 {approx = true} : vector<1x1x128xf32> -> vector<1x1x128xf32>
    %9 = vector.broadcast %8 : vector<1x1x128xf32> to vector<10x1x128xf32>
    %10 = arith.mulf %5, %9 : vector<10x1x128xf32>
    %cst_3 = arith.constant 0.000000e+00 : f32
    %11 = vector.broadcast %cst_3 : f32 to vector<32x128xf32>
    %c0_4 = arith.constant 0 : index
    %c0_5 = arith.constant 0 : index
    %c0_6 = arith.constant 0 : index
    %12 = vector.load %arg2[%c0_4, %c0_5, %c0_6] : memref<10x32x128xbf16, #tpu.memory_space<vmem>>, vector<1x32x128xbf16>
    %13 = vector.shape_cast %12 : vector<1x32x128xbf16> to vector<32x128xbf16>
    %14 = arith.extf %13 : vector<32x128xbf16> to vector<32x128xf32>
    %15 = vector.extract_strided_slice %10 {offsets = [0, 0, 0], sizes = [1, 1, 1], strides = [1, 1, 1]} : vector<10x1x128xf32> to vector<1x1x1xf32>
    %16 = vector.shape_cast %15 : vector<1x1x1xf32> to vector<1x1xf32>
    %17 = vector.broadcast %16 : vector<1x1xf32> to vector<32x128xf32>
    %18 = arith.mulf %14, %17 : vector<32x128xf32>
    %19 = arith.addf %11, %18 : vector<32x128xf32>
    %c1 = arith.constant 1 : index
    %c0_7 = arith.constant 0 : index
    %c0_8 = arith.constant 0 : index
    %20 = vector.load %arg2[%c1, %c0_7, %c0_8] : memref<10x32x128xbf16, #tpu.memory_space<vmem>>, vector<1x32x128xbf16>
    %21 = vector.shape_cast %20 : vector<1x32x128xbf16> to vector<32x128xbf16>
    %22 = arith.extf %21 : vector<32x128xbf16> to vector<32x128xf32>
    %23 = vector.extract_strided_slice %10 {offsets = [1, 0, 0], sizes = [1, 1, 1], strides = [1, 1, 1]} : vector<10x1x128xf32> to vector<1x1x1xf32>
    %24 = vector.shape_cast %23 : vector<1x1x1xf32> to vector<1x1xf32>
    %25 = vector.broadcast %24 : vector<1x1xf32> to vector<32x128xf32>
    %26 = arith.mulf %22, %25 : vector<32x128xf32>
    %27 = arith.addf %19, %26 : vector<32x128xf32>
    %c2 = arith.constant 2 : index
    %c0_9 = arith.constant 0 : index
    %c0_10 = arith.constant 0 : index
    %28 = vector.load %arg2[%c2, %c0_9, %c0_10] : memref<10x32x128xbf16, #tpu.memory_space<vmem>>, vector<1x32x128xbf16>
    %29 = vector.shape_cast %28 : vector<1x32x128xbf16> to vector<32x128xbf16>
    %30 = arith.extf %29 : vector<32x128xbf16> to vector<32x128xf32>
    %31 = vector.extract_strided_slice %10 {offsets = [2, 0, 0], sizes = [1, 1, 1], strides = [1, 1, 1]} : vector<10x1x128xf32> to vector<1x1x1xf32>
    %32 = vector.shape_cast %31 : vector<1x1x1xf32> to vector<1x1xf32>
    %33 = vector.broadcast %32 : vector<1x1xf32> to vector<32x128xf32>
    %34 = arith.mulf %30, %33 : vector<32x128xf32>
    %35 = arith.addf %27, %34 : vector<32x128xf32>
    %c3 = arith.constant 3 : index
    %c0_11 = arith.constant 0 : index
    %c0_12 = arith.constant 0 : index
    %36 = vector.load %arg2[%c3, %c0_11, %c0_12] : memref<10x32x128xbf16, #tpu.memory_space<vmem>>, vector<1x32x128xbf16>
    %37 = vector.shape_cast %36 : vector<1x32x128xbf16> to vector<32x128xbf16>
    %38 = arith.extf %37 : vector<32x128xbf16> to vector<32x128xf32>
    %39 = vector.extract_strided_slice %10 {offsets = [3, 0, 0], sizes = [1, 1, 1], strides = [1, 1, 1]} : vector<10x1x128xf32> to vector<1x1x1xf32>
    %40 = vector.shape_cast %39 : vector<1x1x1xf32> to vector<1x1xf32>
    %41 = vector.broadcast %40 : vector<1x1xf32> to vector<32x128xf32>
    %42 = arith.mulf %38, %41 : vector<32x128xf32>
    %43 = arith.addf %35, %42 : vector<32x128xf32>
    %c4 = arith.constant 4 : index
    %c0_13 = arith.constant 0 : index
    %c0_14 = arith.constant 0 : index
    %44 = vector.load %arg2[%c4, %c0_13, %c0_14] : memref<10x32x128xbf16, #tpu.memory_space<vmem>>, vector<1x32x128xbf16>
    %45 = vector.shape_cast %44 : vector<1x32x128xbf16> to vector<32x128xbf16>
    %46 = arith.extf %45 : vector<32x128xbf16> to vector<32x128xf32>
    %47 = vector.extract_strided_slice %10 {offsets = [4, 0, 0], sizes = [1, 1, 1], strides = [1, 1, 1]} : vector<10x1x128xf32> to vector<1x1x1xf32>
    %48 = vector.shape_cast %47 : vector<1x1x1xf32> to vector<1x1xf32>
    %49 = vector.broadcast %48 : vector<1x1xf32> to vector<32x128xf32>
    %50 = arith.mulf %46, %49 : vector<32x128xf32>
    %51 = arith.addf %43, %50 : vector<32x128xf32>
    %c5 = arith.constant 5 : index
    %c0_15 = arith.constant 0 : index
    %c0_16 = arith.constant 0 : index
    %52 = vector.load %arg2[%c5, %c0_15, %c0_16] : memref<10x32x128xbf16, #tpu.memory_space<vmem>>, vector<1x32x128xbf16>
    %53 = vector.shape_cast %52 : vector<1x32x128xbf16> to vector<32x128xbf16>
    %54 = arith.extf %53 : vector<32x128xbf16> to vector<32x128xf32>
    %55 = vector.extract_strided_slice %10 {offsets = [5, 0, 0], sizes = [1, 1, 1], strides = [1, 1, 1]} : vector<10x1x128xf32> to vector<1x1x1xf32>
    %56 = vector.shape_cast %55 : vector<1x1x1xf32> to vector<1x1xf32>
    %57 = vector.broadcast %56 : vector<1x1xf32> to vector<32x128xf32>
    %58 = arith.mulf %54, %57 : vector<32x128xf32>
    %59 = arith.addf %51, %58 : vector<32x128xf32>
    %c6 = arith.constant 6 : index
    %c0_17 = arith.constant 0 : index
    %c0_18 = arith.constant 0 : index
    %60 = vector.load %arg2[%c6, %c0_17, %c0_18] : memref<10x32x128xbf16, #tpu.memory_space<vmem>>, vector<1x32x128xbf16>
    %61 = vector.shape_cast %60 : vector<1x32x128xbf16> to vector<32x128xbf16>
    %62 = arith.extf %61 : vector<32x128xbf16> to vector<32x128xf32>
    %63 = vector.extract_strided_slice %10 {offsets = [6, 0, 0], sizes = [1, 1, 1], strides = [1, 1, 1]} : vector<10x1x128xf32> to vector<1x1x1xf32>
    %64 = vector.shape_cast %63 : vector<1x1x1xf32> to vector<1x1xf32>
    %65 = vector.broadcast %64 : vector<1x1xf32> to vector<32x128xf32>
    %66 = arith.mulf %62, %65 : vector<32x128xf32>
    %67 = arith.addf %59, %66 : vector<32x128xf32>
    %c7 = arith.constant 7 : index
    %c0_19 = arith.constant 0 : index
    %c0_20 = arith.constant 0 : index
    %68 = vector.load %arg2[%c7, %c0_19, %c0_20] : memref<10x32x128xbf16, #tpu.memory_space<vmem>>, vector<1x32x128xbf16>
    %69 = vector.shape_cast %68 : vector<1x32x128xbf16> to vector<32x128xbf16>
    %70 = arith.extf %69 : vector<32x128xbf16> to vector<32x128xf32>
    %71 = vector.extract_strided_slice %10 {offsets = [7, 0, 0], sizes = [1, 1, 1], strides = [1, 1, 1]} : vector<10x1x128xf32> to vector<1x1x1xf32>
    %72 = vector.shape_cast %71 : vector<1x1x1xf32> to vector<1x1xf32>
    %73 = vector.broadcast %72 : vector<1x1xf32> to vector<32x128xf32>
    %74 = arith.mulf %70, %73 : vector<32x128xf32>
    %75 = arith.addf %67, %74 : vector<32x128xf32>
    %c8 = arith.constant 8 : index
    %c0_21 = arith.constant 0 : index
    %c0_22 = arith.constant 0 : index
    %76 = vector.load %arg2[%c8, %c0_21, %c0_22] : memref<10x32x128xbf16, #tpu.memory_space<vmem>>, vector<1x32x128xbf16>
    %77 = vector.shape_cast %76 : vector<1x32x128xbf16> to vector<32x128xbf16>
    %78 = arith.extf %77 : vector<32x128xbf16> to vector<32x128xf32>
    %79 = vector.extract_strided_slice %10 {offsets = [8, 0, 0], sizes = [1, 1, 1], strides = [1, 1, 1]} : vector<10x1x128xf32> to vector<1x1x1xf32>
    %80 = vector.shape_cast %79 : vector<1x1x1xf32> to vector<1x1xf32>
    %81 = vector.broadcast %80 : vector<1x1xf32> to vector<32x128xf32>
    %82 = arith.mulf %78, %81 : vector<32x128xf32>
    %83 = arith.addf %75, %82 : vector<32x128xf32>
    %c9 = arith.constant 9 : index
    %c0_23 = arith.constant 0 : index
    %c0_24 = arith.constant 0 : index
    %84 = vector.load %arg2[%c9, %c0_23, %c0_24] : memref<10x32x128xbf16, #tpu.memory_space<vmem>>, vector<1x32x128xbf16>
    %85 = vector.shape_cast %84 : vector<1x32x128xbf16> to vector<32x128xbf16>
    %86 = arith.extf %85 : vector<32x128xbf16> to vector<32x128xf32>
    %87 = vector.extract_strided_slice %10 {offsets = [9, 0, 0], sizes = [1, 1, 1], strides = [1, 1, 1]} : vector<10x1x128xf32> to vector<1x1x1xf32>
    %88 = vector.shape_cast %87 : vector<1x1x1xf32> to vector<1x1xf32>
    %89 = vector.broadcast %88 : vector<1x1xf32> to vector<32x128xf32>
    %90 = arith.mulf %86, %89 : vector<32x128xf32>
    %91 = arith.addf %83, %90 : vector<32x128xf32>
    %92 = arith.truncf %91 : vector<32x128xf32> to vector<32x128xbf16>
    %c0_25 = arith.constant 0 : index
    %c0_26 = arith.constant 0 : index
    %93 = vector.load %arg3[%c0_25, %c0_26] : memref<128x128xbf16, #tpu.memory_space<vmem>>, vector<128x128xbf16>
    %cst_27 = arith.constant dense<0.000000e+00> : vector<32x128xf32>
    %94 = tpu.matmul %92, %93, %cst_27 {dimension_numbers = #tpu.dot_dimension_numbers<[1], [0], [0], [1], [0, 0, 1, 1], [], []>} : vector<32x128xbf16>, vector<128x128xbf16>, vector<32x128xf32> -> vector<32x128xf32>
    %c0_28 = arith.constant 0 : index
    %c0_29 = arith.constant 0 : index
    %95 = vector.load %arg4[%c0_28, %c0_29] : memref<1x128xf32, #tpu.memory_space<vmem>>, vector<1x128xf32>
    %96 = vector.broadcast %95 : vector<1x128xf32> to vector<32x128xf32>
    %97 = arith.addf %94, %96 : vector<32x128xf32>
    %c0_30 = arith.constant 0 : index
    %c0_31 = arith.constant 0 : index
    %98 = vector.load %arg5[%c0_30, %c0_31] : memref<32x128xf32, #tpu.memory_space<vmem>>, vector<32x128xf32>
    tpu.vector_store %arg5[%c0_30, %c0_31], %97 {strides = array<i32>} : memref<32x128xf32, #tpu.memory_space<vmem>>, vector<32x128xf32>,
    return
  }
  func.func @transform_0(%arg0: i32) -> (i32, i32, i32) {
    %c0_i32 = arith.constant 0 : i32
    %c0_i32_0 = arith.constant 0 : i32
    %c0_i32_1 = arith.constant 0 : i32
    %c0_i32_2 = arith.constant 0 : i32
    return %c0_i32, %c0_i32_0, %c0_i32_1 : i32, i32, i32
  }
  func.func @transform_1(%arg0: i32) -> (i32, i32, i32) {
    %c0_i32 = arith.constant 0 : i32
    %c0_i32_0 = arith.constant 0 : i32
    %c0_i32_1 = arith.constant 0 : i32
    return %c0_i32, %arg0, %c0_i32_0 : i32, i32, i32
  }
  func.func @transform_2(%arg0: i32) -> (i32, i32) {
    %c0_i32 = arith.constant 0 : i32
    %c0_i32_0 = arith.constant 0 : i32
    %c0_i32_1 = arith.constant 0 : i32
    return %c0_i32, %c0_i32_0 : i32, i32
  }
  func.func @transform_3(%arg0: i32) -> (i32, i32) {
    %c0_i32 = arith.constant 0 : i32
    %c0_i32_0 = arith.constant 0 : i32
    %c0_i32_1 = arith.constant 0 : i32
    return %c0_i32, %c0_i32_0 : i32, i32
  }
  func.func @transform_4(%arg0: i32) -> (i32, i32) {
    %c0_i32 = arith.constant 0 : i32
    %c0_i32_0 = arith.constant 0 : i32
    return %arg0, %c0_i32 : i32, i32
  }
}

</mosaic_0001>

<bundles_post_ra>
// kernel: gat_encoder_forward.3
= control target key start
LH: loop header
LB: loop body
LE: loop exit
PB: predicated region body
PF: predicated region fallthrough
CT: control target
= control target key end

     0   :  { %s1237_s15 = smov 0   ;;  %s1239_s16 = smov 0   ;;  %s1560_s0 = inlined_call_operand.vmem [shape: f32[10,1,128], index: 0, kind: input, shape index: {}]   ;;  %s1561_s1 = inlined_call_operand.vmem [shape: bf16[10,128,128], index: 1, kind: input, shape index: {}]   ;;  %s1562_s2 = inlined_call_operand.vmem [shape: bf16[128,128], index: 2, kind: input, shape index: {}]   ;;  %s1563_s3 = inlined_call_operand.vmem [shape: f32[1,128], index: 3, kind: input, shape index: {}]   ;;  %s1564_s4 = inlined_call_operand.vmem [shape: f32[128,128], index: 4, kind: output, shape index: {}]  }
   0x1   :  { %s1241_s17 = smov 0  }
   0x2 LB: > { %s942_s18 = sadd.s32 4294967295, %s1209_s17   ;;  %s1254_s19 = sadd.s32 1, %s1209_s17   ;;  %s1209_s17 = sphi %s1241_s17, %s1577_s17   ;;  %s1205_s16 = sphi %s1239_s16, %s1576_s16   ;;  %s1201_s15 = sphi %s1237_s15, %s1575_s15  }
   0x3   : > { %s39_s20 = ssub.s32 %s1209_s17, %s1254_s19  ;;  %s42_s21 = sadd.s32 1, %s1205_s16 }
   0x4   : > { %p40_p0 = scmp.eq.s32.totalorder %s39_s20, 0  ;;  %p49_p1 = scmp.ne.s32.totalorder %s1205_s16, %s1201_s15 }
   0x5   : > { %p50_p2 = scmp.eq.s32.totalorder %s1209_s17, 0  ;;  %p945_p4 = scmp.ge.s32.totalorder %s1209_s17, 4 }
   0x6   : > { %s1263_s22 = scalar_select %p40_p0, %s1205_s16, %s42_s21  }
   0x7   : > { %p51_p3 = por %p50_p2, %p49_p1  ;;  %152 = sbr.rel (%p945_p4) target bundleno = 26 (0x1a), region = 28 }
   0xc   : > { %155 = sbr.rel (!%p51_p3) target bundleno = 26 (0x1a), region = 32  ;;  %s157_s23 = sand.u32 (%p51_p3), 1, %s1205_s16  }
   0xd   : > { %s998_s24 = sshll.u32 (%p51_p3), %s1209_s17, 4  ;;  %s1128_s25 = smul.u32 (%p51_p3), 160, %s157_s23 }
   0xe   : > { %s1271_s28 = scalar_lea.vmem (%p51_p3), %s1561_s1, %s998_s24 }
   0xf   : > { %v179_v0 = vld [vmem:[%s1271_s28] sm:$0xff] (%p51_p3)   ;;  %v183_v1 = vld [vmem:[%s1271_s28 + $0x8] sm:$0xff] (%p51_p3)   ;;  %s1279_s29 = scalar_lea.vmem (%p51_p3), [#allocation2], %s1128_s25 }
  0x10   : > { %v187_v2 = vld [vmem:[%s1271_s28 + $0x40] sm:$0xff] (%p51_p3)   ;;  %v191_v3 = vld [vmem:[%s1271_s28 + $0x48] sm:$0xff] (%p51_p3)   ;;  %180 = vst [vmem:[%s1279_s29] sm:$0xff] (%p51_p3), %v179_v0   ;;  %184 = vst [vmem:[%s1279_s29 + $0x8] sm:$0xff] (%p51_p3), %v183_v1  }
  0x11   : > { %v195_v4 = vld [vmem:[%s1271_s28 + $0x80] sm:$0xff]   ;;  %v199_v5 = vld [vmem:[%s1271_s28 + $0x88] sm:$0xff]   ;;  %188 = vst [vmem:[%s1279_s29 + $0x10] sm:$0xff] %v187_v2   ;;  %192 = vst [vmem:[%s1279_s29 + $0x18] sm:$0xff] %v191_v3  }
  0x12   : > { %196 = vst [vmem:[%s1279_s29 + $0x20] sm:$0xff] %v195_v4   ;;  %200 = vst [vmem:[%s1279_s29 + $0x28] sm:$0xff] %v199_v5   ;;  %v203_v6 = vld [vmem:[%s1271_s28 + $0xc0] sm:$0xff]   ;;  %v207_v7 = vld [vmem:[%s1271_s28 + $0xc8] sm:$0xff]  }
  0x13   : > { %v211_v8 = vld [vmem:[%s1271_s28 + $0x100] sm:$0xff]   ;;  %204 = vst [vmem:[%s1279_s29 + $0x30] sm:$0xff] %v203_v6   ;;  %208 = vst [vmem:[%s1279_s29 + $0x38] sm:$0xff] %v207_v7   ;;  %v215_v9 = vld [vmem:[%s1271_s28 + $0x108] sm:$0xff]  }
  0x14   : > { %212 = vst [vmem:[%s1279_s29 + $0x40] sm:$0xff] %v211_v8   ;;  %v219_v10 = vld [vmem:[%s1271_s28 + $0x140] sm:$0xff]   ;;  %v223_v11 = vld [vmem:[%s1271_s28 + $0x148] sm:$0xff]   ;;  %216 = vst [vmem:[%s1279_s29 + $0x48] sm:$0xff] %v215_v9  }
  0x15   : > { %220 = vst [vmem:[%s1279_s29 + $0x50] sm:$0xff] %v219_v10   ;;  %224 = vst [vmem:[%s1279_s29 + $0x58] sm:$0xff] %v223_v11   ;;  %v227_v12 = vld [vmem:[%s1271_s28 + $0x180] sm:$0xff]   ;;  %v231_v13 = vld [vmem:[%s1271_s28 + $0x188] sm:$0xff]  }
  0x16   : > { %v235_v14 = vld [vmem:[%s1271_s28 + $0x1c0] sm:$0xff]   ;;  %228 = vst [vmem:[%s1279_s29 + $0x60] sm:$0xff] %v227_v12   ;;  %232 = vst [vmem:[%s1279_s29 + $0x68] sm:$0xff] %v231_v13   ;;  %v239_v15 = vld [vmem:[%s1271_s28 + $0x1c8] sm:$0xff]  }
  0x17   : > { %236 = vst [vmem:[%s1279_s29 + $0x70] sm:$0xff] %v235_v14   ;;  %v243_v16 = vld [vmem:[%s1271_s28 + $0x200] sm:$0xff]   ;;  %v247_v17 = vld [vmem:[%s1271_s28 + $0x208] sm:$0xff]   ;;  %240 = vst [vmem:[%s1279_s29 + $0x78] sm:$0xff] %v239_v15  }
  0x18   : > { %244 = vst [vmem:[%s1279_s29 + $0x80] sm:$0xff] %v243_v16   ;;  %248 = vst [vmem:[%s1279_s29 + $0x88] sm:$0xff] %v247_v17   ;;  %v251_v18 = vld [vmem:[%s1271_s28 + $0x240] sm:$0xff]   ;;  %v255_v19 = vld [vmem:[%s1271_s28 + $0x248] sm:$0xff]  }
  0x19   : > { %252 = vst [vmem:[%s1279_s29 + $0x90] sm:$0xff] %v251_v18   ;;  %256 = vst [vmem:[%s1279_s29 + $0x98] sm:$0xff] %v255_v19  }
  0x1a PF: > { %p948_p5 = scmp.ge.s32.totalorder %s1209_s17, 1  ;;  %p361_p6 = scmp.lt.s32.totalorder %s1209_s17, 5 }
  0x1c   : > { %p362_p7 = pnand %p948_p5, %p361_p6 }
  0x1d   : > { %s368_s26 = sand.u32 (!%p362_p7), 1, %s1201_s15   ;;  %s949_s15 = sshll.u32 (!%p362_p7), %s942_s18, 2 }
  0x1e   : > { %365 = sbr.rel (%p362_p7) target bundleno = 459 (0x1cb), region = 73  ;;  %p395_p8 = scmp.lt.s32.totalorder (!%p362_p7), %s949_s15, 15 }
  0x1f   : > { %s1129_s27 = smul.u32 (!%p362_p7), 160, %s368_s26 }
  0x21   : > { %s1408_s28 = scalar_lea.vmem (!%p362_p7), [#allocation2], %s1129_s27 }
  0x23   : > { %v401_v20 = vld [vmem:[%s1560_s0] sm:$0x1]  ;;  %v402_v21 = vld [vmem:[%s1560_s0 + $0x1] sm:$0x1]  ;;  %v411_v22 = vlaneseq  ;;  %v1211_v23 = vmov 0   ;;  %v1157_v45 = vld [vmem:[%s1562_s2 + $0x38] sm:$0xff]  }
  0x24   : > { %1156 = vset.pattern.permute.xlu1 %v1211_v23  ;;  %1155 = vset.pattern.permute.xlu0 %v1211_v23  ;;  %v403_v24 = vld [vmem:[%s1560_s0 + $0x2] sm:$0x1]  ;;  %v404_v25 = vld [vmem:[%s1560_s0 + $0x3] sm:$0x1]  ;;  %v405_v26 = vld [vmem:[%s1560_s0 + $0x4] sm:$0x1] }
  0x25   : > { %v406_v27 = vld [vmem:[%s1560_s0 + $0x5] sm:$0x1]  ;;  %v407_v28 = vld [vmem:[%s1560_s0 + $0x6] sm:$0x1]  ;;  %v408_v29 = vld [vmem:[%s1560_s0 + $0x7] sm:$0x1]  ;;  %1108 = vmatprep.subr.bf16.mxu0 %v1157_v45 }
  0x26   : > { %v409_v30 = vld [vmem:[%s1560_s0 + $0x8] sm:$0x1]  ;;  %v410_v31 = vld [vmem:[%s1560_s0 + $0x9] sm:$0x1]  ;;  %vm1348_vm0 = vcmp.lt.s32.totalorder %v411_v22, 128  ;;  %v1158_v48 = vld [vmem:[%s1562_s2 + $0x30] sm:$0xff]   ;;  %1109 = vmatpush3.bf16.msra.mxu0 %v1157_v45 }
  0x27   : > { %v415_v33 = vsel %vm1348_vm0, %v401_v20, -inf  ;;  %v416_v34 = vsel %vm1348_vm0, %v402_v21, -inf  ;;  %v417_v35 = vsel %vm1348_vm0, %v403_v24, -inf  ;;  %v418_v36 = vsel %vm1348_vm0, %v404_v25, -inf  ;;  %1110 = vmatprep.subr.bf16.mxu0 %v1158_v48  ;;  %s1579_s15 = smov (!%p395_p8, %s949_s15), 15 }
  0x28   : > { %v419_v37 = vsel %vm1348_vm0, %v405_v26, -inf  ;;  %v421_v38 = vsel %vm1348_vm0, %v406_v27, -inf  ;;  %v423_v39 = vsel %vm1348_vm0, %v407_v28, -inf  ;;  %v425_v40 = vsel %vm1348_vm0, %v408_v29, -inf  ;;  %s950_s29 = sshll.u32 %s1579_s15, 3 }
  0x29   : > { %v420_v41 = vmax.f32 %v415_v33, %v419_v37  ;;  %v422_v42 = vmax.f32 %v416_v34, %v421_v38  ;;  %v424_v43 = vmax.f32 %v417_v35, %v423_v39  ;;  %v426_v44 = vmax.f32 %v418_v36, %v425_v40  ;;  %s398_s8 = scalar_lea.vmem %s1564_s4, %s950_s29 }
  0x2a   : > { %v427_v46 = vsel %vm1348_vm0, %v409_v30, -inf  ;;  %v429_v47 = vsel %vm1348_vm0, %v410_v31, -inf  ;;  %1111 = vmatpush3.bf16.msra.mxu0 %v1158_v48  ;;  %vm464_vm1 = vcmask 1040384   ;;  %v505_v40 = vshrl.u32 %v411_v22, 7  ;;  %v1160_v22 = vld [vmem:[%s1562_s2 + $0x20] sm:$0xff]  }
  0x2b   : > { %v428_v49 = vmax.f32 %v420_v41, %v427_v46  ;;  %v430_v50 = vmax.f32 %v422_v42, %v429_v47  ;;  %v432_v51 = vmax.f32 %v424_v43, %v426_v44  ;;  %v1159_v47 = vld [vmem:[%s1562_s2 + $0x28] sm:$0xff]  }
  0x2c   : > { %v506_v41 = vsub.s32 0, %v505_v40  ;;  %1112 = vmatprep.subr.bf16.mxu0 %v1159_v47  ;;  %v1468_v40 = vld [vmem:[%s1408_s28 + $0x68] sm:$0xff]  }
  0x2d   : > { %v431_v52 = vmax.f32 %v428_v49, %v430_v50 }
  0x2e   : > { %1113 = vmatpush3.bf16.msra.mxu0 %v1159_v47  ;;  %v1475_v47 = vld [vmem:[%s1408_s28 + $0x90] sm:$0xff]  }
  0x2f   : > { %v433_v53 = vmax.f32 %v431_v52, %v432_v51  ;;  %1114 = vmatprep.subr.bf16.mxu0 %v1160_v22 }
  0x31   : > { %v434_v54 = vsub.f32 %v401_v20, %v433_v53  ;;  %v435_v55 = vsub.f32 %v402_v21, %v433_v53  ;;  %v436_v56 = vsub.f32 %v403_v24, %v433_v53  ;;  %v437_v57 = vsub.f32 %v404_v25, %v433_v53 }
  0x32   : > { %v438_v58 = vsub.f32 %v405_v26, %v433_v53  ;;  %v439_v59 = vsub.f32 %v406_v27, %v433_v53  ;;  %v440_v62 = vsub.f32 %v407_v28, %v433_v53  ;;  %v441_v2 = vsub.f32 %v408_v29, %v433_v53  ;;  %1115 = vmatpush3.bf16.msra.mxu0 %v1160_v22  ;;  %v1488_v22 = vld [vmem:[%s1408_s28 + $0x88] sm:$0xff]  }
  0x33   : > { %v444_v60 = vmul.f32 1.442695, %v434_v54  ;;  %v446_v61 = vmul.f32 1.442695, %v435_v55  ;;  %v448_v63 = vmul.f32 1.442695, %v436_v56  ;;  %v442_v4 = vsub.f32 %v409_v30, %v433_v53 }
  0x34   : > { %v450_v0 = vmul.f32 1.442695, %v437_v57  ;;  %v452_v1 = vmul.f32 1.442695, %v438_v58  ;;  %v454_v3 = vmul.f32 1.442695, %v439_v59  ;;  %v443_v6 = vsub.f32 %v410_v31, %v433_v53 }
  0x35   : > { %1165 = vpow2.f32 %v444_v60  ;;  %v456_v5 = vmul.f32 1.442695, %v440_v62  ;;  %v458_v7 = vmul.f32 1.442695, %v441_v2  ;;  %v460_v8 = vmul.f32 1.442695, %v442_v4 }
  0x36   : > { %1167 = vpow2.f32 %v446_v61  ;;  %v462_v9 = vmul.f32 1.442695, %v443_v6  ;;  %v1161_v59 = vld [vmem:[%s1562_s2 + $0x18] sm:$0xff]   ;;  %v1163_v2 = vld [vmem:[%s1562_s2 + $0x8] sm:$0xff]   ;;  %v1411_v4 = vld [vmem:[%s1408_s28] sm:$0xff]  }
  0x37   : > { %1169 = vpow2.f32 %v448_v63  ;;  %1116 = vmatprep.subr.bf16.mxu0 %v1161_v59  ;;  %v1162_v63 = vld [vmem:[%s1562_s2 + $0x10] sm:$0xff]   ;;  %v1417_v6 = vld [vmem:[%s1408_s28 + $0x20] sm:$0xff]  }
  0x38   : > { %1171 = vpow2.f32 %v450_v0  ;;  %1117 = vmatpush3.bf16.msra.mxu0 %v1161_v59 }
  0x39   : > { %1173 = vpow2.f32 %v452_v1  ;;  %1118 = vmatprep.subr.bf16.mxu0 %v1162_v63 }
  0x3a   : > { %1175 = vpow2.f32 %v454_v3  ;;  %v1164_v3 = vld [vmem:[%s1562_s2] sm:$0xff]  }
  0x3b   : > { %1177 = vpow2.f32 %v456_v5  ;;  %v1414_v5 = vld [vmem:[%s1408_s28 + $0x8] sm:$0xff]  }
  0x3c   : > { %1179 = vpow2.f32 %v458_v7  ;;  %1119 = vmatpush3.bf16.msra.mxu0 %v1162_v63  ;;  %v1420_v7 = vld [vmem:[%s1408_s28 + $0x28] sm:$0xff]  }
  0x3d   : > { %1181 = vpow2.f32 %v460_v8  ;;  %1120 = vmatprep.subr.bf16.mxu0 %v1163_v2  ;;  %v1423_v8 = vld [vmem:[%s1408_s28 + $0x30] sm:$0xff]  }
  0x3e   : > { %1183 = vpow2.f32 %v462_v9  ;;  %v1426_v9 = vld [vmem:[%s1408_s28 + $0x38] sm:$0xff]  }
  0x40   : > { %1121 = vmatpush3.bf16.msra.mxu0 %v1163_v2 }
  0x41   : > { %1122 = vmatprep.subr.bf16.mxu0 %v1164_v3 }
  0x42   : > { %v1166_v10 = vpop.eup %1165 }
  0x43   : > { %v1168_v11 = vpop.eup %1167  ;;  %v465_v12 = vsel %vm464_vm1, %v1166_v10, 0.0 }
  0x44   : > { %v1170_v13 = vpop.eup %1169  ;;  %v466_v14 = vsel %vm464_vm1, %v1168_v11, 0.0  ;;  %1123 = vmatpush3.bf16.msra.mxu0 %v1164_v3  ;;  %v1070_v3 = vunpack.c.h.bf16 %v1488_v22 }
  0x45   : > { %v1172_v15 = vpop.eup %1171  ;;  %v467_v16 = vadd.f32 %v466_v14, %v465_v12  ;;  %v468_v17 = vsel %vm464_vm1, %v1170_v13, 0.0  ;;  %v1005_v12 = vunpack.c.l.bf16 %v1414_v5  ;;  %v1080_v14 = vld [vmem:[%s1408_s28 + $0x10] sm:$0xff]  }
  0x46   : > { %v1174_v18 = vpop.eup %1173  ;;  %v470_v19 = vsel %vm464_vm1, %v1172_v15, 0.0 }
  0x47   : > { %v1176_v20 = vpop.eup %1175  ;;  %v469_v21 = vadd.f32 %v468_v17, %v467_v16  ;;  %v472_v23 = vsel %vm464_vm1, %v1174_v18, 0.0  ;;  %v1017_v16 = vunpack.c.l.bf16 %v1417_v6  ;;  %v1018_v17 = vunpack.c.h.bf16 %v1417_v6 }
  0x48   : > { %v1178_v24 = vpop.eup %1177  ;;  %v474_v26 = vsel %vm464_vm1, %v1176_v20, 0.0 }
  0x49   : > { %v471_v25 = vadd.f32 %v470_v19, %v469_v21  ;;  %v1180_v27 = vpop.eup %1179  ;;  %v476_v29 = vsel %vm464_vm1, %v1178_v24, 0.0  ;;  %v1022_v19 = vunpack.c.h.bf16 %v1420_v7  ;;  %v1442_v21 = vld [vmem:[%s1408_s28 + $0x58] sm:$0xff]  }
  0x4a   : > { %v1182_v30 = vpop.eup %1181  ;;  %v478_v32 = vsel %vm464_vm1, %v1180_v27, 0.0 }
  0x4b   : > { %v473_v28 = vadd.f32 %v472_v23, %v471_v25  ;;  %v1184_v33 = vpop.eup %1183  ;;  %v480_v35 = vsel %vm464_vm1, %v1182_v30, 0.0  ;;  %v1025_v23 = vunpack.c.l.bf16 %v1423_v8  ;;  %v1029_v25 = vunpack.c.l.bf16 %v1426_v9 }
  0x4c   : > { %v482_v37 = vsel %vm464_vm1, %v1184_v33, 0.0 }
  0x4d   : > { %v475_v31 = vadd.f32 %v474_v26, %v473_v28  ;;  %v1030_v26 = vunpack.c.h.bf16 %v1426_v9  ;;  %v1452_v28 = vld [vmem:[%s1408_s28 + $0x48] sm:$0xff]  }
  0x4f   : > { %v477_v34 = vadd.f32 %v476_v29, %v475_v31  ;;  %v1009_v29 = vunpack.c.l.bf16 %v1080_v14 }
  0x51   : > { %v479_v36 = vadd.f32 %v478_v32, %v477_v34  ;;  %v1458_v34 = vld [vmem:[%s1408_s28 + $0x78] sm:$0xff]  }
  0x53   : > { %v481_v38 = vadd.f32 %v480_v35, %v479_v36 }
  0x55   : > { %v483_v39 = vadd.f32 %v482_v37, %v481_v38  ;;  %v1045_v37 = vunpack.c.l.bf16 %v1442_v21  ;;  %v1046_v38 = vunpack.c.h.bf16 %v1442_v21 }
  0x57   : > { %1185 = vrcp.f32 %v483_v39  ;;  %v1465_v39 = vld [vmem:[%s1408_s28 + $0x60] sm:$0xff]  }
  0x64   : > { %v1186_v42 = vpop.eup %1185 }
  0x65   : > { %v487_v43 = vmul.f32 %v1186_v42, %v1170_v13  ;;  %v485_v44 = vmul.f32 %v1186_v42, %v1166_v10  ;;  %v488_v45 = vmul.f32 %v1186_v42, %v1172_v15  ;;  %v486_v46 = vmul.f32 %v1186_v42, %v1168_v11  ;;  %v1081_v15 = vld [vmem:[%s1408_s28 + $0x18] sm:$0xff]  }
  0x66   : > { %v490_v50 = vmul.f32 %v1186_v42, %v1176_v20  ;;  %v489_v53 = vmul.f32 %v1186_v42, %v1174_v18  ;;  %v492_v54 = vmul.f32 %v1186_v42, %v1180_v27  ;;  %v491_v57 = vmul.f32 %v1186_v42, %v1178_v24  ;;  %v1439_v20 = vld [vmem:[%s1408_s28 + $0x50] sm:$0xff]   ;;  %v1449_v27 = vld [vmem:[%s1408_s28 + $0x40] sm:$0xff]  }
  0x67   : > { %v559_v48 = vrot.slane %v487_v43, %v506_v41  ;;  %v507_v49 = vrot.slane %v485_v44, %v506_v41  ;;  %v585_v51 = vrot.slane %v488_v45, %v506_v41  ;;  %v533_v52 = vrot.slane %v486_v46, %v506_v41 }
  0x68   : > { %v637_v55 = vrot.slane %v490_v50, %v506_v41  ;;  %v611_v56 = vrot.slane %v489_v53, %v506_v41  ;;  %v689_v58 = vrot.slane %v492_v54, %v506_v41  ;;  %v663_v60 = vrot.slane %v491_v57, %v506_v41  ;;  %v1485_v53 = vld [vmem:[%s1408_s28 + $0x80] sm:$0xff]  }
  0x69   : > { %561 = vperm.xlu1 %1156, %v559_v48   ;;  %509 = vperm.xlu0 %1155, %v507_v49   ;;  %v494_v61 = vmul.f32 %v1186_v42, %v1184_v33  ;;  %v493_v62 = vmul.f32 %v1186_v42, %v1182_v30  ;;  %v1001_v10 = vunpack.c.l.bf16 %v1411_v4  ;;  %v1002_v11 = vunpack.c.h.bf16 %v1411_v4  ;;  %v1455_v33 = vld [vmem:[%s1408_s28 + $0x70] sm:$0xff]   ;;  %v1478_v48 = vld [vmem:[%s1408_s28 + $0x98] sm:$0xff]  }
  0x6a   : > { %v1006_v13 = vunpack.c.h.bf16 %v1414_v5  ;;  %v1021_v18 = vunpack.c.l.bf16 %v1420_v7  ;;  %v1026_v24 = vunpack.c.h.bf16 %v1423_v8  ;;  %v1010_v30 = vunpack.c.h.bf16 %v1080_v14 }
  0x6b   : > { %v741_v0 = vrot.slane %v494_v61, %v506_v41  ;;  %v715_v1 = vrot.slane %v493_v62, %v506_v41  ;;  %v1013_v31 = vunpack.c.l.bf16 %v1081_v15  ;;  %v1014_v32 = vunpack.c.h.bf16 %v1081_v15 }
  0x6c   : > { %v1041_v35 = vunpack.c.l.bf16 %v1439_v20  ;;  %v1042_v36 = vunpack.c.h.bf16 %v1439_v20  ;;  %v1033_v43 = vunpack.c.l.bf16 %v1449_v27  ;;  %v1034_v44 = vunpack.c.h.bf16 %v1449_v27 }
  0x6d   : > { %587 = vperm.xlu1 %1156, %v585_v51   ;;  %535 = vperm.xlu0 %1155, %v533_v52   ;;  %v1037_v45 = vunpack.c.l.bf16 %v1452_v28  ;;  %v1038_v46 = vunpack.c.h.bf16 %v1452_v28  ;;  %v1057_v49 = vunpack.c.l.bf16 %v1455_v33  ;;  %v1058_v50 = vunpack.c.h.bf16 %v1455_v33 }
  0x6e   : > { %v1061_v51 = vunpack.c.l.bf16 %v1458_v34  ;;  %v1049_v54 = vunpack.c.l.bf16 %v1465_v39  ;;  %v1054_v57 = vunpack.c.h.bf16 %v1468_v40  ;;  %v1570_v33 = vunpack.c.l.bf16 %v1488_v22 }
  0x71   : > { %639 = vperm.xlu1 %1156, %v637_v55   ;;  %613 = vperm.xlu0 %1155, %v611_v56   ;;  %v1050_v55 = vunpack.c.h.bf16 %v1465_v39  ;;  %v1053_v56 = vunpack.c.l.bf16 %v1468_v40 }
  0x75   : > { %691 = vperm.xlu1 %1156, %v689_v58   ;;  %665 = vperm.xlu0 %1155, %v663_v60  }
  0x79   : > { %743 = vperm.xlu1 %1156, %v741_v0   ;;  %717 = vperm.xlu0 %1155, %v715_v1  }
  0xe4   : > { %v562_v41 = vpop.permute.xlu1 %561  ;;  %v510_v42 = vpop.permute.xlu0 %509 }
  0xe5   : > { %v512_v4 = vmul.f32 %v1001_v10, %v510_v42  ;;  %v513_v5 = vmul.f32 %v1002_v11, %v510_v42  ;;  %v514_v6 = vmul.f32 %v1005_v12, %v510_v42  ;;  %v515_v7 = vmul.f32 %v1006_v13, %v510_v42 }
  0xe6   : > { %v564_v39 = vmul.f32 %v1017_v16, %v562_v41  ;;  %v565_v40 = vmul.f32 %v1018_v17, %v562_v41  ;;  %v566_v61 = vmul.f32 %v1021_v18, %v562_v41  ;;  %v567_v60 = vmul.f32 %v1022_v19, %v562_v41 }
  0xe8   : > { %v588_v62 = vpop.permute.xlu1 %587  ;;  %v536_v63 = vpop.permute.xlu0 %535 }
  0xe9   : > { %v538_v14 = vmul.f32 %v1009_v29, %v536_v63  ;;  %v539_v15 = vmul.f32 %v1010_v30, %v536_v63  ;;  %v540_v27 = vmul.f32 %v1013_v31, %v536_v63  ;;  %v541_v28 = vmul.f32 %v1014_v32, %v536_v63 }
  0xea   : > { %v590_v10 = vmul.f32 %v1025_v23, %v588_v62  ;;  %v591_v11 = vmul.f32 %v1026_v24, %v588_v62  ;;  %v592_v12 = vmul.f32 %v1029_v25, %v588_v62  ;;  %v593_v13 = vmul.f32 %v1030_v26, %v588_v62 }
  0xeb   : > { %v542_v59 = vadd.f32 %v538_v14, %v512_v4  ;;  %v543_v58 = vadd.f32 %v539_v15, %v513_v5  ;;  %v544_v0 = vadd.f32 %v540_v27, %v514_v6  ;;  %v545_v1 = vadd.f32 %v541_v28, %v515_v7 }
  0xec   : > { %v640_v52 = vpop.permute.xlu1 %639  ;;  %v614_v2 = vpop.permute.xlu0 %613  ;;  %v1568_v5 = vunpack.c.l.bf16 %v1485_v53  ;;  %v1569_v7 = vunpack.c.h.bf16 %v1485_v53  ;;  %v1571_v28 = vunpack.c.l.bf16 %v1475_v47  ;;  %v1573_v53 = vunpack.c.l.bf16 %v1478_v48 }
  0xed   : > { %v568_v16 = vadd.f32 %v564_v39, %v542_v59  ;;  %v569_v17 = vadd.f32 %v565_v40, %v543_v58  ;;  %v570_v18 = vadd.f32 %v566_v61, %v544_v0  ;;  %v571_v19 = vadd.f32 %v567_v60, %v545_v1 }
  0xee   : > { %v616_v29 = vmul.f32 %v1033_v43, %v614_v2  ;;  %v617_v30 = vmul.f32 %v1034_v44, %v614_v2  ;;  %v618_v31 = vmul.f32 %v1037_v45, %v614_v2  ;;  %v619_v32 = vmul.f32 %v1038_v46, %v614_v2 }
  0xef   : > { %v594_v41 = vadd.f32 %v590_v10, %v568_v16  ;;  %v595_v42 = vadd.f32 %v591_v11, %v569_v17  ;;  %v596_v23 = vadd.f32 %v592_v12, %v570_v18  ;;  %v597_v63 = vadd.f32 %v593_v13, %v571_v19 }
  0xf0   : > { %v692_v8 = vpop.permute.xlu1 %691  ;;  %v666_v24 = vpop.permute.xlu0 %665  ;;  %v642_v25 = vmul.f32 %v1041_v35, %v640_v52  ;;  %v643_v9 = vmul.f32 %v1042_v36, %v640_v52  ;;  %v644_v26 = vmul.f32 %v1045_v37, %v640_v52  ;;  %v645_v43 = vmul.f32 %v1046_v38, %v640_v52 }
  0xf1   : > { %v620_v44 = vadd.f32 %v616_v29, %v594_v41  ;;  %v621_v45 = vadd.f32 %v617_v30, %v595_v42  ;;  %v622_v46 = vadd.f32 %v618_v31, %v596_v23  ;;  %v623_v58 = vadd.f32 %v619_v32, %v597_v63 }
  0xf2   : > { %v668_v59 = vmul.f32 %v1049_v54, %v666_v24  ;;  %v669_v60 = vmul.f32 %v1050_v55, %v666_v24  ;;  %v670_v61 = vmul.f32 %v1053_v56, %v666_v24  ;;  %v671_v62 = vmul.f32 %v1054_v57, %v666_v24 }
  0xf3   : > { %v646_v0 = vadd.f32 %v642_v25, %v620_v44  ;;  %v647_v1 = vadd.f32 %v643_v9, %v621_v45  ;;  %v648_v35 = vadd.f32 %v644_v26, %v622_v46  ;;  %v649_v2 = vadd.f32 %v645_v43, %v623_v58 }
  0xf4   : > { %v718_v20 = vpop.permute.xlu0 %717  ;;  %v694_v36 = vmul.f32 %v1057_v49, %v692_v8  ;;  %v695_v21 = vmul.f32 %v1058_v50, %v692_v8  ;;  %v696_v37 = vmul.f32 %v1061_v51, %v692_v8  ;;  %v1567_v38 = vunpack.c.h.bf16 %v1458_v34  ;;  %v744_v4 = vpop.permute.xlu1 %743 }
  0xf5   : > { %v672_v54 = vadd.f32 %v668_v59, %v646_v0  ;;  %v673_v55 = vadd.f32 %v669_v60, %v647_v1  ;;  %v674_v56 = vadd.f32 %v670_v61, %v648_v35  ;;  %v675_v57 = vadd.f32 %v671_v62, %v649_v2 }
  0xf6   : > { %v697_v52 = vmul.f32 %v1567_v38, %v692_v8  ;;  %v720_v6 = vmul.f32 %v1568_v5, %v718_v20  ;;  %v721_v49 = vmul.f32 %v1569_v7, %v718_v20  ;;  %v722_v50 = vmul.f32 %v1570_v33, %v718_v20 }
  0xf7   : > { %v723_v51 = vmul.f32 %v1070_v3, %v718_v20  ;;  %v700_v14 = vadd.f32 %v696_v37, %v674_v56  ;;  %v698_v15 = vadd.f32 %v694_v36, %v672_v54  ;;  %v699_v27 = vadd.f32 %v695_v21, %v673_v55 }
  0xf8   : > { %v701_v34 = vadd.f32 %v697_v52, %v675_v57  ;;  %v746_v39 = vmul.f32 %v1571_v28, %v744_v4  ;;  %v1572_v40 = vunpack.c.h.bf16 %v1475_v47  ;;  %v748_v11 = vmul.f32 %v1573_v53, %v744_v4  ;;  %v987_v47 = vld [vmem:[%s1563_s3] ss:$0 sm:$0xff] }
  0xf9   : > { %v1574_v12 = vunpack.c.h.bf16 %v1478_v48  ;;  %v726_v16 = vadd.f32 %v722_v50, %v700_v14  ;;  %v724_v3 = vadd.f32 %v720_v6, %v698_v15  ;;  %v725_v17 = vadd.f32 %v721_v49, %v699_v27 }
  0xfa   : > { %v747_v10 = vmul.f32 %v1572_v40, %v744_v4  ;;  %v727_v22 = vadd.f32 %v723_v51, %v701_v34 }
  0xfb   : > { %v749_v13 = vmul.f32 %v1574_v12, %v744_v4  ;;  %v750_v18 = vadd.f32 %v746_v39, %v724_v3  ;;  %v752_v29 = vadd.f32 %v748_v11, %v726_v16 }
  0xfc   : > { %v751_v19 = vadd.f32 %v747_v10, %v725_v17 }
  0xfd   : > { %v753_v30 = vadd.f32 %v749_v13, %v727_v22 }
  0xfe   : > { %v754_v31 = vpack.c.bf16 %v751_v19, %v750_v18 }
  0xff   : > { %v755_v32 = vpack.c.bf16 %v753_v30, %v752_v29 }
 0x100   : > { %1124 = vmatprep.mubr.bf16.mxu0 %v754_v31 }
 0x101   : > { %1125 = vmatmul.mubr.bf16.vlgmr.msra.gmra.mxu0 %v755_v32 }
 0x1c1   : > { %v1126_v48 = vpop.f32.mrf.mxu0 }
 0x1c2   : > { %v870_v41 = vadd.f32 %v1126_v48, %v987_v47 }
 0x1c3   : > { %v861_v42 = vpop.f32.mrf.mxu0 }
 0x1c4   : > { %878 = vst [vmem:[%s398_s8 + $0x10] sm:$0xff] %v870_v41  ;;  %v862_v23 = vadd.f32 %v987_v47, %v861_v42 }
 0x1c5   : > { %v1127_v63 = vpop.f32.mrf.mxu0 }
 0x1c6   : > { %876 = vst [vmem:[%s398_s8] sm:$0xff] %v862_v23  ;;  %v873_v8 = vadd.f32 %v1127_v63, %v987_v47 }
 0x1c7   : > { %v864_v24 = vpop.f32.mrf.mxu0 }
 0x1c8   : > { %879 = vst [vmem:[%s398_s8 + $0x18] sm:$0xff] %v873_v8  ;;  %v865_v25 = vadd.f32 %v987_v47, %v864_v24 }
 0x1ca   : > { %877 = vst [vmem:[%s398_s8 + $0x8] sm:$0xff] %v865_v25 }
 0x1cb PF: > { %p11_p9 = scmp.ge.s32.totalorder %s1254_s19, 6   ;;  %s1575_s15 = smov %s1205_s16 }
 0x1cc   : > { %s1576_s16 = smov %s1263_s22  ;;  %s1577_s17 = smov %s1254_s19 }
 0x1cd   :  { %13 = sbr.rel (!%p11_p9) target bundleno = 2 (0x2), region = 121 }

// kernel: gat_encoder_forward.2
= control target key start
LH: loop header
LB: loop body
LE: loop exit
PB: predicated region body
PF: predicated region fallthrough
CT: control target
= control target key end

     0   :  { %16 = vsyncpa [#allocation4], 0  ;;  %s6393_s0 = inlined_call_operand.vmem [shape: bf16[128,256], index: 0, kind: input, shape index: {}]   ;;  %s6394_s1 = inlined_call_operand.hbm [shape: bf16[256,1280], index: 1, kind: input, shape index: {}]   ;;  %s6395_s2 = inlined_call_operand.vmem [shape: s8[10,128,128], index: 2, kind: input, shape index: {}]   ;;  %s6396_s3 = inlined_call_operand.vmem [shape: bf16[10,4,128], index: 3, kind: input, shape index: {}]   ;;  %s6397_s4 = inlined_call_operand.vmem [shape: bf16[10,128,4], index: 4, kind: input, shape index: {}]   ;;  %s6398_s5 = inlined_call_operand.vmem [shape: f32[10,1,128], index: 5, kind: input, shape index: {}]   ;;  %s6399_s6 = inlined_call_operand.vmem [shape: bf16[128,128], index: 6, kind: input, shape index: {}]   ;;  %s6400_s7 = inlined_call_operand.vmem [shape: f32[1,128], index: 7, kind: input, shape index: {}]   ;;  %s6401_s8 = inlined_call_operand.vmem [shape: f32[1,128], index: 8, kind: input, shape index: {}]   ;;  %s6402_s9 = inlined_call_operand.vmem [shape: bf16[10,128,128], index: 9, kind: output, shape index: {0}]   ;;  %s6403_s10 = inlined_call_operand.vmem [shape: f32[10,1,128], index: 10, kind: output, shape index: {1}]  }
   0x1   :  { %18 = vsyncpa [#allocation4 + $0x1], 0  ;;  %s4739_s13 = smov 0   ;;  %s4741_s14 = smov 0  }
   0x2   :  { %s4743_s15 = smov 0   ;;  %s4745_s16 = smov 0  }
   0x3 LB: > { %s4758_s17 = sadd.s32 4294967295, %s4669_s16   ;;  %s4761_s18 = sadd.s32 1, %s4669_s16   ;;  %s4669_s16 = sphi %s4745_s16, %s6552_s16   ;;  %s4665_s15 = sphi %s4743_s15, %s6551_s15   ;;  %s4661_s14 = sphi %s4741_s14, %s6550_s14   ;;  %s4657_s13 = sphi %s4739_s13, %s6549_s13  }
   0x4   : > { %s49_s19 = ssub.s32 %s4669_s16, %s4761_s18  ;;  %s52_s20 = sadd.s32 1, %s4665_s15 }
   0x5   : > { %p50_p0 = scmp.eq.s32.totalorder %s49_s19, 0  ;;  %p59_p1 = scmp.ne.s32.totalorder %s4665_s15, %s4661_s14 }
   0x6   : > { %p60_p2 = scmp.eq.s32.totalorder %s4669_s16, 0  ;;  %p65_p3 = scmp.ne.s32.totalorder %s4661_s14, %s4657_s13 }
   0x7   : > { %s4771_s21 = scalar_select %p50_p0, %s4665_s15, %s52_s20  }
   0x8   : > { %p61_p4 = por %p60_p2, %p59_p1  ;;  %p66_p5 = scmp.eq.s32.totalorder %s4758_s17, 0 }
   0x9   : > { %p4121_p6 = scmp.lt.s32.totalorder %s4669_s16, 10  ;;  %s320_s23 = sand.u32 1, %s4665_s15  }
   0xa   : > { %p4775_p7 = por %p66_p5, %p65_p3  ;;  %s3556_s24 = sshll.u32 %s320_s23, 7 }
   0xb   : > { %s3557_s25 = sshll.u32 %s4669_s16, 6  ;;  %s324_s29 = scalar_lea.vmem [#allocation3], %s3556_s24 }
   0xc   : > { %s6450_s22 = scalar_select %p4775_p7, 1, 0 }
   0xd   : > { %s4784_s28 = scalar_lea.hbm %s6394_s1, %s3557_s25  ;;  %s330_s30 = sshll.u32 %s324_s29, 4  ;;  %s4786_s30 = int_to_ptr.vmem [resolvable:$true] %s330_s30 }
   0xe   : > { %p4788_p8 = pnand %p4121_p6, %p61_p4  ;;  %s4792_s12 = scalar_lea.sflag [#allocation4], %s320_s23 }
   0xf   : > { %s4607_s13 = scalar_lea.hbm %s4784_s28, 2048  ;;  %s4612_s24 = scalar_lea.hbm %s6394_s1, 20480 }
  0x10   : > { %p4608_p9 = scmp.ne.s32.totalorder %s4784_s28, %s4607_s13  ;;  %p4609_p10 = pneg %p4788_p8 }
  0x11   : > { %p4613_p13 = scmp.lt.s32.totalorder %s4784_s28, %s6394_s1  ;;  %p4614_p0 = scmp.lt.s32.totalorder %s4612_s24, %s4607_s13 }
  0x12   : > { %p4610_p11 = pnand %p4609_p10, %p4608_p9 }
  0x13   : > { %p4615_p1 = por %p4614_p0, %p4613_p13 }
  0x14   : > { %p4611_p12 = pneg %p4610_p11 }
  0x16   : > { %p4616_p2 = pnand %p4615_p1, %p4611_p12 }
  0x18   : > { %4619 = shalt.err (!%p4616_p2)
}
  0x19   : > { %s4620_s23 = scalar_lea.vmem %s4786_s30, 2048  ;;  %s4671_s27 = smov [#allocation3]  }
  0x1a   : > { %p4621_p3 = scmp.ne.s32.totalorder %s4786_s30, %s4620_s23  ;;  %s4625_s29 = sshll.u32 %s4671_s27, 4  ;;  %s4626_s29 = int_to_ptr.vmem [resolvable:$false] %s4625_s29 }
  0x1b   : > { %s4627_s19 = scalar_lea.vmem %s4626_s29, 4096  ;;  %p4628_p6 = scmp.lt.s32.totalorder %s4786_s30, %s4626_s29 }
  0x1c   : > { %p4623_p4 = pnand %p4621_p3, %p4609_p10  ;;  %p4629_p9 = scmp.lt.s32.totalorder %s4627_s19, %s4620_s23 }
  0x1e   : > { %p4624_p5 = pneg %p4623_p4  ;;  %p4630_p11 = por %p4629_p9, %p4628_p6 }
  0x20   : > { %p4631_p7 = pnand %p4630_p11, %p4624_p5 }
  0x22   : > { %4634 = shalt.err (!%p4631_p7)
}
  0x23   : > { %s4672_s13 = smov 640   ;;  %s4673_s20 = smov 64  }
  0x24   : > { %s4674_s24 = smov 4   ;;  %p3558_p10 = scmp.ge.s32.totalorder %s4669_s16, 1 }
  0x25   : > { %4120 = dma.hbm_to_vmem [thread:$0]  (!%p4788_p8), %s4784_s28, 2048, %s4786_s30, %s4792_s12, %s4672_s13, %s4673_s20, %s4674_s24  }
  0x26   : > { %p367_p12 = scmp.lt.s32.totalorder %s4669_s16, 11 }
  0x28   : > { %p368_p13 = pnand %p3558_p10, %p367_p12 }
  0x2a   : > { %371 = sbr.rel (%p368_p13) target bundleno = 1788 (0x6fc), region = 56 }
  0x2f   : > { %s373_s25 = sand.u32 1, %s4661_s14   ;;  %p6452_p7 = scmp.ne.s32.totalorder %s6450_s22, 0 }
  0x30   : > { %s3559_s26 = sshll.u32 %s373_s25, 7  ;;  %s374_s23 = scalar_lea.sflag [#allocation4], %s373_s25 }
  0x31   : > { %s4816_s27 = scalar_lea.vmem [#allocation3], %s3559_s26 }
  0x32   : > { %4652 = dma.done.wait (%p6452_p7), %s374_s23, 2048  }
  0x33   : > { %4654 = vsyncadd (%p6452_p7), %s374_s23, 4294965248  ;;  %v4231_v0 = vld [vmem:[%s4816_s27 + $0x78] sm:$0xff]   ;;  %v4233_v2 = vld [vmem:[%s4816_s27 + $0x70] sm:$0xff]   ;;  %p434_p8 = scmp.lt.s32.totalorder %s4758_s17, 9  ;;  %v4675_v40 = vmov 0.0   ;;  %vm4676_vm0 = vmmov 0  }
  0x34   : > { %v4232_v1 = vld [vmem:[%s4816_s27 + $0x38] sm:$0xff]   ;;  %3734 = vmatprep.subr.bf16.mxu0 %v4231_v0  ;;  %v4234_v3 = vld [vmem:[%s4816_s27 + $0x30] sm:$0xff]   ;;  %v4235_v4 = vld [vmem:[%s4816_s27 + $0x68] sm:$0xff]   ;;  %3903 = vmatprep.subr.bf16.mxu1 %v4675_v40  ;;  %s4677_s24 = smov 96   ;;  %s4679_s25 = smov 32   ;;  %vm1456_vm1 = vcmask 261120  }
  0x35   : > { %3735 = vmatpush3.bf16.msra.mxu0 %v4232_v1  ;;  %v4236_v5 = vld [vmem:[%s4816_s27 + $0x28] sm:$0xff]   ;;  %v4237_v6 = vld [vmem:[%s4816_s27 + $0x60] sm:$0xff]   ;;  %v4239_v8 = vld [vmem:[%s4816_s27 + $0x58] sm:$0xff]   ;;  %s6554_s17 = smov (!%p434_p8, %s4758_s17), 9  ;;  %3919 = vmatprep.mubr.msk.bf16.mxu1 %vm4676_vm0, %v4675_v40  ;;  %vm1950_vm2 = vcmask 523520   ;;  %vm2436_vm3 = vcmask 785920  }
  0x36   : > { %3736 = vmatprep.subr.bf16.mxu0 %v4233_v2  ;;  %v4238_v7 = vld [vmem:[%s4816_s27 + $0x20] sm:$0xff]   ;;  %v4240_v9 = vld [vmem:[%s4816_s27 + $0x18] sm:$0xff]   ;;  %v4241_v10 = vld [vmem:[%s4816_s27 + $0x50] sm:$0xff]   ;;  %s3669_s28 = sshll.u32 %s6554_s17, 6  ;;  %s3562_s26 = sshll.u32 %s6554_s17, 1  ;;  %vm2922_vm4 = vcmask 1048320  }
  0x37   : > { %v4249_v11 = vld [vmem:[%s6393_s0 + $0x4] ss:$8 sps:$4 sm:$0xff]   ;;  %v4242_v12 = vld [vmem:[%s4816_s27 + $0x10] sm:$0xff]   ;;  %s4850_s12 = scalar_lea.vmem %s6397_s4, %s3669_s28  ;;  %v4247_v18 = vld [vmem:[%s6393_s0] ss:$8 sps:$4 sm:$0xff]   ;;  %s442_s16 = scalar_lea.vmem %s6396_s3, %s3562_s26 }
  0x38   : > { %716 = vmatprep.mubr.bf16.mxu0 %v4249_v11  ;;  %v4243_v13 = vld [vmem:[%s4816_s27 + $0x48] sm:$0xff]   ;;  %v4245_v15 = vld [vmem:[%s4816_s27 + $0x40] sm:$0xff]   ;;  %v4271_v17 = vld [vmem:[%s4850_s12 + $0x38] sm:$0xff]   ;;  %s3668_s22 = sshll.u32 %s6554_s17, 5  ;;  %s450_s26 = scalar_lea.vmem %s6398_s5, %s6554_s17 }
  0x39   : > { %3737 = vmatpush3.bf16.msra.mxu0 %v4234_v3  ;;  %v4244_v14 = vld [vmem:[%s4816_s27 + $0x8] sm:$0xff]   ;;  %v4246_v16 = vld [vmem:[%s4816_s27] sm:$0xff]   ;;  %v4250_v19 = vld [vmem:[%s6393_s0 + $0x14] ss:$8 sps:$4 sm:$0xff]   ;;  %s5085_s29 = scalar_lea.vmem %s6395_s2, %s3668_s22  ;;  %s458_s13 = scalar_lea.vmem %s6403_s10, %s6554_s17 }
  0x3a   : > { %3738 = vmatprep.subr.bf16.mxu0 %v4235_v4  ;;  %v4272_v20 = vld [vmem:[%s4850_s12 + $0x30] sm:$0xff]   ;;  %v4273_v21 = vld [vmem:[%s4850_s12 + $0x28] sm:$0xff]   ;;  %v4274_v24 = vld [vmem:[%s4850_s12 + $0x20] sm:$0xff]  }
  0x3b   : > { %v4252_v22 = vld [vmem:[%s6393_s0 + $0x10] ss:$8 sps:$4 sm:$0xff]   ;;  %v4253_v23 = vld [vmem:[%s6393_s0 + $0x24] ss:$8 sps:$4 sm:$0xff]   ;;  %v4255_v26 = vld [vmem:[%s6393_s0 + $0x20] ss:$8 sps:$4 sm:$0xff]  }
  0x3c   : > { %v4275_v25 = vld [vmem:[%s4850_s12 + $0x18] sm:$0xff]   ;;  %v4276_v28 = vld [vmem:[%s4850_s12 + $0x10] sm:$0xff]   ;;  %v4259_v30 = vld [vmem:[%s6393_s0 + $0x44] ss:$8 sps:$4 sm:$0xff]  }
  0x3d   : > { %3739 = vmatpush3.bf16.msra.mxu0 %v4236_v5  ;;  %v4256_v27 = vld [vmem:[%s6393_s0 + $0x34] ss:$8 sps:$4 sm:$0xff]   ;;  %v4258_v29 = vld [vmem:[%s6393_s0 + $0x30] ss:$8 sps:$4 sm:$0xff]   ;;  %v4261_v31 = vld [vmem:[%s6393_s0 + $0x40] ss:$8 sps:$4 sm:$0xff]  }
  0x3e   : > { %3740 = vmatprep.subr.bf16.mxu0 %v4237_v6  ;;  %v4262_v32 = vld [vmem:[%s6393_s0 + $0x54] ss:$8 sps:$4 sm:$0xff]   ;;  %v4264_v33 = vld [vmem:[%s6393_s0 + $0x50] ss:$8 sps:$4 sm:$0xff]   ;;  %v4265_v34 = vld [vmem:[%s6393_s0 + $0x64] ss:$8 sps:$4 sm:$0xff]  }
  0x3f   : > { %v4267_v35 = vld [vmem:[%s6393_s0 + $0x60] ss:$8 sps:$4 sm:$0xff]   ;;  %v4268_v36 = vld [vmem:[%s6393_s0 + $0x74] ss:$8 sps:$4 sm:$0xff]   ;;  %v4270_v37 = vld [vmem:[%s6393_s0 + $0x70] ss:$8 sps:$4 sm:$0xff]  }
  0x40   : > { %v4277_v38 = vld [vmem:[%s4850_s12 + $0x8] sm:$0xff]   ;;  %v4278_v39 = vld [vmem:[%s4850_s12] sm:$0xff]   ;;  %s4678_s12 = smov 64  }
  0x41   : > { %3741 = vmatpush3.bf16.msra.mxu0 %v4238_v7 }
  0x42   : > { %3742 = vmatprep.subr.bf16.mxu0 %v4239_v8 }
  0x45   : > { %3743 = vmatpush3.bf16.msra.mxu0 %v4240_v9 }
  0x46   : > { %3744 = vmatprep.subr.bf16.mxu0 %v4241_v10 }
  0x49   : > { %3745 = vmatpush3.bf16.msra.mxu0 %v4242_v12 }
  0x4a   : > { %3746 = vmatprep.subr.bf16.mxu0 %v4243_v13 }
  0x4d   : > { %3747 = vmatpush3.bf16.msra.mxu0 %v4244_v14 }
  0x4e   : > { %3748 = vmatprep.subr.bf16.mxu0 %v4245_v15 }
  0x51   : > { %3749 = vmatpush3.bf16.msra.mxu0 %v4246_v16 }
  0x52   : > { %3923 = vmatprep.subr.bf16.mxu0 %v4271_v17 }
  0x54   : > { %717 = vmatmul.mubr.bf16.vlgmr.msra.gmra.mxu0 %v4247_v18 }
  0x55   : > { %724 = vmatprep.mubr.bf16.mxu0 %v4250_v19  ;;  %3924 = vmatpush3.bf16.msra.mxu0 %v4271_v17 }
  0x56   : > { %3925 = vmatprep.subr.bf16.mxu0 %v4272_v20 }
  0x59   : > { %3926 = vmatpush3.bf16.msra.mxu0 %v4272_v20 }
  0x5a   : > { %3927 = vmatprep.subr.bf16.mxu0 %v4273_v21 }
  0x5c   : > { %725 = vmatmul.mubr.bf16.gmra.mxu0 %v4252_v22 }
  0x5d   : > { %732 = vmatprep.mubr.bf16.mxu0 %v4253_v23  ;;  %3928 = vmatpush3.bf16.msra.mxu0 %v4273_v21 }
  0x5e   : > { %3929 = vmatprep.subr.bf16.mxu0 %v4274_v24 }
  0x61   : > { %3930 = vmatpush3.bf16.msra.mxu0 %v4274_v24 }
  0x62   : > { %3931 = vmatprep.subr.bf16.mxu0 %v4275_v25 }
  0x64   : > { %733 = vmatmul.mubr.bf16.gmra.mxu0 %v4255_v26 }
  0x65   : > { %740 = vmatprep.mubr.bf16.mxu0 %v4256_v27  ;;  %3932 = vmatpush3.bf16.msra.mxu0 %v4275_v25 }
  0x66   : > { %3933 = vmatprep.subr.bf16.mxu0 %v4276_v28 }
  0x69   : > { %3934 = vmatpush3.bf16.msra.mxu0 %v4276_v28 }
  0x6a   : > { %3935 = vmatprep.subr.bf16.mxu0 %v4277_v38 }
  0x6c   : > { %741 = vmatmul.mubr.bf16.gmra.mxu0 %v4258_v29 }
  0x6d   : > { %748 = vmatprep.mubr.bf16.mxu0 %v4259_v30  ;;  %3936 = vmatpush3.bf16.msra.mxu0 %v4277_v38 }
  0x6e   : > { %3937 = vmatprep.subr.bf16.mxu0 %v4278_v39 }
  0x71   : > { %3938 = vmatpush3.bf16.msra.mxu0 %v4278_v39 }
  0x74   : > { %749 = vmatmul.mubr.bf16.gmra.mxu0 %v4261_v31 }
  0x75   : > { %756 = vmatprep.mubr.bf16.mxu0 %v4262_v32 }
  0x7c   : > { %757 = vmatmul.mubr.bf16.gmra.mxu0 %v4264_v33  ;;  %v4680_v33 = vmov 0  }
  0x7d   : > { %764 = vmatprep.mubr.bf16.mxu0 %v4265_v34  ;;  %4166 = vset.pattern.permute.xlu1 %v4680_v33  ;;  %v857_v34 = vld [vmem:[%s442_s16] sm:$0x3]  ;;  %s6271_s16 = scalar_lea.vmem %s6402_s9, %s3669_s28 }
  0x7e   : > { %4170 = vset.pattern.permute.xlu0 %v4680_v33 }
  0x84   : > { %765 = vmatmul.mubr.bf16.gmra.mxu0 %v4267_v35 }
  0x85   : > { %772 = vmatprep.mubr.bf16.mxu0 %v4268_v36 }
  0x8c   : > { %773 = vmatmul.mubr.bf16.gmra.mxu0 %v4270_v37 }
 0x114   : > { %v3750_v41 = vpop.f32.mrf.mxu0 }
 0x116   : > { %v3751_v42 = vpop.f32.mrf.mxu0 }
 0x117   : > { %v3752_v45 = vadd.f32 %v3751_v42, %v3750_v41 }
 0x118   : > { %v3753_v43 = vpop.f32.mrf.mxu0 }
 0x11a   : > { %v3754_v44 = vpop.f32.mrf.mxu0 }
 0x11b   : > { %v3755_v46 = vadd.f32 %v3754_v44, %v3753_v43 }
 0x11c   : > { %v3756_v47 = vpop.f32.mrf.mxu0 }
 0x11d   : > { %v4908_v48 = vpack.c.bf16 %v3755_v46, %v3752_v45 }
 0x11e   : > { %v3757_v49 = vpop.f32.mrf.mxu0 }
 0x11f   : > { %1733 = vrot.lane.b32.xlu1 %v4908_v48, %s4677_s24  ;;  %3939 = vmatprep.mubr.bf16.mxu0 %v4908_v48  ;;  %v3758_v52 = vadd.f32 %v3757_v49, %v3756_v47 }
 0x120   : > { %v3759_v50 = vpop.f32.mrf.mxu0 }
 0x122   : > { %v3760_v51 = vpop.f32.mrf.mxu0 }
 0x123   : > { %v3761_v53 = vadd.f32 %v3760_v51, %v3759_v50 }
 0x124   : > { %v3762_v54 = vpop.f32.mrf.mxu0 }
 0x125   : > { %v4913_v55 = vpack.c.bf16 %v3761_v53, %v3758_v52 }
 0x126   : > { %v3763_v56 = vpop.f32.mrf.mxu0 }
 0x127   : > { %1735 = vrot.lane.b32.xlu0 %v4913_v55, %s4677_s24  ;;  %3940 = vmatmul.mubr.bf16.vlgmr.msra.gmra.mxu0 %v4913_v55  ;;  %v3764_v58 = vadd.f32 %v3763_v56, %v3762_v54 }
 0x128   : > { %v3765_v57 = vpop.f32.mrf.mxu0 }
 0x12a   : > { %v3766_v59 = vpop.f32.mrf.mxu0 }
 0x12b   : > { %v3767_v60 = vadd.f32 %v3766_v59, %v3765_v57  ;;  %v4681_v59 = vmov 1  }
 0x12c   : > { %v3768_v61 = vpop.f32.mrf.mxu0 }
 0x12d   : > { %v4918_v62 = vpack.c.bf16 %v3767_v60, %v3764_v58  ;;  %v4682_v60 = vmov 2  }
 0x12e   : > { %v3769_v63 = vpop.f32.mrf.mxu0 }
 0x12f   : > { %2223 = vrot.lane.b32.xlu0 %v4918_v62, %s4678_s12  ;;  %1737 = vrot.lane.b32.xlu1 %v4918_v62, %s4677_s24  ;;  %v3770_v1 = vadd.f32 %v3769_v63, %v3768_v61  ;;  %v4683_v61 = vmov 3  }
 0x130   : > { %v3771_v0 = vpop.f32.mrf.mxu0  ;;  %3943 = vmatprep.mubr.bf16.mxu0 %v4918_v62 }
 0x132   : > { %v3772_v2 = vpop.f32.mrf.mxu0 }
 0x133   : > { %v3773_v3 = vadd.f32 %v3772_v2, %v3771_v0  ;;  %2709 = vrot.lane.b32.xlu0 %v4918_v62, %s4679_s25 }
 0x134   : > { %v3774_v4 = vpop.f32.mrf.mxu0 }
 0x135   : > { %v4927_v5 = vpack.c.bf16 %v3773_v3, %v3770_v1 }
 0x136   : > { %v3775_v6 = vpop.f32.mrf.mxu0 }
 0x137   : > { %1739 = vrot.lane.b32.xlu0 %v4927_v5, %s4677_s24  ;;  %3944 = vmatmul.mubr.bf16.gmra.mxu0 %v4927_v5  ;;  %v3776_v8 = vadd.f32 %v3775_v6, %v3774_v4 }
 0x138   : > { %v3777_v7 = vpop.f32.mrf.mxu0  ;;  %2711 = vrot.lane.b32.xlu1 %v4927_v5, %s4679_s25 }
 0x13a   : > { %v3778_v9 = vpop.f32.mrf.mxu0 }
 0x13b   : > { %v3779_v10 = vadd.f32 %v3778_v9, %v3777_v7  ;;  %2225 = vrot.lane.b32.xlu0 %v4927_v5, %s4678_s12 }
 0x13c   : > { %v3780_v11 = vpop.f32.mrf.mxu0 }
 0x13d   : > { %v4936_v12 = vpack.c.bf16 %v3779_v10, %v3776_v8  ;;  %v1139_v10 = vlaneseq }
 0x13e   : > { %v3781_v13 = vpop.f32.mrf.mxu0 }
 0x13f   : > { %2227 = vrot.lane.b32.xlu0 %v4936_v12, %s4678_s12  ;;  %1741 = vrot.lane.b32.xlu1 %v4936_v12, %s4677_s24  ;;  %v3782_v15 = vadd.f32 %v3781_v13, %v3780_v11 }
 0x140   : > { %v3783_v14 = vpop.f32.mrf.mxu0  ;;  %3947 = vmatprep.mubr.bf16.mxu0 %v4936_v12 }
 0x142   : > { %v3784_v16 = vpop.f32.mrf.mxu0 }
 0x143   : > { %v3785_v17 = vadd.f32 %v3784_v16, %v3783_v14  ;;  %2713 = vrot.lane.b32.xlu0 %v4936_v12, %s4679_s25 }
 0x144   : > { %v3786_v18 = vpop.f32.mrf.mxu0 }
 0x145   : > { %v786_v19 = vpack.c.bf16 %v3785_v17, %v3782_v15 }
 0x146   : > { %v3787_v20 = vpop.f32.mrf.mxu0 }
 0x147   : > { %1743 = vrot.lane.b32.xlu0 %v786_v19, %s4677_s24  ;;  %2715 = vrot.lane.b32.xlu1 %v786_v19, %s4679_s25  ;;  %v3788_v22 = vadd.f32 %v3787_v20, %v3786_v18 }
 0x148   : > { %v3789_v21 = vpop.f32.mrf.mxu0  ;;  %3948 = vmatmul.mubr.bf16.gmra.mxu0 %v786_v19 }
 0x14a   : > { %v3790_v23 = vpop.f32.mrf.mxu0 }
 0x14b   : > { %v3791_v24 = vadd.f32 %v3790_v23, %v3789_v21  ;;  %2229 = vrot.lane.b32.xlu0 %v786_v19, %s4678_s12 }
 0x14c   : > { %v3792_v25 = vpop.f32.mrf.mxu0 }
 0x14d   : > { %v787_v26 = vpack.c.bf16 %v3791_v24, %v3788_v22 }
 0x14e   : > { %v3793_v27 = vpop.f32.mrf.mxu0 }
 0x14f   : > { %2231 = vrot.lane.b32.xlu0 %v787_v26, %s4678_s12  ;;  %1745 = vrot.lane.b32.xlu1 %v787_v26, %s4677_s24  ;;  %v3794_v29 = vadd.f32 %v3793_v27, %v3792_v25  ;;  %v5088_v25 = vld [vmem:[%s5085_s29] sm:$0xff] }
 0x150   : > { %v3795_v28 = vpop.f32.mrf.mxu0  ;;  %3951 = vmatprep.mubr.bf16.mxu0 %v787_v26 }
 0x152   : > { %v3796_v30 = vpop.f32.mrf.mxu0 }
 0x153   : > { %v3797_v31 = vadd.f32 %v3796_v30, %v3795_v28  ;;  %2717 = vrot.lane.b32.xlu0 %v787_v26, %s4679_s25  ;;  %v795_v30 = vunpack.c.2.s8 %v5088_v25 }
 0x155   : > { %v788_v32 = vpack.c.bf16 %v3797_v31, %v3794_v29 }
 0x157   : > { %3904 = vmatpush3.bf16.xpose.msra.mxu1 %v788_v32  ;;  %1747 = vrot.lane.b32.xlu0 %v788_v32, %s4677_s24 }
 0x158   : > { %3905 = vmatprep.subr.bf16.mxu1 %v4675_v40  ;;  %3952 = vmatmul.mubr.bf16.gmra.mxu0 %v788_v32 }
 0x159   : > { %2719 = vrot.lane.b32.xlu1 %v788_v32, %s4679_s25 }
 0x15b   : > { %2233 = vrot.lane.b32.xlu0 %v788_v32, %s4678_s12 }
 0x15f   : > { %3906 = vmatpush3.bf16.xpose.msra.mxu1 %v787_v26 }
 0x160   : > { %3907 = vmatprep.subr.bf16.mxu1 %v4675_v40 }
 0x167   : > { %3908 = vmatpush3.bf16.xpose.msra.mxu1 %v786_v19 }
 0x168   : > { %3909 = vmatprep.subr.bf16.mxu1 %v4675_v40 }
 0x16f   : > { %3910 = vmatpush3.bf16.xpose.msra.mxu1 %v4936_v12 }
 0x170   : > { %3911 = vmatprep.subr.bf16.mxu1 %v4675_v40 }
 0x177   : > { %3912 = vmatpush3.bf16.xpose.msra.mxu1 %v4927_v5 }
 0x178   : > { %3913 = vmatprep.subr.bf16.mxu1 %v4675_v40 }
 0x17f   : > { %3914 = vmatpush3.bf16.xpose.msra.mxu1 %v4918_v62 }
 0x180   : > { %3915 = vmatprep.subr.bf16.mxu1 %v4675_v40 }
 0x187   : > { %3916 = vmatpush3.bf16.xpose.msra.mxu1 %v4913_v55 }
 0x188   : > { %3917 = vmatprep.subr.bf16.mxu1 %v4675_v40 }
 0x18f   : > { %3918 = vmatpush3.bf16.xpose.msra.mxu1 %v4908_v48 }
 0x190   : > { %3955 = vmatprep.subr.bf16.mxu1 %v788_v32 }
 0x191   : > { %v1734_v40 = vpop.permute.xlu1 %1733 }
 0x196   : > { %3920 = vmatmul.mubr.bf16.vlgmr.msra.gmra.mxu1 %v857_v34 }
 0x197   : > { %3956 = vmatpush3.bf16.msra.mxu1 %v788_v32 }
 0x198   : > { %3957 = vmatprep.subr.bf16.mxu1 %v787_v26 }
 0x199   : > { %v1736_v35 = vpop.permute.xlu0 %1735 }
 0x19b   : > { %3958 = vmatpush3.bf16.msra.mxu1 %v787_v26 }
 0x19c   : > { %3959 = vmatprep.subr.bf16.mxu1 %v786_v19 }
 0x19f   : > { %3960 = vmatpush3.bf16.msra.mxu1 %v786_v19 }
 0x1a0   : > { %3961 = vmatprep.subr.bf16.mxu1 %v4936_v12 }
 0x1a1   : > { %v4973_v36 = vpop.permute.xlu0 %2223  ;;  %v1738_v42 = vpop.permute.xlu1 %1737 }
 0x1a2   : > { %6453 = vst [vmem:[#allocation6_spill] sm:$0xff] %v4973_v36 }
 0x1a3   : > { %3962 = vmatpush3.bf16.msra.mxu1 %v4936_v12  ;;  %v1140_v12 = vshrl.u32 %v1139_v10, 7 }
 0x1a4   : > { %3963 = vmatprep.subr.bf16.mxu1 %v4927_v5 }
 0x1a5   : > { %v4977_v37 = vpop.permute.xlu0 %2709  ;;  %v2519_v13 = vsub.s32 3, %v1140_v12  ;;  %v1141_v24 = vsub.s32 0, %v1140_v12  ;;  %v1539_v28 = vsub.s32 1, %v1140_v12  ;;  %v2033_v34 = vsub.s32 2, %v1140_v12 }
 0x1a6   : > { %6454 = vst [vmem:[#allocation7_spill] sm:$0xff] %v4977_v37 }
 0x1a7   : > { %3964 = vmatpush3.bf16.msra.mxu1 %v4927_v5 }
 0x1a8   : > { %3965 = vmatprep.subr.bf16.mxu1 %v4918_v62 }
 0x1a9   : > { %v1740_v38 = vpop.permute.xlu0 %1739 }
 0x1aa   : > { %v4992_v44 = vpop.permute.xlu1 %2711 }
 0x1ab   : > { %3966 = vmatpush3.bf16.msra.mxu1 %v4918_v62  ;;  %6458 = vst [vmem:[#allocation11_spill] sm:$0xff] %v4992_v44 }
 0x1ac   : > { %3967 = vmatprep.subr.bf16.mxu1 %v4913_v55 }
 0x1ad   : > { %v4983_v39 = vpop.permute.xlu0 %2225 }
 0x1ae   : > { %6455 = vst [vmem:[#allocation8_spill] sm:$0xff] %v4983_v39 }
 0x1af   : > { %3968 = vmatpush3.bf16.msra.mxu1 %v4913_v55 }
 0x1b0   : > { %3969 = vmatprep.subr.bf16.mxu1 %v4908_v48 }
 0x1b1   : > { %v4987_v41 = vpop.permute.xlu0 %2227  ;;  %v1742_v47 = vpop.permute.xlu1 %1741 }
 0x1b2   : > { %6456 = vst [vmem:[#allocation9_spill] sm:$0xff] %v4987_v41 }
 0x1b3   : > { %3970 = vmatpush3.bf16.msra.mxu1 %v4908_v48 }
 0x1b5   : > { %v4990_v43 = vpop.permute.xlu0 %2713 }
 0x1b6   : > { %6457 = vst [vmem:[#allocation10_spill] sm:$0xff] %v4990_v43 }
 0x1b9   : > { %v1744_v45 = vpop.permute.xlu0 %1743  ;;  %v4998_v50 = vpop.permute.xlu1 %2715 }
 0x1ba   : > { %6461 = vst [vmem:[#allocation14_spill] sm:$0xff] %v4998_v50 }
 0x1bd   : > { %v4994_v46 = vpop.permute.xlu0 %2229 }
 0x1be   : > { %6459 = vst [vmem:[#allocation12_spill] sm:$0xff] %v4994_v46 }
 0x1c1   : > { %v4996_v49 = vpop.permute.xlu0 %2231  ;;  %v1746_v53 = vpop.permute.xlu1 %1745 }
 0x1c2   : > { %6460 = vst [vmem:[#allocation13_spill] sm:$0xff] %v4996_v49 }
 0x1c5   : > { %v5000_v51 = vpop.permute.xlu0 %2717 }
 0x1c6   : > { %6462 = vst [vmem:[#allocation15_spill] sm:$0xff] %v5000_v51 }
 0x1c9   : > { %v1748_v52 = vpop.permute.xlu0 %1747 }
 0x1ca   : > { %3987 = vmatprep.subr.bf16.mxu0 %v1748_v52 }
 0x1cb   : > { %3988 = vmatpush3.bf16.msra.mxu0 %v1748_v52  ;;  %v5005_v56 = vpop.permute.xlu1 %2719 }
 0x1cc   : > { %3989 = vmatprep.subr.bf16.mxu0 %v1746_v53  ;;  %6464 = vst [vmem:[#allocation17_spill] sm:$0xff] %v5005_v56 }
 0x1cd   : > { %v5002_v54 = vpop.permute.xlu0 %2233 }
 0x1ce   : > { %6463 = vst [vmem:[#allocation16_spill] sm:$0xff] %v5002_v54  ;;  %4019 = vmatprep.subr.bf16.mxu1 %v5002_v54 }
 0x1cf   : > { %3990 = vmatpush3.bf16.msra.mxu0 %v1746_v53 }
 0x1d0   : > { %3991 = vmatprep.subr.bf16.mxu0 %v1744_v45 }
 0x1d3   : > { %3992 = vmatpush3.bf16.msra.mxu0 %v1744_v45 }
 0x1d4   : > { %3993 = vmatprep.subr.bf16.mxu0 %v1742_v47 }
 0x1d7   : > { %3994 = vmatpush3.bf16.msra.mxu0 %v1742_v47 }
 0x1d8   : > { %3995 = vmatprep.subr.bf16.mxu0 %v1740_v38 }
 0x1db   : > { %3996 = vmatpush3.bf16.msra.mxu0 %v1740_v38  ;;  %v811_v38 = vcvt.s32.f32 %v795_v30 }
 0x1dc   : > { %3997 = vmatprep.subr.bf16.mxu0 %v1738_v42 }
 0x1dd   : > { %v3601_v53 = vadd.f32 -1.0, %v811_v38 }
 0x1df   : > { %3998 = vmatpush3.bf16.msra.mxu0 %v1738_v42 }
 0x1e0   : > { %3999 = vmatprep.subr.bf16.mxu0 %v1736_v35 }
 0x1e3   : > { %4000 = vmatpush3.bf16.msra.mxu0 %v1736_v35 }
 0x1e4   : > { %4001 = vmatprep.subr.bf16.mxu0 %v1734_v40 }
 0x1e7   : > { %v3941_v57 = vpop.f32.mrf.mxu0  ;;  %4002 = vmatpush3.bf16.msra.mxu0 %v1734_v40 }
 0x1e8   : > { %1071 = vperm.xlu1 %4166, %v3941_v57   ;;  %4051 = vmatprep.subr.bf16.mxu0 %v5005_v56 }
 0x1e9   : > { %v996_v58 = vpop.f32.mrf.mxu0 }
 0x1ea   : > { %1061 = vperm.xlu0 %4170, %v996_v58  }
 0x1eb   : > { %v3942_v62 = vpop.f32.mrf.mxu0 }
 0x1ec   : > { %4167 = vset.pattern.permute.xlu1 %v4681_v59 }
 0x1ed   : > { %1482 = vperm.xlu1 %4167, %v3941_v57   ;;  %v999_v63 = vpop.f32.mrf.mxu0 }
 0x1ee   : > { %4171 = vset.pattern.permute.xlu0 %v4681_v59 }
 0x1ef   : > { %1474 = vperm.xlu0 %4171, %v996_v58  }
 0x1f1   : > { %4168 = vset.pattern.permute.xlu1 %v4682_v60 }
 0x1f2   : > { %1976 = vperm.xlu1 %4168, %v3941_v57  }
 0x1f3   : > { %4173 = vset.pattern.permute.xlu0 %v4683_v61 }
 0x1f4   : > { %2454 = vperm.xlu0 %4173, %v996_v58  }
 0x1f6   : > { %4169 = vset.pattern.permute.xlu1 %v4683_v61 }
 0x1f7   : > { %2462 = vperm.xlu1 %4169, %v3941_v57   ;;  %v3945_v0 = vpop.f32.mrf.mxu0 }
 0x1f8   : > { %4175 = vset.pattern.permute.xlu0 %v4681_v59 }
 0x1f9   : > { %1486 = vperm.xlu0 %4175, %v3942_v62   ;;  %v1012_v1 = vpop.f32.mrf.mxu0 }
 0x1fb   : > { %4172 = vset.pattern.permute.xlu1 %v4682_v60  ;;  %v3946_v2 = vpop.f32.mrf.mxu0 }
 0x1fc   : > { %1968 = vperm.xlu1 %4172, %v996_v58  }
 0x1fd   : > { %4177 = vset.pattern.permute.xlu0 %v4683_v61  ;;  %v1015_v3 = vpop.f32.mrf.mxu0 }
 0x1fe   : > { %2466 = vperm.xlu0 %4177, %v3942_v62  }
 0x200   : > { %4174 = vset.pattern.permute.xlu1 %v4680_v33 }
 0x201   : > { %1076 = vperm.xlu1 %4174, %v3942_v62  }
 0x202   : > { %4178 = vset.pattern.permute.xlu0 %v4680_v33 }
 0x203   : > { %1066 = vperm.xlu0 %4178, %v999_v63  }
 0x205   : > { %4176 = vset.pattern.permute.xlu1 %v4682_v60 }
 0x206   : > { %1980 = vperm.xlu1 %4176, %v3942_v62  }
 0x207   : > { %4180 = vset.pattern.permute.xlu0 %v4682_v60 }
 0x208   : > { %1972 = vperm.xlu0 %4180, %v999_v63   ;;  %v3949_v4 = vpop.f32.mrf.mxu0 }
 0x20a   : > { %4179 = vset.pattern.permute.xlu1 %v4681_v59  ;;  %v1028_v5 = vpop.f32.mrf.mxu0 }
 0x20b   : > { %1478 = vperm.xlu1 %4179, %v999_v63  }
 0x20c   : > { %4187 = vset.pattern.permute.xlu0 %v4681_v59  ;;  %v3950_v6 = vpop.f32.mrf.mxu0 }
 0x20d   : > { %1490 = vperm.xlu0 %4187, %v1012_v1  }
 0x20e   : > { %v5041_v7 = vpop.f32.mrf.mxu0 }
 0x20f   : > { %4181 = vset.pattern.permute.xlu1 %v4683_v61 }
 0x210   : > { %2458 = vperm.xlu1 %4181, %v999_v63   ;;  %v5116_v63 = vmul.f32 30000.0, %v3601_v53 }
 0x211   : > { %4189 = vset.pattern.permute.xlu0 %v4683_v61 }
 0x212   : > { %2470 = vperm.xlu0 %4189, %v1012_v1  }
 0x214   : > { %4182 = vset.pattern.permute.xlu1 %v4680_v33 }
 0x215   : > { %1091 = vperm.xlu1 %4182, %v3945_v0  }
 0x216   : > { %4191 = vset.pattern.permute.xlu0 %v4681_v59 }
 0x217   : > { %1502 = vperm.xlu0 %4191, %v3946_v2  }
 0x218   : > { %v5046_v8 = vpop.f32.mrf.mxu0 }
 0x219   : > { %4183 = vset.pattern.permute.xlu1 %v4681_v59 }
 0x21a   : > { %1498 = vperm.xlu1 %4183, %v3945_v0   ;;  %v5051_v9 = vpop.f32.mrf.mxu0 }
 0x21b   : > { %4193 = vset.pattern.permute.xlu0 %v4683_v61 }
 0x21c   : > { %2482 = vperm.xlu0 %4193, %v3946_v2   ;;  %v5059_v11 = vpop.f32.mrf.mxu0 }
 0x21e   : > { %4184 = vset.pattern.permute.xlu1 %v4682_v60  ;;  %v5069_v17 = vpop.f32.mrf.mxu0 }
 0x21f   : > { %1992 = vperm.xlu1 %4184, %v3945_v0  }
 0x220   : > { %4194 = vset.pattern.permute.xlu0 %v4680_v33 }
 0x221   : > { %1086 = vperm.xlu0 %4194, %v1015_v3  }
 0x223   : > { %4185 = vset.pattern.permute.xlu1 %v4683_v61 }
 0x224   : > { %2478 = vperm.xlu1 %4185, %v3945_v0  }
 0x225   : > { %4196 = vset.pattern.permute.xlu0 %v4682_v60 }
 0x226   : > { %1988 = vperm.xlu0 %4196, %v1015_v3  }
 0x228   : > { %4186 = vset.pattern.permute.xlu1 %v4680_v33 }
 0x229   : > { %1081 = vperm.xlu1 %4186, %v1012_v1  }
 0x22a   : > { %4203 = vset.pattern.permute.xlu0 %v4681_v59 }
 0x22b   : > { %1506 = vperm.xlu0 %4203, %v1028_v5  }
 0x22d   : > { %4188 = vset.pattern.permute.xlu1 %v4682_v60 }
 0x22e   : > { %1984 = vperm.xlu1 %4188, %v1012_v1  }
 0x22f   : > { %4205 = vset.pattern.permute.xlu0 %v4683_v61 }
 0x230   : > { %2486 = vperm.xlu0 %4205, %v1028_v5  }
 0x232   : > { %4190 = vset.pattern.permute.xlu1 %v4680_v33 }
 0x233   : > { %1096 = vperm.xlu1 %4190, %v3946_v2  }
 0x234   : > { %4207 = vset.pattern.permute.xlu0 %v4681_v59 }
 0x235   : > { %1518 = vperm.xlu0 %4207, %v3950_v6  }
 0x237   : > { %4192 = vset.pattern.permute.xlu1 %v4682_v60 }
 0x238   : > { %1996 = vperm.xlu1 %4192, %v3946_v2   ;;  %v793_v2 = vunpack.c.0.s8 %v5088_v25 }
 0x239   : > { %4209 = vset.pattern.permute.xlu0 %v4683_v61 }
 0x23a   : > { %2498 = vperm.xlu0 %4209, %v3950_v6  }
 0x23c   : > { %4195 = vset.pattern.permute.xlu1 %v4681_v59 }
 0x23d   : > { %1494 = vperm.xlu1 %4195, %v1015_v3  }
 0x23e   : > { %4210 = vset.pattern.permute.xlu0 %v4680_v33 }
 0x23f   : > { %1106 = vperm.xlu0 %4210, %v5041_v7  }
 0x241   : > { %4197 = vset.pattern.permute.xlu1 %v4683_v61 }
 0x242   : > { %2474 = vperm.xlu1 %4197, %v1015_v3  }
 0x243   : > { %4212 = vset.pattern.permute.xlu0 %v4682_v60 }
 0x244   : > { %2004 = vperm.xlu0 %4212, %v5041_v7  }
 0x246   : > { %4198 = vset.pattern.permute.xlu1 %v4680_v33 }
 0x247   : > { %1111 = vperm.xlu1 %4198, %v3949_v4  }
 0x248   : > { %4219 = vset.pattern.permute.xlu0 %v4681_v59 }
 0x249   : > { %1522 = vperm.xlu0 %4219, %v5051_v9  }
 0x24b   : > { %4199 = vset.pattern.permute.xlu1 %v4681_v59 }
 0x24c   : > { %1514 = vperm.xlu1 %4199, %v3949_v4  }
 0x24d   : > { %4221 = vset.pattern.permute.xlu0 %v4683_v61 }
 0x24e   : > { %2502 = vperm.xlu0 %4221, %v5051_v9  }
 0x250   : > { %4200 = vset.pattern.permute.xlu1 %v4682_v60 }
 0x251   : > { %2008 = vperm.xlu1 %4200, %v3949_v4  }
 0x252   : > { %4223 = vset.pattern.permute.xlu0 %v4681_v59 }
 0x253   : > { %1534 = vperm.xlu0 %4223, %v5059_v11  }
 0x255   : > { %4201 = vset.pattern.permute.xlu1 %v4683_v61 }
 0x256   : > { %2494 = vperm.xlu1 %4201, %v3949_v4   ;;  %v892_v14 = vpop.f32.mrf.mxu1  ;;  %v794_v4 = vunpack.c.1.s8 %v5088_v25 }
 0x257   : > { %4225 = vset.pattern.permute.xlu0 %v4683_v61  ;;  %v5065_v15 = vrot.slane %v892_v14, %v2519_v13  ;;  %v5091_v27 = vrot.slane %v892_v14, %v1141_v24  ;;  %v5099_v32 = vrot.slane %v892_v14, %v1539_v28  ;;  %v5106_v42 = vrot.slane %v892_v14, %v2033_v34  ;;  %v5139_v24 = vld [vmem:[%s5085_s29 + $0x8] sm:$0xff] }
 0x258   : > { %2514 = vperm.xlu0 %4225, %v5059_v11   ;;  %v3921_v16 = vpop.f32.mrf.mxu1  ;;  %v809_v13 = vcvt.s32.f32 %v793_v2  ;;  %v810_v14 = vcvt.s32.f32 %v794_v4  ;;  %v799_v30 = vunpack.c.2.s8 %v5139_v24 }
 0x25a   : > { %4202 = vset.pattern.permute.xlu1 %v4680_v33  ;;  %v895_v18 = vpop.f32.mrf.mxu1  ;;  %v3600_v28 = vadd.f32 -1.0, %v810_v14 }
 0x25b   : > { %1101 = vperm.xlu1 %4202, %v1028_v5  }
 0x25c   : > { %4226 = vset.pattern.permute.xlu0 %v4680_v33  ;;  %v3922_v19 = vpop.f32.mrf.mxu1  ;;  %v5153_v53 = vmul.f32 30000.0, %v3600_v28 }
 0x25d   : > { %1126 = vperm.xlu0 %4226, %v5069_v17  }
 0x25f   : > { %4204 = vset.pattern.permute.xlu1 %v4682_v60 }
 0x260   : > { %2000 = vperm.xlu1 %4204, %v1028_v5  }
 0x261   : > { %4228 = vset.pattern.permute.xlu0 %v4682_v60 }
 0x262   : > { %2020 = vperm.xlu0 %4228, %v5069_v17  }
 0x263   : > { %v1072_v20 = vpop.permute.xlu1 %1071 }
 0x264   : > { %4206 = vset.pattern.permute.xlu1 %v4680_v33  ;;  %v1145_v35 = vadd.f32 %v5091_v27, %v1072_v20 }
 0x265   : > { %v5077_v21 = vpop.permute.xlu0 %1061  ;;  %1116 = vperm.xlu1 %4206, %v3950_v6  }
 0x266   : > { %4230 = vset.pattern.permute.xlu0 %v4683_v61  ;;  %v1161_v45 = vmul.f32 0.2, %v1145_v35 }
 0x268   : > { %v1483_v22 = vpop.permute.xlu1 %1482  ;;  %v1177_v0 = vmax.f32 %v1145_v35, %v1161_v45 }
 0x269   : > { %4208 = vset.pattern.permute.xlu1 %v4682_v60  ;;  %v1543_v47 = vadd.f32 %v5099_v32, %v1483_v22 }
 0x26a   : > { %v1475_v23 = vpop.permute.xlu0 %1474  ;;  %2012 = vperm.xlu1 %4208, %v3950_v6  }
 0x26b   : > { %v1559_v58 = vmul.f32 0.2, %v1543_v47  ;;  %v1541_v5 = vadd.f32 %v5099_v32, %v1475_v23  ;;  %v3599_v23 = vadd.f32 -1.0, %v809_v13 }
 0x26d   : > { %v1977_v26 = vpop.permute.xlu1 %1976  ;;  %v1575_v10 = vmax.f32 %v1543_v47, %v1559_v58  ;;  %v1557_v16 = vmul.f32 0.2, %v1541_v5  ;;  %v5151_v47 = vmul.f32 30000.0, %v3599_v23 }
 0x26e   : > { %4211 = vset.pattern.permute.xlu1 %v4681_v59  ;;  %v2037_v62 = vadd.f32 %v5106_v42, %v1977_v26 }
 0x26f   : > { %v5093_v29 = vpop.permute.xlu0 %2454  ;;  %1510 = vperm.xlu1 %4211, %v5041_v7   ;;  %v5135_v19 = vadd.f32 %v1575_v10, %v5116_v63  ;;  %v1573_v45 = vmax.f32 %v1541_v5, %v1557_v16 }
 0x270   : > { %v2053_v6 = vmul.f32 0.2, %v2037_v62 }
 0x272   : > { %v5097_v31 = vpop.permute.xlu1 %2462  ;;  %v2069_v20 = vmax.f32 %v2037_v62, %v2053_v6 }
 0x273   : > { %4213 = vset.pattern.permute.xlu1 %v4683_v61 }
 0x274   : > { %v5103_v40 = vpop.permute.xlu0 %1486  ;;  %2490 = vperm.xlu1 %4213, %v5041_v7   ;;  %v5126_v7 = vadd.f32 %v1177_v0, %v5116_v63  ;;  %v5147_v38 = vadd.f32 %v2069_v20, %v5116_v63  ;;  %v5158_v0 = vadd.f32 %v1573_v45, %v5151_v47 }
 0x277   : > { %v5109_v52 = vpop.permute.xlu1 %1968 }
 0x278   : > { %4214 = vset.pattern.permute.xlu1 %v4680_v33  ;;  %v2035_v36 = vadd.f32 %v5106_v42, %v5109_v52 }
 0x279   : > { %v5112_v57 = vpop.permute.xlu0 %2466  ;;  %1131 = vperm.xlu1 %4214, %v5046_v8  }
 0x27c   : > { %v5118_v1 = vpop.permute.xlu1 %1076 }
 0x27d   : > { %4215 = vset.pattern.permute.xlu1 %v4681_v59 }
 0x27e   : > { %v1067_v3 = vpop.permute.xlu0 %1066  ;;  %1530 = vperm.xlu1 %4215, %v5046_v8  }
 0x27f   : > { %v1144_v18 = vadd.f32 %v5091_v27, %v1067_v3  ;;  %v815_v3 = vcvt.s32.f32 %v799_v30 }
 0x281   : > { %v5128_v12 = vpop.permute.xlu1 %1980  ;;  %1211 = vmax.xlane.f32.xlu0 %v5126_v7  ;;  %v1160_v34 = vmul.f32 0.2, %v1144_v18  ;;  %v3605_v5 = vadd.f32 -1.0, %v815_v3 }
 0x282   : > { %4216 = vset.pattern.permute.xlu1 %v4682_v60 }
 0x283   : > { %2024 = vperm.xlu1 %4216, %v5046_v8   ;;  %v1973_v22 = vpop.permute.xlu0 %1972  ;;  %v1176_v2 = vmax.f32 %v1144_v18, %v1160_v34  ;;  %v5173_v16 = vmul.f32 30000.0, %v3605_v5 }
 0x284   : > { %v2036_v35 = vadd.f32 %v5106_v42, %v1973_v22  ;;  %v797_v22 = vunpack.c.0.s8 %v5139_v24 }
 0x285   : > { %1609 = vmax.xlane.f32.xlu0 %v5135_v19 }
 0x286   : > { %v5141_v26 = vpop.permute.xlu1 %1478  ;;  %v2052_v58 = vmul.f32 0.2, %v2036_v35 }
 0x287   : > { %4217 = vset.pattern.permute.xlu1 %v4683_v61 }
 0x288   : > { %2510 = vperm.xlu1 %4217, %v5046_v8   ;;  %v5164_v8 = vadd.f32 %v1176_v2, %v5153_v53  ;;  %v2068_v4 = vmax.f32 %v2036_v35, %v2052_v58  ;;  %v1491_v23 = vpop.permute.xlu0 %1490  ;;  %v813_v35 = vcvt.s32.f32 %v797_v22 }
 0x289   : > { %2103 = vmax.xlane.f32.xlu0 %v5147_v38  ;;  %v1545_v34 = vadd.f32 %v5099_v32, %v1491_v23 }
 0x28a   : > { %v5171_v14 = vadd.f32 %v2068_v4, %v5153_v53 }
 0x28b   : > { %v5155_v62 = vpop.permute.xlu1 %2458  ;;  %v1561_v3 = vmul.f32 0.2, %v1545_v34 }
 0x28c   : > { %4218 = vset.pattern.permute.xlu1 %v4680_v33 }
 0x28d   : > { %1121 = vperm.xlu1 %4218, %v5051_v9   ;;  %1605 = vmax.xlane.f32.xlu0 %v5158_v0  ;;  %v5191_v4 = vpop.permute.xlu0 %2470 }
 0x290   : > { %v1092_v6 = vpop.permute.xlu1 %1091 }
 0x291   : > { %v1149_v10 = vadd.f32 %v5091_v27, %v1092_v6  ;;  %4220 = vset.pattern.permute.xlu1 %v4682_v60  ;;  %1209 = vmax.xlane.f32.xlu0 %v5164_v8  ;;  %v3603_v6 = vadd.f32 -1.0, %v813_v35  ;;  %v800_v35 = vunpack.c.3.s8 %v5139_v24 }
 0x292   : > { %2016 = vperm.xlu1 %4220, %v5051_v9  }
 0x293   : > { %v1165_v13 = vmul.f32 0.2, %v1149_v10 }
 0x295   : > { %v1499_v18 = vpop.permute.xlu1 %1498  ;;  %2101 = vmax.xlane.f32.xlu0 %v5171_v14  ;;  %v1181_v20 = vmax.f32 %v1149_v10, %v1165_v13 }
 0x296   : > { %v1547_v28 = vadd.f32 %v5099_v32, %v1499_v18  ;;  %4222 = vset.pattern.permute.xlu1 %v4680_v33  ;;  %v1577_v18 = vmax.f32 %v1545_v34, %v1561_v3 }
 0x297   : > { %1136 = vperm.xlu1 %4222, %v5059_v11   ;;  %v5181_v9 = vadd.f32 %v1181_v20, %v5173_v16  ;;  %v5203_v20 = vpop.permute.xlu0 %1502 }
 0x298   : > { %v1563_v30 = vmul.f32 0.2, %v1547_v28 }
 0x299   : > { %6465 = vst [vmem:[#allocation18_spill] sm:$0xff] %v5181_v9  ;;  %1219 = vmax.xlane.f32.xlu0 %v5181_v9 }
 0x29a   : > { %v1993_v45 = vpop.permute.xlu1 %1992  ;;  %v1579_v58 = vmax.f32 %v1547_v28, %v1563_v30 }
 0x29b   : > { %v2041_v2 = vadd.f32 %v5106_v42, %v1993_v45  ;;  %4224 = vset.pattern.permute.xlu1 %v4682_v60 }
 0x29c   : > { %2028 = vperm.xlu1 %4224, %v5059_v11   ;;  %v5189_v33 = vadd.f32 %v1579_v58, %v5173_v16  ;;  %v5201_v11 = vmul.f32 30000.0, %v3603_v6 }
 0x29d   : > { %v2057_v5 = vmul.f32 0.2, %v2041_v2 }
 0x29e   : > { %6466 = vst [vmem:[#allocation19_spill] sm:$0xff] %v5189_v33  ;;  %1617 = vmax.xlane.f32.xlu0 %v5189_v33  ;;  %v5210_v23 = vadd.f32 %v1577_v18, %v5201_v11 }
 0x29f   : > { %v5194_v10 = vpop.permute.xlu1 %2478  ;;  %v2073_v13 = vmax.f32 %v2041_v2, %v2057_v5 }
 0x2a0   : > { %4227 = vset.pattern.permute.xlu1 %v4681_v59  ;;  %6467 = vst [vmem:[#allocation20_spill] sm:$0xff] %v5210_v23  ;;  %v5214_v59 = vpop.permute.xlu0 %2482 }
 0x2a1   : > { %1526 = vperm.xlu1 %4227, %v5069_v17   ;;  %v5199_v60 = vadd.f32 %v2073_v13, %v5173_v16 }
 0x2a3   : > { %2111 = vmax.xlane.f32.xlu0 %v5199_v60 }
 0x2a4   : > { %v5206_v22 = vpop.permute.xlu1 %1081  ;;  %v1087_v2 = vpop.permute.xlu0 %1086 }
 0x2a5   : > { %4229 = vset.pattern.permute.xlu1 %v4683_v61  ;;  %v798_v61 = vunpack.c.1.s8 %v5139_v24  ;;  %v1148_v5 = vadd.f32 %v5091_v27, %v1087_v2 }
 0x2a6   : > { %2506 = vperm.xlu1 %4229, %v5069_v17   ;;  %v816_v17 = vcvt.s32.f32 %v800_v35 }
 0x2a7   : > { %1613 = vmax.xlane.f32.xlu0 %v5210_v23  ;;  %v814_v6 = vcvt.s32.f32 %v798_v61  ;;  %v1164_v37 = vmul.f32 0.2, %v1148_v5 }
 0x2a8   : > { %v5234_v35 = vpop.permute.xlu0 %1988 }
 0x2a9   : > { %v1985_v28 = vpop.permute.xlu1 %1984  ;;  %v1180_v50 = vmax.f32 %v1148_v5, %v1164_v37  ;;  %v1143_v37 = vadd.f32 %v5091_v27, %v5077_v21 }
 0x2aa   : > { %v2039_v30 = vadd.f32 %v5106_v42, %v1985_v28  ;;  %v3606_v28 = vadd.f32 -1.0, %v816_v17  ;;  %v2523_v17 = vadd.f32 %v5065_v15, %v5097_v31 }
 0x2ab   : > { %v1159_v51 = vmul.f32 0.2, %v1143_v37 }
 0x2ac   : > { %v2055_v34 = vmul.f32 0.2, %v2039_v30  ;;  %v5229_v43 = vmul.f32 30000.0, %v3606_v28  ;;  %v2539_v5 = vmul.f32 0.2, %v2523_v17 }
 0x2ad   : > { %v1175_v21 = vmax.f32 %v1143_v37, %v1159_v51  ;;  %v1146_v37 = vadd.f32 %v5091_v27, %v5118_v1  ;;  %v1544_v1 = vadd.f32 %v5099_v32, %v5103_v40 }
 0x2ae   : > { %v5218_v45 = vpop.permute.xlu1 %1096  ;;  %v2071_v58 = vmax.f32 %v2039_v30, %v2055_v34  ;;  %v3604_v30 = vadd.f32 -1.0, %v814_v6 }
 0x2b0   : > { %v5222_v3 = vadd.f32 %v2071_v58, %v5201_v11  ;;  %v5232_v58 = vld [vmem:[%s5085_s29 + $0x10] sm:$0xff] }
 0x2b1   : > { %v803_v2 = vunpack.c.2.s8 %v5232_v58  ;;  %v801_v46 = vunpack.c.0.s8 %v5232_v58 }
 0x2b2   : > { %6468 = vst [vmem:[#allocation21_spill] sm:$0xff] %v5222_v3  ;;  %2107 = vmax.xlane.f32.xlu0 %v5222_v3 }
 0x2b3   : > { %v1997_v13 = vpop.permute.xlu1 %1996 }
 0x2b4   : > { %v2042_v18 = vadd.f32 %v5106_v42, %v1997_v13  ;;  %v5240_v13 = vmul.f32 30000.0, %v3604_v30 }
 0x2b6   : > { %v2058_v44 = vmul.f32 0.2, %v2042_v18  ;;  %v5248_v28 = vadd.f32 %v1180_v50, %v5240_v13 }
 0x2b8   : > { %v2074_v34 = vmax.f32 %v2042_v18, %v2058_v44  ;;  %v5227_v24 = vpop.permute.xlu1 %1494  ;;  %v1507_v44 = vpop.permute.xlu0 %1506  ;;  %v819_v18 = vcvt.s32.f32 %v803_v2  ;;  %6469 = vst [vmem:[#allocation22_spill] sm:$0xff] %v5248_v28  ;;  %v2555_v2 = vmax.f32 %v2523_v17, %v2539_v5 }
 0x2b9   : > { %v1549_v51 = vadd.f32 %v5099_v32, %v1507_v44 }
 0x2ba   : > { %v5238_v61 = vadd.f32 %v2074_v34, %v5229_v43  ;;  %v3609_v30 = vadd.f32 -1.0, %v819_v18  ;;  %v2521_v18 = vadd.f32 %v5065_v15, %v5093_v29  ;;  %v5277_v29 = vadd.f32 %v1175_v21, %v5151_v47 }
 0x2bc   : > { %2113 = vmax.xlane.f32.xlu0 %v5238_v61  ;;  %v5253_v56 = vpop.permute.xlu0 %2486  ;;  %v5258_v50 = vmul.f32 30000.0, %v3609_v30 }
 0x2bd   : > { %v5245_v6 = vpop.permute.xlu1 %2474 }
 0x2c0   : > { %1217 = vmax.xlane.f32.xlu0 %v5248_v28  ;;  %v2051_v28 = vmul.f32 0.2, %v2035_v36  ;;  %v5267_v54 = vpop.permute.xlu0 %1518 }
 0x2c2   : > { %v1112_v34 = vpop.permute.xlu1 %1111  ;;  %v2067_v30 = vmax.f32 %v2035_v36, %v2051_v28 }
 0x2c3   : > { %v1153_v31 = vadd.f32 %v5091_v27, %v1112_v34  ;;  %v5265_v34 = vadd.f32 %v2555_v2, %v5116_v63  ;;  %v2537_v63 = vmul.f32 0.2, %v2521_v18  ;;  %v1565_v2 = vmul.f32 0.2, %v1549_v51 }
 0x2c4   : > { %v5292_v36 = vadd.f32 %v2067_v30, %v5151_v47 }
 0x2c5   : > { %v1169_v39 = vmul.f32 0.2, %v1153_v31  ;;  %6470 = vst [vmem:[#allocation23_spill] sm:$0xff] %v5265_v34  ;;  %v2553_v3 = vmax.f32 %v2521_v18, %v2537_v63  ;;  %v2038_v63 = vadd.f32 %v5106_v42, %v5128_v12 }
 0x2c7   : > { %v1185_v9 = vmax.f32 %v1153_v31, %v1169_v39  ;;  %v1515_v41 = vpop.permute.xlu1 %1514  ;;  %v796_v39 = vunpack.c.3.s8 %v5088_v25  ;;  %v5305_v30 = vadd.f32 %v2553_v3, %v5151_v47  ;;  %v1542_v47 = vadd.f32 %v5099_v32, %v5141_v26 }
 0x2c8   : > { %v1551_v49 = vadd.f32 %v5099_v32, %v1515_v41  ;;  %v817_v41 = vcvt.s32.f32 %v801_v46  ;;  %v802_v26 = vunpack.c.1.s8 %v5232_v58 }
 0x2c9   : > { %v5270_v52 = vadd.f32 %v1185_v9, %v5258_v50  ;;  %v812_v44 = vcvt.s32.f32 %v796_v39  ;;  %6474 = vst [vmem:[#allocation27_spill] sm:$0xff] %v5305_v30 }
 0x2ca   : > { %v1567_v17 = vmul.f32 0.2, %v1551_v49  ;;  %2589 = vmax.xlane.f32.xlu1 %v5265_v34  ;;  %v3607_v46 = vadd.f32 -1.0, %v817_v41  ;;  %v1560_v41 = vmul.f32 0.2, %v1544_v1 }
 0x2cb   : > { %6471 = vst [vmem:[#allocation24_spill] sm:$0xff] %v5270_v52  ;;  %1227 = vmax.xlane.f32.xlu0 %v5270_v52  ;;  %v5286_v52 = vpop.permute.xlu0 %2498  ;;  %v3602_v39 = vadd.f32 -1.0, %v812_v44 }
 0x2cc   : > { %v1583_v5 = vmax.f32 %v1551_v49, %v1567_v17  ;;  %v2009_v9 = vpop.permute.xlu1 %2008  ;;  %v1162_v49 = vmul.f32 0.2, %v1146_v37  ;;  %v5300_v18 = vmul.f32 30000.0, %v3607_v46  ;;  %v2054_v46 = vmul.f32 0.2, %v2038_v63 }
 0x2cd   : > { %v2045_v31 = vadd.f32 %v5106_v42, %v2009_v9 }
 0x2ce   : > { %1207 = vmax.xlane.f32.xlu1 %v5277_v29  ;;  %v5284_v25 = vadd.f32 %v1583_v5, %v5258_v50  ;;  %v1581_v5 = vmax.f32 %v1549_v51, %v1565_v2  ;;  %v1178_v40 = vmax.f32 %v1146_v37, %v1162_v49  ;;  %v844_v51 = vmul.f32 30000.0, %v3602_v39 }
 0x2cf   : > { %v2061_v21 = vmul.f32 0.2, %v2045_v31  ;;  %v1576_v2 = vmax.f32 %v1544_v1, %v1560_v41  ;;  %v2524_v37 = vadd.f32 %v5065_v15, %v5112_v57  ;;  %v2070_v39 = vmax.f32 %v2038_v63, %v2054_v46 }
 0x2d0   : > { %6472 = vst [vmem:[#allocation25_spill] sm:$0xff] %v5284_v25  ;;  %1625 = vmax.xlane.f32.xlu0 %v5284_v25  ;;  %v5312_v44 = vadd.f32 %v1581_v5, %v5300_v18  ;;  %v5316_v12 = vadd.f32 %v1178_v40, %v844_v51  ;;  %v804_v41 = vunpack.c.3.s8 %v5232_v58  ;;  %v1558_v40 = vmul.f32 0.2, %v1542_v47 }
 0x2d1   : > { %v2077_v28 = vmax.f32 %v2045_v31, %v2061_v21  ;;  %v5294_v17 = vpop.permute.xlu1 %2494  ;;  %v1107_v31 = vpop.permute.xlu0 %1106  ;;  %v5325_v5 = vadd.f32 %v1576_v2, %v844_v51  ;;  %v5334_v63 = vadd.f32 %v2070_v39, %v844_v51 }
 0x2d2   : > { %2099 = vmax.xlane.f32.xlu1 %v5292_v36  ;;  %6475 = vst [vmem:[#allocation28_spill] sm:$0xff] %v5312_v44  ;;  %v1574_v33 = vmax.f32 %v1542_v47, %v1558_v40  ;;  %v1152_v58 = vadd.f32 %v5091_v27, %v1107_v31  ;;  %v1147_v31 = vadd.f32 %v5091_v27, %v5206_v22 }
 0x2d3   : > { %v5298_v9 = vadd.f32 %v2077_v28, %v5258_v50  ;;  %v2540_v28 = vmul.f32 0.2, %v2524_v37  ;;  %6476 = vst [vmem:[#allocation29_spill] sm:$0xff] %v5325_v5  ;;  %6477 = vst [vmem:[#allocation30_spill] sm:$0xff] %v5334_v63 }
 0x2d4   : > { %v1168_v40 = vmul.f32 0.2, %v1152_v58 }
 0x2d5   : > { %6473 = vst [vmem:[#allocation26_spill] sm:$0xff] %v5298_v9  ;;  %2119 = vmax.xlane.f32.xlu0 %v5298_v9  ;;  %v5322_v3 = vpop.permute.xlu0 %2004  ;;  %v2522_v9 = vadd.f32 %v5065_v15, %v5155_v62  ;;  %v2556_v25 = vmax.f32 %v2524_v37, %v2540_v28  ;;  %v2527_v62 = vadd.f32 %v5065_v15, %v5194_v10 }
 0x2d6   : > { %v5308_v21 = vpop.permute.xlu1 %1101  ;;  %2585 = vmax.xlane.f32.xlu1 %v5305_v30 }
 0x2d7   : > { %v2538_v34 = vmul.f32 0.2, %v2522_v9  ;;  %v5346_v37 = vadd.f32 %v2556_v25, %v844_v51  ;;  %v5358_v51 = vld [vmem:[%s5085_s29 + $0x18] sm:$0xff] }
 0x2d9   : > { %1621 = vmax.xlane.f32.xlu0 %v5312_v44  ;;  %v5336_v46 = vpop.permute.xlu0 %1522  ;;  %6479 = vst [vmem:[#allocation32_spill] sm:$0xff] %v5346_v37 }
 0x2da   : > { %1213 = vmax.xlane.f32.xlu1 %v5316_v12 }
 0x2db   : > { %v2001_v49 = vpop.permute.xlu1 %2000 }
 0x2dc   : > { %v2043_v1 = vadd.f32 %v5106_v42, %v2001_v49  ;;  %v820_v49 = vcvt.s32.f32 %v804_v41  ;;  %v2543_v41 = vmul.f32 0.2, %v2527_v62 }
 0x2dd   : > { %v5350_v47 = vpop.permute.xlu0 %2502 }
 0x2de   : > { %v2059_v57 = vmul.f32 0.2, %v2043_v1  ;;  %1611 = vmax.xlane.f32.xlu1 %v5325_v5  ;;  %v818_v5 = vcvt.s32.f32 %v802_v26 }
 0x2e0   : > { %v2075_v44 = vmax.f32 %v2043_v1, %v2059_v57  ;;  %v5332_v23 = vpop.permute.xlu1 %1116  ;;  %v2554_v1 = vmax.f32 %v2522_v9, %v2538_v34  ;;  %v5353_v57 = vadd.f32 %v1574_v33, %v5153_v53  ;;  %v3608_v10 = vadd.f32 -1.0, %v818_v5 }
 0x2e1   : > { %v807_v9 = vunpack.c.2.s8 %v5358_v51  ;;  %v2525_v33 = vadd.f32 %v5065_v15, %v5191_v4  ;;  %v1150_v4 = vadd.f32 %v5091_v27, %v5218_v45  ;;  %v1548_v45 = vadd.f32 %v5099_v32, %v5203_v20 }
 0x2e2   : > { %2105 = vmax.xlane.f32.xlu1 %v5334_v63  ;;  %v5340_v2 = vadd.f32 %v2075_v44, %v5300_v18  ;;  %v3610_v44 = vadd.f32 -1.0, %v820_v49  ;;  %6480 = vst [vmem:[#allocation33_spill] sm:$0xff] %v5353_v57  ;;  %v5369_v5 = vadd.f32 %v2554_v1, %v5153_v53  ;;  %v5371_v22 = vmul.f32 30000.0, %v3608_v10 }
 0x2e3   : > { %v2559_v49 = vmax.f32 %v2527_v62, %v2543_v41  ;;  %v2541_v1 = vmul.f32 0.2, %v2525_v33  ;;  %v2528_v20 = vadd.f32 %v5065_v15, %v5214_v59 }
 0x2e4   : > { %6478 = vst [vmem:[#allocation31_spill] sm:$0xff] %v5340_v2  ;;  %2115 = vmax.xlane.f32.xlu0 %v5340_v2  ;;  %v5363_v34 = vmul.f32 30000.0, %v3610_v44  ;;  %6481 = vst [vmem:[#allocation34_spill] sm:$0xff] %v5369_v5  ;;  %v1163_v2 = vmul.f32 0.2, %v1147_v31  ;;  %v823_v44 = vcvt.s32.f32 %v807_v9 }
 0x2e5   : > { %v2013_v28 = vpop.permute.xlu1 %2012  ;;  %v2544_v30 = vmul.f32 0.2, %v2528_v20 }
 0x2e6   : > { %v2046_v39 = vadd.f32 %v5106_v42, %v2013_v28  ;;  %2591 = vmax.xlane.f32.xlu1 %v5346_v37  ;;  %v1184_v37 = vmax.f32 %v1152_v58, %v1168_v40  ;;  %v1179_v10 = vmax.f32 %v1147_v31, %v1163_v2  ;;  %v5388_v58 = vadd.f32 %v2559_v49, %v5173_v16 }
 0x2e7   : > { %v3613_v41 = vadd.f32 -1.0, %v823_v44  ;;  %v805_v40 = vunpack.c.0.s8 %v5358_v51  ;;  %v2557_v2 = vmax.f32 %v2525_v33, %v2541_v1  ;;  %v1553_v33 = vadd.f32 %v5099_v32, %v5336_v46 }
 0x2e8   : > { %v2062_v25 = vmul.f32 0.2, %v2046_v39  ;;  %v5385_v62 = vadd.f32 %v1184_v37, %v5371_v22  ;;  %6484 = vst [vmem:[#allocation37_spill] sm:$0xff] %v5388_v58  ;;  %v5398_v37 = vadd.f32 %v1179_v10, %v5201_v11 }
 0x2e9   : > { %v5402_v49 = vmul.f32 30000.0, %v3613_v41  ;;  %v821_v44 = vcvt.s32.f32 %v805_v40  ;;  %v5410_v1 = vadd.f32 %v2557_v2, %v5201_v11  ;;  %v1546_v11 = vadd.f32 %v5099_v32, %v5227_v24 }
 0x2ea   : > { %v2078_v26 = vmax.f32 %v2046_v39, %v2062_v25  ;;  %v5360_v28 = vpop.permute.xlu1 %1510  ;;  %1607 = vmax.xlane.f32.xlu1 %v5353_v57  ;;  %v5376_v25 = vpop.permute.xlu0 %1534  ;;  %6483 = vst [vmem:[#allocation36_spill] sm:$0xff] %v5385_v62  ;;  %6485 = vst [vmem:[#allocation38_spill] sm:$0xff] %v5398_v37  ;;  %v1569_v46 = vmul.f32 0.2, %v1553_v33 }
 0x2eb   : > { %v3611_v40 = vadd.f32 -1.0, %v821_v44 }
 0x2ec   : > { %v5374_v39 = vadd.f32 %v2078_v26, %v5363_v34  ;;  %v1166_v26 = vmul.f32 0.2, %v1150_v4  ;;  %v1585_v44 = vmax.f32 %v1553_v33, %v1569_v46 }
 0x2ee   : > { %6482 = vst [vmem:[#allocation35_spill] sm:$0xff] %v5374_v39  ;;  %2121 = vmax.xlane.f32.xlu0 %v5374_v39  ;;  %2587 = vmax.xlane.f32.xlu1 %v5369_v5  ;;  %v5395_v9 = vpop.permute.xlu0 %2514  ;;  %v806_v39 = vunpack.c.1.s8 %v5358_v51 }
 0x2ef   : > { %v5382_v53 = vpop.permute.xlu1 %2490 }
 0x2f0   : > { %v822_v57 = vcvt.s32.f32 %v806_v39  ;;  %v5425_v39 = vmul.f32 30000.0, %v3611_v40 }
 0x2f2   : > { %1225 = vmax.xlane.f32.xlu0 %v5385_v62  ;;  %2597 = vmax.xlane.f32.xlu1 %v5388_v58  ;;  %v1564_v62 = vmul.f32 0.2, %v1548_v45  ;;  %v1182_v58 = vmax.f32 %v1150_v4, %v1166_v26  ;;  %v1127_v10 = vpop.permute.xlu0 %1126  ;;  %v3612_v24 = vadd.f32 -1.0, %v822_v57  ;;  %v2526_v57 = vadd.f32 %v5065_v15, %v5245_v6 }
 0x2f3   : > { %v5447_v33 = vadd.f32 %v1585_v44, %v5425_v39 }
 0x2f4   : > { %v1132_v31 = vpop.permute.xlu1 %1131  ;;  %v1580_v63 = vmax.f32 %v1548_v45, %v1564_v62  ;;  %v5418_v4 = vadd.f32 %v1182_v58, %v5229_v43  ;;  %v2560_v62 = vmax.f32 %v2528_v20, %v2544_v30  ;;  %v2040_v58 = vadd.f32 %v5106_v42, %v5234_v35 }
 0x2f5   : > { %v1157_v16 = vadd.f32 %v5091_v27, %v1132_v31  ;;  %v5442_v35 = vmul.f32 30000.0, %v3612_v24  ;;  %6488 = vst [vmem:[#allocation41_spill] sm:$0xff] %v5447_v33 }
 0x2f6   : > { %1215 = vmax.xlane.f32.xlu1 %v5398_v37  ;;  %v5430_v45 = vadd.f32 %v1580_v63, %v5229_v43  ;;  %v5440_v30 = vadd.f32 %v2560_v62, %v5229_v43  ;;  %v5449_v46 = vpop.permute.xlu0 %2020  ;;  %v2531_v43 = vadd.f32 %v5065_v15, %v5294_v17  ;;  %v1151_v17 = vadd.f32 %v5091_v27, %v5308_v21 }
 0x2f7   : > { %v1173_v5 = vmul.f32 0.2, %v1157_v16 }
 0x2f8   : > { %v2547_v24 = vmul.f32 0.2, %v2531_v43 }
 0x2f9   : > { %v1189_v31 = vmax.f32 %v1157_v16, %v1173_v5  ;;  %v1531_v37 = vpop.permute.xlu1 %1530  ;;  %v1156_v5 = vadd.f32 %v5091_v27, %v1127_v10  ;;  %v1562_v16 = vmul.f32 0.2, %v1546_v11 }
 0x2fa   : > { %v1555_v41 = vadd.f32 %v5099_v32, %v1531_v37  ;;  %2593 = vmax.xlane.f32.xlu1 %v5410_v1 }
 0x2fb   : > { %v5415_v59 = vadd.f32 %v1189_v31, %v5402_v49  ;;  %v1172_v10 = vmul.f32 0.2, %v1156_v5  ;;  %v1578_v63 = vmax.f32 %v1546_v11, %v1562_v16 }
 0x2fc   : > { %v1571_v26 = vmul.f32 0.2, %v1555_v41 }
 0x2fd   : > { %6486 = vst [vmem:[#allocation39_spill] sm:$0xff] %v5415_v59  ;;  %1235 = vmax.xlane.f32.xlu0 %v5415_v59  ;;  %v1188_v20 = vmax.f32 %v1156_v5, %v1172_v10  ;;  %v5461_v6 = vadd.f32 %v1578_v63, %v5240_v13  ;;  %v2563_v59 = vmax.f32 %v2531_v43, %v2547_v24 }
 0x2fe   : > { %v1587_v2 = vmax.f32 %v1555_v41, %v1571_v26  ;;  %v2025_v37 = vpop.permute.xlu1 %2024  ;;  %1221 = vmax.xlane.f32.xlu1 %v5418_v4  ;;  %v2056_v41 = vmul.f32 0.2, %v2040_v58 }
 0x2ff   : > { %v5458_v11 = vadd.f32 %v1188_v20, %v5442_v35  ;;  %6490 = vst [vmem:[#allocation43_spill] sm:$0xff] %v5461_v6  ;;  %v2529_v20 = vadd.f32 %v5065_v15, %v5253_v56 }
 0x300   : > { %v5433_v31 = vadd.f32 %v1587_v2, %v5402_v49  ;;  %v2072_v26 = vmax.f32 %v2040_v58, %v2056_v41  ;;  %v2542_v2 = vmul.f32 0.2, %v2526_v57  ;;  %v2049_v58 = vadd.f32 %v5106_v42, %v2025_v37 }
 0x301   : > { %6489 = vst [vmem:[#allocation42_spill] sm:$0xff] %v5458_v11 }
 0x302   : > { %6487 = vst [vmem:[#allocation40_spill] sm:$0xff] %v5433_v31  ;;  %1633 = vmax.xlane.f32.xlu0 %v5433_v31  ;;  %1619 = vmax.xlane.f32.xlu1 %v5430_v45  ;;  %v2558_v16 = vmax.f32 %v2526_v57, %v2542_v2  ;;  %v5471_v44 = vadd.f32 %v2072_v26, %v5240_v13  ;;  %v808_v57 = vunpack.c.3.s8 %v5358_v51  ;;  %v1167_v2 = vmul.f32 0.2, %v1151_v17 }
 0x303   : > { %v5437_v40 = vpop.permute.xlu1 %2510  ;;  %v2065_v21 = vmul.f32 0.2, %v2049_v58  ;;  %v1154_v51 = vadd.f32 %v5091_v27, %v5332_v23 }
 0x304   : > { %6491 = vst [vmem:[#allocation44_spill] sm:$0xff] %v5471_v44  ;;  %v5481_v37 = vadd.f32 %v2558_v16, %v5240_v13  ;;  %v824_v56 = vcvt.s32.f32 %v808_v57  ;;  %v1183_v43 = vmax.f32 %v1151_v17, %v1167_v2 }
 0x305   : > { %v2081_v24 = vmax.f32 %v2049_v58, %v2065_v21  ;;  %v2532_v21 = vadd.f32 %v5065_v15, %v5286_v52 }
 0x306   : > { %1629 = vmax.xlane.f32.xlu0 %v5447_v33  ;;  %2599 = vmax.xlane.f32.xlu1 %v5440_v30  ;;  %v5503_v23 = vadd.f32 %v1183_v43, %v5300_v18 }
 0x308   : > { %v5455_v62 = vpop.permute.xlu1 %1121 }
 0x30a   : > { %v5463_v5 = vpop.xlane.xlu0 %1211  ;;  %1233 = vmax.xlane.f32.xlu0 %v5458_v11  ;;  %1615 = vmax.xlane.f32.xlu1 %v5461_v6 }
 0x30d   : > { %v2017_v10 = vpop.permute.xlu1 %2016 }
 0x30e   : > { %v2047_v41 = vadd.f32 %v5106_v42, %v2017_v10  ;;  %v5474_v63 = vpop.xlane.xlu0 %1609  ;;  %2109 = vmax.xlane.f32.xlu1 %v5471_v44  ;;  %v2545_v10 = vmul.f32 0.2, %v2529_v20  ;;  %v5487_v44 = vadd.f32 %v2563_v59, %v5258_v50  ;;  %v3614_v50 = vadd.f32 -1.0, %v824_v56 }
 0x30f   : > { %v1170_v59 = vmul.f32 0.2, %v1154_v51 }
 0x310   : > { %v2063_v11 = vmul.f32 0.2, %v2047_v41  ;;  %v2561_v13 = vmax.f32 %v2529_v20, %v2545_v10  ;;  %v5512_v20 = vmul.f32 30000.0, %v3614_v50 }
 0x312   : > { %v2079_v26 = vmax.f32 %v2047_v41, %v2063_v11  ;;  %v1137_v31 = vpop.permute.xlu1 %1136  ;;  %2595 = vmax.xlane.f32.xlu1 %v5481_v37  ;;  %v5484_v33 = vpop.xlane.xlu0 %2103  ;;  %v1552_v11 = vadd.f32 %v5099_v32, %v5267_v54  ;;  %v5500_v41 = vadd.f32 %v2081_v24, %v5402_v49  ;;  %v5510_v54 = vadd.f32 %v2561_v13, %v5300_v18 }
 0x313   : > { %v1550_v18 = vadd.f32 %v5099_v32, %v5360_v28 }
 0x314   : > { %v5492_v6 = vadd.f32 %v2079_v26, %v5425_v39  ;;  %v1568_v2 = vmul.f32 0.2, %v1552_v11  ;;  %v1186_v26 = vmax.f32 %v1154_v51, %v1170_v59  ;;  %v2044_v51 = vadd.f32 %v5106_v42, %v5322_v3 }
 0x315   : > { %v1566_v50 = vmul.f32 0.2, %v1550_v18 }
 0x316   : > { %2123 = vmax.xlane.f32.xlu0 %v5492_v6  ;;  %2605 = vmax.xlane.f32.xlu1 %v5487_v44  ;;  %v5505_v58 = vpop.xlane.xlu0 %1605  ;;  %v1584_v24 = vmax.f32 %v1552_v11, %v1568_v2  ;;  %v5526_v13 = vadd.f32 %v1186_v26, %v5363_v34  ;;  %v2060_v28 = vmul.f32 0.2, %v2044_v51 }
 0x317   : > { %v2029_v16 = vpop.permute.xlu1 %2028 }
 0x318   : > { %v2050_v17 = vadd.f32 %v5106_v42, %v2029_v16  ;;  %v2548_v16 = vmul.f32 0.2, %v2532_v21  ;;  %v5532_v59 = vadd.f32 %v1584_v24, %v5363_v34  ;;  %v2076_v3 = vmax.f32 %v2044_v51, %v2060_v28 }
 0x319   : > { %v1556_v51 = vadd.f32 %v5099_v32, %v5376_v25  ;;  %v2048_v25 = vadd.f32 %v5106_v42, %v5449_v46 }
 0x31a   : > { %v2066_v57 = vmul.f32 0.2, %v2050_v17  ;;  %2127 = vmax.xlane.f32.xlu0 %v5500_v41  ;;  %1223 = vmax.xlane.f32.xlu1 %v5503_v23  ;;  %v5520_v43 = vpop.xlane.xlu0 %1209  ;;  %v2564_v52 = vmax.f32 %v2532_v21, %v2548_v16 }
 0x31c   : > { %v2082_v10 = vmax.f32 %v2050_v17, %v2066_v57  ;;  %v1582_v17 = vmax.f32 %v1550_v18, %v1566_v50  ;;  %v2530_v57 = vadd.f32 %v5065_v15, %v5382_v53  ;;  %v5540_v2 = vadd.f32 %v2564_v52, %v5363_v34 }
 0x31d   : > { %v1158_v53 = vadd.f32 %v5091_v27, %v1137_v31  ;;  %v5553_v34 = vadd.f32 %v2076_v3, %v5371_v22  ;;  %v1572_v31 = vmul.f32 0.2, %v1556_v51 }
 0x31e   : > { %2601 = vmax.xlane.f32.xlu1 %v5510_v54  ;;  %v5518_v56 = vadd.f32 %v2082_v10, %v5512_v20  ;;  %v5534_v11 = vpop.xlane.xlu0 %2101  ;;  %v2546_v26 = vmul.f32 0.2, %v2530_v57  ;;  %v1155_v10 = vadd.f32 %v5091_v27, %v5455_v62  ;;  %v5548_v24 = vadd.f32 %v1582_v17, %v5371_v22  ;;  %v1527_v17 = vpop.permute.xlu1 %1526 }
 0x31f   : > { %v1174_v50 = vmul.f32 0.2, %v1158_v53  ;;  %v1554_v3 = vadd.f32 %v5099_v32, %v1527_v17  ;;  %v2533_v32 = vadd.f32 %v5065_v15, %v5350_v47 }
 0x320   : > { %6492 = vst [vmem:[#allocation45_spill] sm:$0xff] %v5518_v56  ;;  %2129 = vmax.xlane.f32.xlu0 %v5518_v56  ;;  %v2562_v16 = vmax.f32 %v2530_v57, %v2546_v26  ;;  %v1171_v18 = vmul.f32 0.2, %v1155_v10 }
 0x321   : > { %v1190_v57 = vmax.f32 %v1158_v53, %v1174_v50  ;;  %v2064_v53 = vmul.f32 0.2, %v2048_v25  ;;  %v2549_v17 = vmul.f32 0.2, %v2533_v32 }
 0x322   : > { %1229 = vmax.xlane.f32.xlu1 %v5526_v13  ;;  %v5543_v21 = vpop.xlane.xlu0 %1219  ;;  %v1187_v62 = vmax.f32 %v1155_v10, %v1171_v18  ;;  %v5561_v28 = vadd.f32 %v2562_v16, %v5371_v22  ;;  %v1588_v22 = vmax.f32 %v1556_v51, %v1572_v31  ;;  %v1570_v10 = vmul.f32 0.2, %v1554_v3  ;;  %v2507_v42 = vpop.permute.xlu1 %2506 }
 0x323   : > { %v5576_v16 = vadd.f32 %v1190_v57, %v5512_v20  ;;  %v2080_v31 = vmax.f32 %v2048_v25, %v2064_v53 }
 0x324   : > { %v5568_v26 = vadd.f32 %v1187_v62, %v5425_v39  ;;  %v1586_v62 = vmax.f32 %v1554_v3, %v1570_v10  ;;  %v5586_v51 = vadd.f32 %v1588_v22, %v5512_v20  ;;  %v2565_v22 = vmax.f32 %v2533_v32, %v2549_v17 }
 0x325   : > { %v5603_v53 = vadd.f32 %v2080_v31, %v5442_v35 }
 0x326   : > { %1627 = vmax.xlane.f32.xlu1 %v5532_v59  ;;  %v5594_v57 = vadd.f32 %v1586_v62, %v5442_v35 }
 0x327   : > { %v5555_v52 = vpop.xlane.xlu0 %1617 }
 0x32a   : > { %2607 = vmax.xlane.f32.xlu1 %v5540_v2 }
 0x32c   : > { %v2112_v27 = vpop.xlane.xlu0 %2111 }
 0x32d   : > { %v2137_v46 = vsub.f32 %v5199_v60, %v2112_v27  ;;  %v1639_v60 = vsub.f32 %v5135_v19, %v5474_v63  ;;  %v2535_v27 = vadd.f32 %v5065_v15, %v5437_v40  ;;  %v5611_v40 = vadd.f32 %v2565_v22, %v5425_v39 }
 0x32e   : > { %1623 = vmax.xlane.f32.xlu1 %v5548_v24 }
 0x32f   : > { %v2159_v47 = vmul.f32 1.442695, %v2137_v46  ;;  %v1657_v62 = vmul.f32 1.442695, %v1639_v60  ;;  %v2551_v19 = vmul.f32 0.2, %v2535_v27 }
 0x330   : > { %v5578_v18 = vpop.xlane.xlu0 %1613 }
 0x331   : > { %4287 = vpow2.f32 %v2159_v47  ;;  %v2567_v17 = vmax.f32 %v2535_v27, %v2551_v19 }
 0x332   : > { %2117 = vmax.xlane.f32.xlu1 %v5553_v34 }
 0x336   : > { %2221 = vrot.lane.b32.xlu0 %v4913_v55, %s4678_s12  ;;  %2603 = vmax.xlane.f32.xlu1 %v5561_v28 }
 0x33a   : > { %2219 = vrot.lane.b32.xlu0 %v4908_v48, %s4678_s12  ;;  %1231 = vmax.xlane.f32.xlu1 %v5568_v26 }
 0x33b   : > { %v5589_v50 = vpop.xlane.xlu0 %2107 }
 0x33e   : > { %2705 = vrot.lane.b32.xlu0 %v4908_v48, %s4679_s25  ;;  %1237 = vmax.xlane.f32.xlu1 %v5576_v16  ;;  %v2534_v48 = vadd.f32 %v5065_v15, %v2507_v42  ;;  %v1637_v42 = vsub.f32 %v5158_v0, %v5505_v58  ;;  %v2132_v58 = vsub.f32 %v5171_v14, %v5534_v11 }
 0x340   : > { %v2550_v10 = vmul.f32 0.2, %v2534_v48  ;;  %v2149_v22 = vmul.f32 1.442695, %v2132_v58 }
 0x342   : > { %1635 = vmax.xlane.f32.xlu1 %v5586_v51  ;;  %v2566_v63 = vmax.f32 %v2534_v48, %v2550_v10  ;;  %v5625_v48 = vpop.eup %4287 }
 0x344   : > { %v5617_v31 = vadd.f32 %v2566_v63, %v5442_v35 }
 0x345   : > { %v2114_v56 = vpop.xlane.xlu0 %2113 }
 0x346   : > { %v2138_v3 = vsub.f32 %v5238_v61, %v2114_v56  ;;  %1631 = vmax.xlane.f32.xlu1 %v5594_v57  ;;  %v2133_v61 = vsub.f32 %v5147_v38, %v5484_v33  ;;  %v2536_v56 = vadd.f32 %v5065_v15, %v5395_v9  ;;  %v1653_v15 = vmul.f32 1.442695, %v1637_v42 }
 0x347   : > { %v1240_v38 = vsub.f32 %v5164_v8, %v5520_v43  ;;  %v5623_v33 = vadd.f32 %v2567_v17, %v5402_v49 }
 0x348   : > { %v2161_v25 = vmul.f32 1.442695, %v2138_v3  ;;  %v2151_v32 = vmul.f32 1.442695, %v2133_v61  ;;  %v2552_v46 = vmul.f32 0.2, %v2536_v56 }
 0x349   : > { %v1257_v35 = vmul.f32 1.442695, %v1240_v38 }
 0x34a   : > { %4289 = vpow2.f32 %v2161_v25  ;;  %2125 = vmax.xlane.f32.xlu1 %v5603_v53  ;;  %v2568_v39 = vmax.f32 %v2536_v56, %v2552_v46  ;;  %v5647_v25 = vpop.xlane.xlu0 %1217  ;;  %v6494_v46 = vld [vmem:[#allocation29_spill] sm:$0xff] }
 0x34b   : > { %4291 = vpow2.f32 %v1657_v62 }
 0x34c   : > { %4293 = vpow2.f32 %v2151_v32  ;;  %v5634_v8 = vadd.f32 %v2568_v39, %v5512_v20  ;;  %v1241_v20 = vsub.f32 %v5126_v7, %v5463_v5  ;;  %v6493_v5 = vld [vmem:[#allocation27_spill] sm:$0xff] }
 0x34d   : > { %4295 = vpow2.f32 %v1653_v15  ;;  %v6495_v39 = vld [vmem:[#allocation23_spill] sm:$0xff] }
 0x34e   : > { %2609 = vmax.xlane.f32.xlu1 %v5611_v40  ;;  %4297 = vpow2.f32 %v1257_v35  ;;  %v1259_v62 = vmul.f32 1.442695, %v1241_v20  ;;  %v6497_v20 = vld [vmem:[#allocation19_spill] sm:$0xff] }
 0x352   : > { %2611 = vmax.xlane.f32.xlu1 %v5617_v31 }
 0x353   : > { %v2590_v9 = vpop.xlane.xlu1 %2589 }
 0x354   : > { %v5653_v19 = vpop.xlane.xlu0 %1227  ;;  %v2619_v35 = vsub.f32 %v6495_v39, %v2590_v9  ;;  %v6512_v9 = vld [vmem:[#allocation8_spill] sm:$0xff] }
 0x356   : > { %2613 = vmax.xlane.f32.xlu1 %v5623_v33 }
 0x357   : > { %v5628_v0 = vpop.eup %4289  ;;  %v1208_v47 = vpop.xlane.xlu1 %1207 }
 0x358   : > { %v1239_v3 = vsub.f32 %v5277_v29, %v1208_v47  ;;  %v5639_v27 = vpop.eup %4291 }
 0x359   : > { %v5645_v10 = vpop.eup %4293  ;;  %v5665_v58 = vpop.xlane.xlu0 %1625 }
 0x35a   : > { %v1255_v43 = vmul.f32 1.442695, %v1239_v3  ;;  %2615 = vmax.xlane.f32.xlu1 %v5634_v8  ;;  %v5650_v56 = vpop.eup %4295 }
 0x35b   : > { %v2100_v60 = vpop.xlane.xlu1 %2099  ;;  %v5657_v42 = vpop.eup %4297 }
 0x35c   : > { %4299 = vpow2.f32 %v1255_v43  ;;  %v2131_v14 = vsub.f32 %v5292_v36, %v2100_v60 }
 0x35d   : > { %1689 = vadd.xlane.f32.xlu0 %v5639_v27  ;;  %4301 = vpow2.f32 %v2149_v22  ;;  %v6496_v22 = vld [vmem:[#allocation30_spill] sm:$0xff] }
 0x35e   : > { %v2147_v29 = vmul.f32 1.442695, %v2131_v14 }
 0x35f   : > { %v2586_v11 = vpop.xlane.xlu1 %2585 }
 0x360   : > { %4303 = vpow2.f32 %v2147_v29  ;;  %v2617_v63 = vsub.f32 %v6493_v5, %v2586_v11  ;;  %v1643_v11 = vsub.f32 %v6497_v20, %v5555_v52 }
 0x361   : > { %2183 = vadd.xlane.f32.xlu0 %v5645_v10  ;;  %4305 = vpow2.f32 %v1259_v62  ;;  %v2637_v62 = vmul.f32 1.442695, %v2619_v35 }
 0x362   : > { %v2633_v47 = vmul.f32 1.442695, %v2617_v63  ;;  %v1665_v63 = vmul.f32 1.442695, %v1643_v11 }
 0x363   : > { %v1214_v61 = vpop.xlane.xlu1 %1213 }
 0x364   : > { %v1242_v36 = vsub.f32 %v5316_v12, %v1214_v61  ;;  %v6498_v61 = vld [vmem:[#allocation32_spill] sm:$0xff] }
 0x365   : > { %1685 = vadd.xlane.f32.xlu0 %v5650_v56 }
 0x366   : > { %v1261_v7 = vmul.f32 1.442695, %v1242_v36 }
 0x367   : > { %v1612_v32 = vpop.xlane.xlu1 %1611 }
 0x368   : > { %4307 = vpow2.f32 %v1261_v7  ;;  %v1640_v17 = vsub.f32 %v6494_v46, %v1612_v32  ;;  %v5680_v7 = vpop.xlane.xlu0 %2119 }
 0x369   : > { %v5660_v15 = vpop.eup %4299 }
 0x36a   : > { %v1659_v38 = vmul.f32 1.442695, %v1640_v17  ;;  %v1319_v12 = vpack.c.bf16 %v5657_v42, %v5660_v15  ;;  %v5669_v43 = vpop.eup %4301  ;;  %v6499_v17 = vld [vmem:[#allocation20_spill] sm:$0xff] }
 0x36b   : > { %2707 = vrot.lane.b32.xlu1 %v4913_v55, %s4679_s25  ;;  %v2106_v3 = vpop.xlane.xlu1 %2105 }
 0x36c   : > { %4309 = vpow2.f32 %v1659_v38  ;;  %v2134_v60 = vsub.f32 %v6496_v22, %v2106_v3  ;;  %3971 = vmatprep.mubr.bf16.mxu1 %v1319_v12  ;;  %v1641_v38 = vsub.f32 %v6499_v17, %v5578_v18  ;;  %v6500_v12 = vld [vmem:[#allocation33_spill] sm:$0xff]  ;;  %v5691_v3 = vpop.xlane.xlu0 %1621 }
 0x36d   : > { %v5672_v14 = vpop.eup %4303  ;;  %4311 = vpow2.f32 %v2633_v47  ;;  %v6503_v18 = vld [vmem:[#allocation21_spill] sm:$0xff] }
 0x36e   : > { %v2153_v29 = vmul.f32 1.442695, %v2134_v60  ;;  %2179 = vadd.xlane.f32.xlu0 %v5672_v14  ;;  %v5682_v46 = vpop.eup %4305  ;;  %v1661_v60 = vmul.f32 1.442695, %v1641_v38 }
 0x36f   : > { %v2592_v55 = vpop.xlane.xlu1 %2591 }
 0x370   : > { %4313 = vpow2.f32 %v2153_v29  ;;  %v2620_v36 = vsub.f32 %v6498_v61, %v2592_v55  ;;  %v6502_v29 = vld [vmem:[#allocation34_spill] sm:$0xff]  ;;  %v6504_v55 = vld [vmem:[#allocation16_spill] sm:$0xff] }
 0x371   : > { %4315 = vpow2.f32 %v2637_v62  ;;  %v2135_v62 = vsub.f32 %v6503_v18, %v5589_v50  ;;  %v6507_v50 = vld [vmem:[#allocation12_spill] sm:$0xff] }
 0x372   : > { %v2639_v5 = vmul.f32 1.442695, %v2620_v36  ;;  %v6505_v36 = vld [vmem:[#allocation13_spill] sm:$0xff] }
 0x373   : > { %v1608_v32 = vpop.xlane.xlu1 %1607 }
 0x374   : > { %4317 = vpow2.f32 %v2639_v5  ;;  %v1638_v52 = vsub.f32 %v6500_v12, %v1608_v32  ;;  %v6506_v5 = vld [vmem:[#allocation22_spill] sm:$0xff]  ;;  %v5700_v32 = vpop.xlane.xlu0 %2115 }
 0x375   : > { %v5687_v39 = vpop.eup %4307  ;;  %4319 = vpow2.f32 %v1665_v63  ;;  %v1244_v63 = vsub.f32 %v6506_v5, %v5647_v25 }
 0x376   : > { %6501 = vst [vmem:[#allocation27_spill] sm:$0xff] %v5687_v39  ;;  %v1655_v35 = vmul.f32 1.442695, %v1638_v52  ;;  %v1320_v47 = vpack.c.bf16 %v5687_v39, %v5682_v46  ;;  %v2155_v52 = vmul.f32 1.442695, %v2135_v62 }
 0x377   : > { %v2588_v22 = vpop.xlane.xlu1 %2587  ;;  %v1265_v25 = vmul.f32 1.442695, %v1244_v63 }
 0x378   : > { %4321 = vpow2.f32 %v1655_v35  ;;  %v2618_v20 = vsub.f32 %v6502_v29, %v2588_v22  ;;  %3972 = vmatmul.mubr.bf16.vlgmr.msra.gmra.mxu1 %v1320_v47  ;;  %v5711_v47 = vpop.xlane.xlu0 %2121 }
 0x379   : > { %v4310_v11 = vpop.eup %4309  ;;  %4020 = vmatpush3.bf16.msra.mxu1 %v6504_v55  ;;  %4323 = vpow2.f32 %v1661_v60  ;;  %v6508_v60 = vld [vmem:[#allocation38_spill] sm:$0xff]  ;;  %v6509_v55 = vld [vmem:[#allocation9_spill] sm:$0xff] }
 0x37a   : > { %v2635_v61 = vmul.f32 1.442695, %v2618_v20  ;;  %4021 = vmatprep.subr.bf16.mxu1 %v6505_v36  ;;  %1691 = vadd.xlane.f32.xlu0 %v4310_v11  ;;  %v5702_v38 = vpop.eup %4311 }
 0x37b   : > { %v2598_v17 = vpop.xlane.xlu1 %2597 }
 0x37c   : > { %4325 = vpow2.f32 %v2635_v61  ;;  %v6514_v61 = vld [vmem:[#allocation6_spill] sm:$0xff] }
 0x37d   : > { %v5704_v12 = vpop.eup %4313  ;;  %4022 = vmatpush3.bf16.msra.mxu1 %v6505_v36  ;;  %4327 = vpow2.f32 %v2155_v52  ;;  %v6510_v36 = vld [vmem:[#allocation18_spill] sm:$0xff] }
 0x37e   : > { %4023 = vmatprep.subr.bf16.mxu1 %v6507_v50  ;;  %2665 = vadd.xlane.f32.xlu0 %v5702_v38  ;;  %v5713_v29 = vpop.eup %4315  ;;  %v1245_v5 = vsub.f32 %v6510_v36, %v5543_v21  ;;  %4329 = vpow2.f32 %v1265_v25 }
 0x37f   : > { %v1216_v22 = vpop.xlane.xlu1 %1215 }
 0x380   : > { %v1243_v20 = vsub.f32 %v6508_v60, %v1216_v22  ;;  %v6511_v60 = vld [vmem:[#allocation37_spill] sm:$0xff]  ;;  %v1267_v25 = vmul.f32 1.442695, %v1245_v5 }
 0x381   : > { %v5716_v18 = vpop.eup %4317  ;;  %4024 = vmatpush3.bf16.msra.mxu1 %v6507_v50  ;;  %v5728_v50 = vpop.xlane.xlu0 %1225 }
 0x382   : > { %v1263_v62 = vmul.f32 1.442695, %v1243_v20  ;;  %4025 = vmatprep.subr.bf16.mxu1 %v6509_v55  ;;  %2669 = vadd.xlane.f32.xlu0 %v5713_v29  ;;  %v5725_v49 = vpop.eup %4319  ;;  %v2623_v20 = vsub.f32 %v6511_v60, %v2598_v17  ;;  %v6513_v17 = vld [vmem:[#allocation28_spill] sm:$0xff] }
 0x383   : > { %v2594_v63 = vpop.xlane.xlu1 %2593 }
 0x384   : > { %4331 = vpow2.f32 %v1263_v62  ;;  %v2621_v52 = vsub.f32 %v5410_v1, %v2594_v63  ;;  %v1718_v62 = vpack.c.bf16 %v4310_v11, %v5639_v27  ;;  %v6515_v27 = vld [vmem:[#allocation17_spill] sm:$0xff] }
 0x385   : > { %v4322_v22 = vpop.eup %4321  ;;  %4026 = vmatpush3.bf16.msra.mxu1 %v6509_v55  ;;  %v1645_v55 = vsub.f32 %v6513_v17, %v5691_v3 }
 0x386   : > { %v2641_v35 = vmul.f32 1.442695, %v2621_v52  ;;  %4027 = vmatprep.subr.bf16.mxu1 %v6512_v9  ;;  %1697 = vadd.xlane.f32.xlu0 %v5725_v49  ;;  %v1717_v21 = vpack.c.bf16 %v4322_v22, %v5650_v56  ;;  %v5737_v63 = vpop.eup %4323  ;;  %v2645_v52 = vmul.f32 1.442695, %v2623_v20  ;;  %v5741_v60 = vpop.xlane.xlu0 %1235 }
 0x387   : > { %v1222_v36 = vpop.xlane.xlu1 %1221  ;;  %v1669_v20 = vmul.f32 1.442695, %v1645_v55  ;;  %v6520_v55 = vld [vmem:[#allocation31_spill] sm:$0xff] }
 0x388   : > { %4333 = vpow2.f32 %v2641_v35  ;;  %v1246_v1 = vsub.f32 %v5418_v4, %v1222_v36  ;;  %4003 = vmatprep.mubr.bf16.mxu0 %v1717_v21  ;;  %v6516_v4 = vld [vmem:[#allocation15_spill] sm:$0xff]  ;;  %v6517_v35 = vld [vmem:[#allocation25_spill] sm:$0xff] }
 0x389   : > { %4028 = vmatpush3.bf16.msra.mxu1 %v6512_v9  ;;  %4004 = vmatmul.mubr.bf16.vlgmr.msra.gmra.mxu0 %v1718_v62  ;;  %v5744_v56 = vpop.eup %4325  ;;  %4335 = vpow2.f32 %v1267_v25  ;;  %v1647_v9 = vsub.f32 %v6517_v35, %v5665_v58  ;;  %v6518_v62 = vld [vmem:[#allocation14_spill] sm:$0xff] }
 0x38a   : > { %v1269_v5 = vmul.f32 1.442695, %v1246_v1  ;;  %4029 = vmatprep.subr.bf16.mxu1 %v6514_v61  ;;  %4052 = vmatpush3.bf16.msra.mxu0 %v6515_v27  ;;  %v5755_v21 = vpop.eup %4327 }
 0x38b   : > { %1693 = vadd.xlane.f32.xlu0 %v5737_v63  ;;  %4053 = vmatprep.subr.bf16.mxu0 %v6516_v4  ;;  %v1620_v11 = vpop.xlane.xlu1 %1619  ;;  %v5759_v36 = vpop.xlane.xlu0 %1633  ;;  %v1673_v58 = vmul.f32 1.442695, %v1647_v9  ;;  %v6523_v9 = vld [vmem:[#allocation43_spill] sm:$0xff] }
 0x38c   : > { %4337 = vpow2.f32 %v1269_v5  ;;  %v1644_v25 = vsub.f32 %v5430_v45, %v1620_v11  ;;  %v5763_v17 = vpop.eup %4329  ;;  %v6522_v11 = vld [vmem:[#allocation10_spill] sm:$0xff] }
 0x38d   : > { %4339 = vpow2.f32 %v2645_v52  ;;  %4030 = vmatpush3.bf16.msra.mxu1 %v6514_v61  ;;  %6519 = vst [vmem:[#allocation29_spill] sm:$0xff] %v5763_v17  ;;  %v2139_v52 = vsub.f32 %v6520_v55, %v5700_v32 }
 0x38e   : > { %4054 = vmatpush3.bf16.msra.mxu0 %v6516_v4  ;;  %4341 = vpow2.f32 %v1669_v20  ;;  %v1667_v5 = vmul.f32 1.442695, %v1644_v25  ;;  %v6524_v20 = vld [vmem:[#allocation26_spill] sm:$0xff] }
 0x38f   : > { %2187 = vadd.xlane.f32.xlu0 %v5755_v21  ;;  %4055 = vmatprep.subr.bf16.mxu0 %v6518_v62  ;;  %v2600_v1 = vpop.xlane.xlu1 %2599  ;;  %4343 = vpow2.f32 %v1673_v58  ;;  %v2163_v32 = vmul.f32 1.442695, %v2139_v52  ;;  %v2141_v25 = vsub.f32 %v6524_v20, %v5680_v7  ;;  %v6527_v52 = vld [vmem:[#allocation44_spill] sm:$0xff] }
 0x390   : > { %2185 = vadd.xlane.f32.xlu1 %v5704_v12  ;;  %v2624_v61 = vsub.f32 %v5440_v30, %v2600_v1 }
 0x391   : > { %v5769_v45 = vpop.eup %4331 }
 0x392   : > { %6521 = vst [vmem:[#allocation23_spill] sm:$0xff] %v5769_v45  ;;  %v2647_v27 = vmul.f32 1.442695, %v2624_v61  ;;  %4056 = vmatpush3.bf16.msra.mxu0 %v6518_v62  ;;  %v1321_v4 = vpack.c.bf16 %v5763_v17, %v5769_v45  ;;  %v5781_v62 = vpop.xlane.xlu0 %1629  ;;  %v6525_v61 = vld [vmem:[#allocation11_spill] sm:$0xff] }
 0x393   : > { %2191 = vadd.xlane.f32.xlu0 %v5625_v48  ;;  %4057 = vmatprep.subr.bf16.mxu0 %v6522_v11  ;;  %v1616_v35 = vpop.xlane.xlu1 %1615 }
 0x394   : > { %1687 = vadd.xlane.f32.xlu1 %v4322_v22  ;;  %v1642_v30 = vsub.f32 %v6523_v9, %v1616_v35  ;;  %3975 = vmatprep.mubr.bf16.mxu1 %v1321_v4  ;;  %4345 = vpow2.f32 %v2647_v27  ;;  %v2167_v35 = vmul.f32 1.442695, %v2141_v25 }
 0x395   : > { %v5777_v1 = vpop.eup %4333  ;;  %4347 = vpow2.f32 %v1667_v5 }
 0x396   : > { %v1663_v55 = vmul.f32 1.442695, %v1642_v30  ;;  %4058 = vmatpush3.bf16.msra.mxu0 %v6522_v11  ;;  %v5786_v58 = vpop.eup %4335  ;;  %4349 = vpow2.f32 %v2163_v32  ;;  %v5797_v9 = vpop.xlane.xlu0 %1233  ;;  %v6529_v30 = vld [vmem:[#allocation7_spill] sm:$0xff] }
 0x397   : > { %4059 = vmatprep.subr.bf16.mxu0 %v6525_v61  ;;  %2673 = vadd.xlane.f32.xlu0 %v5777_v1  ;;  %v2110_v22 = vpop.xlane.xlu1 %2109  ;;  %6526 = vst [vmem:[#allocation30_spill] sm:$0xff] %v5786_v58 }
 0x398   : > { %2181 = vadd.xlane.f32.xlu1 %v5669_v43  ;;  %v2136_v4 = vsub.f32 %v6527_v52, %v2110_v22  ;;  %4351 = vpow2.f32 %v1663_v55  ;;  %v6530_v52 = vld [vmem:[#allocation36_spill] sm:$0xff] }
 0x399   : > { %v5790_v7 = vpop.eup %4337 }
 0x39a   : > { %6528 = vst [vmem:[#allocation19_spill] sm:$0xff] %v5790_v7  ;;  %v5792_v5 = vpop.eup %4339  ;;  %v2157_v27 = vmul.f32 1.442695, %v2136_v4  ;;  %4060 = vmatpush3.bf16.msra.mxu0 %v6525_v61  ;;  %v1322_v11 = vpack.c.bf16 %v5790_v7, %v5786_v58  ;;  %v1248_v4 = vsub.f32 %v6530_v52, %v5728_v50  ;;  %v6531_v52 = vld [vmem:[#allocation24_spill] sm:$0xff] }
 0x39b   : > { %4061 = vmatprep.subr.bf16.mxu0 %v6529_v30  ;;  %2677 = vadd.xlane.f32.xlu0 %v5792_v5  ;;  %v2596_v32 = vpop.xlane.xlu1 %2595  ;;  %v5803_v25 = vpop.eup %4341  ;;  %v1249_v7 = vsub.f32 %v6531_v52, %v5653_v19 }
 0x39c   : > { %4353 = vpow2.f32 %v2157_v27  ;;  %2667 = vadd.xlane.f32.xlu1 %v5744_v56  ;;  %v2622_v20 = vsub.f32 %v5481_v37, %v2596_v32  ;;  %3976 = vmatmul.mubr.bf16.gmra.mxu1 %v1322_v11  ;;  %v5812_v27 = vpop.eup %4343  ;;  %v1273_v32 = vmul.f32 1.442695, %v1248_v4 }
 0x39d   : > { %4355 = vpow2.f32 %v2167_v35 }
 0x39e   : > { %v2643_v55 = vmul.f32 1.442695, %v2622_v20  ;;  %4062 = vmatpush3.bf16.msra.mxu0 %v6529_v30 }
 0x39f   : > { %1701 = vadd.xlane.f32.xlu0 %v5803_v25  ;;  %v5807_v61 = vpop.xlane.xlu0 %2123  ;;  %v2606_v22 = vpop.xlane.xlu1 %2605 }
 0x3a0   : > { %4357 = vpow2.f32 %v2643_v55  ;;  %2671 = vadd.xlane.f32.xlu1 %v5716_v18  ;;  %v2627_v58 = vsub.f32 %v5487_v44, %v2606_v22  ;;  %v1275_v44 = vmul.f32 1.442695, %v1249_v7 }
 0x3a1   : > { %v5814_v37 = vpop.eup %4345  ;;  %4359 = vpow2.f32 %v1273_v32 }
 0x3a2   : > { %v4348_v35 = vpop.eup %4347  ;;  %v2653_v32 = vmul.f32 1.442695, %v2627_v58 }
 0x3a3   : > { %1705 = vadd.xlane.f32.xlu0 %v5812_v27  ;;  %v1224_v11 = vpop.xlane.xlu1 %1223  ;;  %v5820_v3 = vpop.eup %4349  ;;  %v1720_v4 = vpack.c.bf16 %v4348_v35, %v5725_v49  ;;  %v6532_v49 = vld [vmem:[#allocation41_spill] sm:$0xff] }
 0x3a4   : > { %1699 = vadd.xlane.f32.xlu1 %v4348_v35  ;;  %v1247_v20 = vsub.f32 %v5503_v23, %v1224_v11  ;;  %v5822_v50 = vpop.xlane.xlu0 %2127 }
 0x3a5   : > { %v4352_v55 = vpop.eup %4351 }
 0x3a6   : > { %v1271_v17 = vmul.f32 1.442695, %v1247_v20  ;;  %v1719_v30 = vpack.c.bf16 %v4352_v55, %v5737_v63 }
 0x3a7   : > { %2195 = vadd.xlane.f32.xlu0 %v5820_v3  ;;  %v2602_v39 = vpop.xlane.xlu1 %2601 }
 0x3a8   : > { %1695 = vadd.xlane.f32.xlu1 %v4352_v55  ;;  %v2625_v23 = vsub.f32 %v5510_v54, %v2602_v39  ;;  %4361 = vpow2.f32 %v1271_v17  ;;  %4007 = vmatprep.mubr.bf16.mxu0 %v1719_v30  ;;  %v1649_v39 = vsub.f32 %v6532_v49, %v5781_v62  ;;  %v6533_v55 = vld [vmem:[#allocation40_spill] sm:$0xff] }
 0x3a9   : > { %v5831_v11 = vpop.eup %4353  ;;  %v5833_v45 = vpop.xlane.xlu0 %2129  ;;  %4008 = vmatmul.mubr.bf16.gmra.mxu0 %v1720_v4  ;;  %v1651_v62 = vsub.f32 %v6533_v55, %v5759_v36 }
 0x3aa   : > { %v5835_v19 = vpop.eup %4355  ;;  %v2649_v22 = vmul.f32 1.442695, %v2625_v23  ;;  %v2213_v63 = vpack.c.bf16 %v5831_v11, %v5755_v21  ;;  %v1677_v52 = vmul.f32 1.442695, %v1649_v39  ;;  %v2143_v23 = vsub.f32 %v5492_v6, %v5807_v61 }
 0x3ab   : > { %2199 = vadd.xlane.f32.xlu0 %v5835_v19  ;;  %v1230_v54 = vpop.xlane.xlu1 %1229 }
 0x3ac   : > { %4363 = vpow2.f32 %v2649_v22  ;;  %2189 = vadd.xlane.f32.xlu1 %v5831_v11  ;;  %v1250_v17 = vsub.f32 %v5526_v13, %v1230_v54  ;;  %v1681_v22 = vmul.f32 1.442695, %v1651_v62  ;;  %v2171_v54 = vmul.f32 1.442695, %v2143_v23  ;;  %v6535_v23 = vld [vmem:[#allocation42_spill] sm:$0xff] }
 0x3ad   : > { %v5844_v35 = vpop.eup %4357  ;;  %v2222_v7 = vpop.permute.xlu0 %2221  ;;  %4365 = vpow2.f32 %v1275_v44 }
 0x3ae   : > { %v1277_v30 = vmul.f32 1.442695, %v1250_v17  ;;  %4031 = vmatprep.subr.bf16.mxu1 %v2222_v7  ;;  %v2699_v58 = vpack.c.bf16 %v5844_v35, %v5777_v1  ;;  %4367 = vpow2.f32 %v2653_v32  ;;  %v5857_v32 = vpop.eup %4359 }
 0x3af   : > { %4032 = vmatpush3.bf16.msra.mxu1 %v2222_v7  ;;  %v1628_v20 = vpop.xlane.xlu1 %1627 }
 0x3b0   : > { %4369 = vpow2.f32 %v1277_v30  ;;  %2193 = vadd.xlane.f32.xlu1 %v5628_v0  ;;  %v1648_v4 = vsub.f32 %v5532_v59, %v1628_v20  ;;  %v2145_v59 = vsub.f32 %v5500_v41, %v5822_v50 }
 0x3b1   : > { %v2220_v13 = vpop.permute.xlu0 %2219  ;;  %4371 = vpow2.f32 %v1677_v52 }
 0x3b2   : > { %4033 = vmatprep.subr.bf16.mxu1 %v2220_v13  ;;  %v1675_v49 = vmul.f32 1.442695, %v1648_v4  ;;  %4373 = vpow2.f32 %v1681_v22  ;;  %v2175_v62 = vmul.f32 1.442695, %v2145_v59  ;;  %v1252_v4 = vsub.f32 %v6535_v23, %v5797_v9 }
 0x3b3   : > { %4034 = vmatpush3.bf16.msra.mxu1 %v2220_v13  ;;  %v5854_v44 = vpop.xlane.xlu1 %2607  ;;  %4375 = vpow2.f32 %v2171_v54 }
 0x3b4   : > { %2675 = vadd.xlane.f32.xlu1 %v5844_v35  ;;  %4377 = vpow2.f32 %v1675_v49  ;;  %v6544_v35 = vld [vmem:[#allocation23_spill] sm:$0xff] }
 0x3b5   : > { %v5859_v36 = vpop.eup %4361 }
 0x3b6   : > { %v1323_v6 = vpack.c.bf16 %v5857_v32, %v5859_v36 }
 0x3b7   : > { %v1624_v39 = vpop.xlane.xlu1 %1623 }
 0x3b8   : > { %2679 = vadd.xlane.f32.xlu1 %v5814_v37  ;;  %v1646_v61 = vsub.f32 %v5548_v24, %v1624_v39  ;;  %3979 = vmatprep.mubr.bf16.mxu1 %v1323_v6  ;;  %v6534_v24 = vld [vmem:[#allocation35_spill] sm:$0xff] }
 0x3b9   : > { %v5867_v17 = vpop.eup %4363  ;;  %v2142_v52 = vsub.f32 %v6534_v24, %v5711_v47  ;;  %v6536_v39 = vld [vmem:[#allocation39_spill] sm:$0xff]  ;;  %v1281_v47 = vmul.f32 1.442695, %v1252_v4 }
 0x3ba   : > { %v1671_v7 = vmul.f32 1.442695, %v1646_v61  ;;  %2681 = vadd.xlane.f32.xlu0 %v5867_v17  ;;  %v5870_v30 = vpop.eup %4365  ;;  %v1253_v6 = vsub.f32 %v6536_v39, %v5741_v60 }
 0x3bb   : > { %v2118_v20 = vpop.xlane.xlu1 %2117  ;;  %v5872_v55 = vpop.eup %4367 }
 0x3bc   : > { %4379 = vpow2.f32 %v1671_v7  ;;  %v2140_v41 = vsub.f32 %v5553_v34, %v2118_v20  ;;  %v2169_v34 = vmul.f32 1.442695, %v2142_v52  ;;  %v1283_v20 = vmul.f32 1.442695, %v1253_v6 }
 0x3bd   : > { %v5875_v50 = vpop.eup %4369  ;;  %4381 = vpow2.f32 %v2175_v62 }
 0x3be   : > { %2685 = vadd.xlane.f32.xlu0 %v5872_v55  ;;  %v1324_v13 = vpack.c.bf16 %v5875_v50, %v5870_v30  ;;  %v2165_v54 = vmul.f32 1.442695, %v2140_v41  ;;  %v5884_v49 = vpop.eup %4371 }
 0x3bf   : > { %v2604_v22 = vpop.xlane.xlu1 %2603  ;;  %v5891_v9 = vpop.eup %4373 }
 0x3c0   : > { %3980 = vmatmul.mubr.bf16.gmra.mxu1 %v1324_v13  ;;  %v2626_v59 = vsub.f32 %v5561_v28, %v2604_v22  ;;  %4383 = vpow2.f32 %v2165_v54  ;;  %v5894_v41 = vpop.eup %4375  ;;  %v2628_v28 = vsub.f32 %v5540_v2, %v5854_v44 }
 0x3c1   : > { %4385 = vpow2.f32 %v2169_v34  ;;  %v4378_v52 = vpop.eup %4377 }
 0x3c2   : > { %1709 = vadd.xlane.f32.xlu0 %v5884_v49  ;;  %4387 = vpow2.f32 %v1281_v47  ;;  %v2651_v60 = vmul.f32 1.442695, %v2626_v59  ;;  %v1722_v54 = vpack.c.bf16 %v4378_v52, %v5812_v27  ;;  %v2655_v34 = vmul.f32 1.442695, %v2628_v28 }
 0x3c3   : > { %v1232_v61 = vpop.xlane.xlu1 %1231 }
 0x3c4   : > { %v1251_v7 = vsub.f32 %v5568_v26, %v1232_v61 }
 0x3c6   : > { %v1279_v62 = vmul.f32 1.442695, %v1251_v7  ;;  %1713 = vadd.xlane.f32.xlu0 %v5891_v9 }
 0x3c7   : > { %v1238_v24 = vpop.xlane.xlu1 %1237 }
 0x3c8   : > { %4389 = vpow2.f32 %v1279_v62  ;;  %v1254_v13 = vsub.f32 %v5576_v16, %v1238_v24 }
 0x3c9   : > { %v4380_v26 = vpop.eup %4379  ;;  %4391 = vpow2.f32 %v1283_v20 }
 0x3ca   : > { %v1285_v23 = vmul.f32 1.442695, %v1254_v13  ;;  %2203 = vadd.xlane.f32.xlu0 %v5894_v41  ;;  %1703 = vadd.xlane.f32.xlu1 %v4380_v26  ;;  %v1721_v4 = vpack.c.bf16 %v4380_v26, %v5803_v25  ;;  %4393 = vpow2.f32 %v2651_v60  ;;  %v5903_v2 = vpop.eup %4381 }
 0x3cb   : > { %v1636_v22 = vpop.xlane.xlu1 %1635 }
 0x3cc   : > { %4395 = vpow2.f32 %v1285_v23  ;;  %v1652_v39 = vsub.f32 %v5586_v51, %v1636_v22  ;;  %4011 = vmatprep.mubr.bf16.mxu0 %v1721_v4 }
 0x3cd   : > { %4012 = vmatmul.mubr.bf16.gmra.mxu0 %v1722_v54  ;;  %4397 = vpow2.f32 %v2655_v34  ;;  %v5907_v6 = vpop.eup %4383 }
 0x3ce   : > { %2207 = vadd.xlane.f32.xlu0 %v5903_v2  ;;  %1707 = vadd.xlane.f32.xlu1 %v4378_v52  ;;  %v1683_v16 = vmul.f32 1.442695, %v1652_v39  ;;  %v5910_v27 = vpop.eup %4385  ;;  %v6537_v52 = vld [vmem:[#allocation45_spill] sm:$0xff] }
 0x3cf   : > { %v1632_v44 = vpop.xlane.xlu1 %1631  ;;  %v5912_v59 = vpop.eup %4387  ;;  %v2146_v28 = vsub.f32 %v6537_v52, %v5833_v45 }
 0x3d0   : > { %v1650_v25 = vsub.f32 %v5594_v57, %v1632_v44  ;;  %4399 = vpow2.f32 %v1683_v16 }
 0x3d1   : > { %v2177_v22 = vmul.f32 1.442695, %v2146_v28 }
 0x3d2   : > { %v1679_v47 = vmul.f32 1.442695, %v1650_v25  ;;  %2197 = vadd.xlane.f32.xlu1 %v5907_v6 }
 0x3d3   : > { %v2126_v51 = vpop.xlane.xlu1 %2125 }
 0x3d4   : > { %4401 = vpow2.f32 %v1679_v47  ;;  %v2144_v61 = vsub.f32 %v5603_v53, %v2126_v51 }
 0x3d5   : > { %v5915_v7 = vpop.eup %4389 }
 0x3d6   : > { %2201 = vadd.xlane.f32.xlu1 %v5910_v27  ;;  %v1325_v57 = vpack.c.bf16 %v5912_v59, %v5915_v7  ;;  %v5920_v20 = vpop.eup %4391  ;;  %v2173_v62 = vmul.f32 1.442695, %v2144_v61 }
 0x3d7   : > { %v2610_v60 = vpop.xlane.xlu1 %2609  ;;  %v5922_v24 = vpop.eup %4393 }
 0x3d8   : > { %v2629_v13 = vsub.f32 %v5611_v40, %v2610_v60  ;;  %3983 = vmatprep.mubr.bf16.mxu1 %v1325_v57  ;;  %4403 = vpow2.f32 %v2173_v62  ;;  %v6538_v40 = vpack.c.bf16 %v5669_v43, %v5672_v14  ;;  %v6539_v14 = vpack.c.bf16 %v5704_v12, %v5645_v10  ;;  %v2706_v62 = vpop.permute.xlu0 %2705 }
 0x3d9   : > { %v5927_v53 = vpop.eup %4395  ;;  %v2215_v10 = vpack.c.bf16 %v5907_v6, %v5820_v3  ;;  %v6541_v12 = vpack.c.bf16 %v5628_v0, %v5625_v48  ;;  %v2216_v48 = vpack.c.bf16 %v5910_v27, %v5835_v19 }
 0x3da   : > { %v2657_v26 = vmul.f32 1.442695, %v2629_v13  ;;  %2683 = vadd.xlane.f32.xlu1 %v5922_v24  ;;  %v1326_v23 = vpack.c.bf16 %v5927_v53, %v5920_v20  ;;  %v5933_v34 = vpop.eup %4397 }
 0x3db   : > { %v2612_v4 = vpop.xlane.xlu1 %2611 }
 0x3dc   : > { %4405 = vpow2.f32 %v2657_v26  ;;  %v2630_v54 = vsub.f32 %v5617_v31, %v2612_v4  ;;  %3984 = vmatmul.mubr.bf16.gmra.mxu1 %v1326_v23 }
 0x3dd   : > { %4035 = vmatprep.mubr.bf16.mxu1 %v6538_v40  ;;  %v4400_v16 = vpop.eup %4399  ;;  %4407 = vpow2.f32 %v2177_v22 }
 0x3de   : > { %2687 = vadd.xlane.f32.xlu1 %v5933_v34  ;;  %v2659_v45 = vmul.f32 1.442695, %v2630_v54  ;;  %v1724_v61 = vpack.c.bf16 %v4400_v16, %v5891_v9 }
 0x3df   : > { %v2614_v39 = vpop.xlane.xlu1 %2613 }
 0x3e0   : > { %v2631_v44 = vsub.f32 %v5623_v33, %v2614_v39  ;;  %4409 = vpow2.f32 %v2659_v45 }
 0x3e1   : > { %v4402_v25 = vpop.eup %4401 }
 0x3e2   : > { %v2661_v47 = vmul.f32 1.442695, %v2631_v44  ;;  %1711 = vadd.xlane.f32.xlu1 %v4402_v25  ;;  %v1723_v31 = vpack.c.bf16 %v4402_v25, %v5884_v49  ;;  %v6540_v49 = vpack.c.bf16 %v5744_v56, %v5702_v38  ;;  %v6542_v56 = vpack.c.bf16 %v5716_v18, %v5713_v29 }
 0x3e3   : > { %v2616_v51 = vpop.xlane.xlu1 %2615  ;;  %v2701_v29 = vpack.c.bf16 %v5922_v24, %v5867_v17  ;;  %v6543_v18 = vpack.c.bf16 %v5814_v37, %v5792_v5  ;;  %v6546_v37 = vld [vmem:[#allocation30_spill] sm:$0xff] }
 0x3e4   : > { %4411 = vpow2.f32 %v2661_v47  ;;  %v2632_v43 = vsub.f32 %v5634_v8, %v2616_v51  ;;  %4015 = vmatprep.mubr.bf16.mxu0 %v1723_v31  ;;  %4036 = vmatmul.mubr.bf16.vlgmr.msra.gmra.mxu1 %v6539_v14 }
 0x3e5   : > { %4016 = vmatmul.mubr.bf16.gmra.mxu0 %v1724_v61  ;;  %4039 = vmatprep.mubr.bf16.mxu1 %v2213_v63  ;;  %v4404_v57 = vpop.eup %4403 }
 0x3e6   : > { %v2663_v33 = vmul.f32 1.442695, %v2632_v43  ;;  %1715 = vadd.xlane.f32.xlu1 %v4400_v16  ;;  %4067 = vmatprep.mubr.bf16.mxu0 %v6540_v49  ;;  %v2217_v0 = vpack.c.bf16 %v4404_v57, %v5894_v41  ;;  %v1690_v63 = vpop.xlane.xlu0 %1689  ;;  %v6548_v41 = vld [vmem:[#allocation19_spill] sm:$0xff] }
 0x3e7   : > { %v2708_v9 = vpop.permute.xlu1 %2707 }
 0x3e8   : > { %4413 = vpow2.f32 %v2663_v33  ;;  %4063 = vmatprep.subr.bf16.mxu0 %v2708_v9 }
 0x3e9   : > { %v4406_v8 = vpop.eup %4405  ;;  %4064 = vmatpush3.bf16.msra.mxu0 %v2708_v9  ;;  %4415 = vrcp.f32 %v1690_v63 }
 0x3ea   : > { %2205 = vadd.xlane.f32.xlu1 %v4404_v57  ;;  %2689 = vadd.xlane.f32.xlu0 %v4406_v8  ;;  %v4408_v21 = vpop.eup %4407  ;;  %v5975_v19 = vpop.xlane.xlu0 %2183 }
 0x3eb   : > { %4065 = vmatprep.subr.bf16.mxu0 %v2706_v62  ;;  %v2218_v1 = vpack.c.bf16 %v4408_v21, %v5903_v2 }
 0x3ec   : > { %4040 = vmatmul.mubr.bf16.gmra.mxu1 %v6541_v12 }
 0x3ed   : > { %4043 = vmatprep.mubr.bf16.mxu1 %v2215_v10  ;;  %4066 = vmatpush3.bf16.msra.mxu0 %v2706_v62  ;;  %v4410_v38 = vpop.eup %4409 }
 0x3ee   : > { %2209 = vadd.xlane.f32.xlu1 %v4408_v21  ;;  %v2703_v17 = vpack.c.bf16 %v4410_v38, %v4406_v8  ;;  %v1686_v5 = vpop.xlane.xlu0 %1685 }
 0x3ef   : > { %4417 = vrcp.f32 %v1686_v5 }
 0x3f0   : > { %4068 = vmatmul.mubr.bf16.vlgmr.msra.gmra.mxu0 %v6542_v56 }
 0x3f1   : > { %v4412_v11 = vpop.eup %4411  ;;  %4071 = vmatprep.mubr.bf16.mxu0 %v2699_v58  ;;  %v2702_v58 = vpack.c.bf16 %v5933_v34, %v5872_v55 }
 0x3f2   : > { %2691 = vadd.xlane.f32.xlu1 %v4410_v38  ;;  %2693 = vadd.xlane.f32.xlu0 %v4412_v11 }
 0x3f4   : > { %4044 = vmatmul.mubr.bf16.gmra.mxu1 %v2216_v48 }
 0x3f5   : > { %v4414_v3 = vpop.eup %4413  ;;  %4047 = vmatprep.mubr.bf16.mxu1 %v2217_v0 }
 0x3f6   : > { %1287 = vadd.xlane.f32.xlu0 %v5660_v15  ;;  %2695 = vadd.xlane.f32.xlu1 %v4414_v3  ;;  %v6545_v15 = vld [vmem:[#allocation27_spill] sm:$0xff]  ;;  %v2704_v2 = vpack.c.bf16 %v4414_v3, %v4412_v11  ;;  %v4416_v54 = vpop.eup %4415 }
 0x3f8   : > { %4072 = vmatmul.mubr.bf16.gmra.mxu0 %v6543_v18 }
 0x3f9   : > { %4075 = vmatprep.mubr.bf16.mxu0 %v2701_v29 }
 0x3fa   : > { %1291 = vadd.xlane.f32.xlu0 %v5682_v46  ;;  %1289 = vadd.xlane.f32.xlu1 %v5657_v42  ;;  %v6547_v46 = vld [vmem:[#allocation29_spill] sm:$0xff]  ;;  %v5983_v42 = vpop.xlane.xlu0 %2179 }
 0x3fc   : > { %4048 = vmatmul.mubr.bf16.gmra.mxu1 %v2218_v1  ;;  %v4418_v39 = vpop.eup %4417 }
 0x3fe   : > { %1295 = vadd.xlane.f32.xlu0 %v6544_v35  ;;  %1293 = vadd.xlane.f32.xlu1 %v6545_v15 }
 0x400   : > { %4076 = vmatmul.mubr.bf16.gmra.mxu0 %v2702_v58 }
 0x401   : > { %4079 = vmatprep.mubr.bf16.mxu0 %v2703_v17 }
 0x402   : > { %1299 = vadd.xlane.f32.xlu0 %v6546_v37  ;;  %1297 = vadd.xlane.f32.xlu1 %v6547_v46 }
 0x403   : > { %v1692_v6 = vpop.xlane.xlu0 %1691 }
 0x404   : > { %4419 = vrcp.f32 %v1692_v6 }
 0x406   : > { %1303 = vadd.xlane.f32.xlu0 %v5859_v36  ;;  %1301 = vadd.xlane.f32.xlu1 %v6548_v41 }
 0x407   : > { %v5991_v55 = vpop.xlane.xlu0 %2665 }
 0x408   : > { %4080 = vmatmul.mubr.bf16.gmra.mxu0 %v2704_v2 }
 0x40a   : > { %1307 = vadd.xlane.f32.xlu0 %v5870_v30  ;;  %1305 = vadd.xlane.f32.xlu1 %v5857_v32 }
 0x40b   : > { %v5995_v36 = vpop.xlane.xlu0 %2669 }
 0x40e   : > { %1311 = vadd.xlane.f32.xlu0 %v5915_v7  ;;  %1309 = vadd.xlane.f32.xlu1 %v5875_v50 }
 0x40f   : > { %v1698_v60 = vpop.xlane.xlu0 %1697 }
 0x411   : > { %v4420_v31 = vpop.eup %4419 }
 0x412   : > { %1315 = vadd.xlane.f32.xlu0 %v5920_v20  ;;  %1313 = vadd.xlane.f32.xlu1 %v5912_v59 }
 0x414   : > { %v1694_v24 = vpop.xlane.xlu0 %1693 }
 0x416   : > { %1317 = vadd.xlane.f32.xlu1 %v5927_v53 }
 0x418   : > { %v6004_v50 = vpop.xlane.xlu0 %2187 }
 0x419   : > { %v5998_v27 = vpop.xlane.xlu1 %2185 }
 0x41c   : > { %v6008_v20 = vpop.xlane.xlu0 %2191 }
 0x41d   : > { %v1688_v30 = vpop.xlane.xlu1 %1687 }
 0x41e   : > { %4421 = vrcp.f32 %v1688_v30 }
 0x41f   : > { %4423 = vrcp.f32 %v1698_v60 }
 0x420   : > { %v6010_v28 = vpop.xlane.xlu0 %2673  ;;  %4425 = vrcp.f32 %v1694_v24 }
 0x421   : > { %v6000_v32 = vpop.xlane.xlu1 %2181 }
 0x424   : > { %v6012_v53 = vpop.xlane.xlu0 %2677 }
 0x425   : > { %v6002_v7 = vpop.xlane.xlu1 %2667 }
 0x428   : > { %v6016_v23 = vpop.xlane.xlu0 %1701 }
 0x429   : > { %v6006_v52 = vpop.xlane.xlu1 %2671 }
 0x42b   : > { %v4422_v51 = vpop.eup %4421 }
 0x42c   : > { %v6020_v22 = vpop.xlane.xlu0 %1705  ;;  %v4424_v48 = vpop.eup %4423 }
 0x42d   : > { %v1700_v59 = vpop.xlane.xlu1 %1699  ;;  %v4426_v18 = vpop.eup %4425 }
 0x42e   : > { %4427 = vrcp.f32 %v1700_v59 }
 0x430   : > { %v6024_v16 = vpop.xlane.xlu0 %2195 }
 0x431   : > { %v1696_v13 = vpop.xlane.xlu1 %1695 }
 0x432   : > { %4429 = vrcp.f32 %v1696_v13 }
 0x433   : > { %4431 = vrcp.f32 %v6020_v22 }
 0x434   : > { %v6030_v49 = vpop.xlane.xlu0 %2199 }
 0x435   : > { %v6014_v26 = vpop.xlane.xlu1 %2189 }
 0x438   : > { %v3973_v41 = vpop.f32.mrf.mxu1 }
 0x439   : > { %v6018_v4 = vpop.xlane.xlu1 %2193 }
 0x43a   : > { %v1361_v30 = vpop.f32.mrf.mxu1 }
 0x43b   : > { %v4428_v35 = vpop.eup %4427 }
 0x43c   : > { %v6068_v13 = vpop.f32.mrf.mxu1 }
 0x43d   : > { %v6022_v34 = vpop.xlane.xlu1 %2675 }
 0x43f   : > { %v4430_v46 = vpop.eup %4429 }
 0x441   : > { %v6028_v61 = vpop.xlane.xlu1 %2679 }
 0x443   : > { %v6034_v57 = vpop.xlane.xlu0 %2681 }
 0x447   : > { %v6036_v62 = vpop.xlane.xlu0 %2685 }
 0x449   : > { %v4005_v40 = vpop.f32.mrf.mxu0 }
 0x44a   : > { %v1872_v45 = vmul.f32 %v4416_v54, %v4005_v40 }
 0x44b   : > { %v1791_v44 = vpop.f32.mrf.mxu0  ;;  %v6042_v21 = vpop.xlane.xlu0 %1709 }
 0x44c   : > { %v1870_v25 = vmul.f32 %v4418_v39, %v1791_v44  ;;  %1906 = vrot.lane.b32.xlu1 %v1872_v45, %s4679_s25  ;;  %v1364_v45 = vpop.f32.mrf.mxu1 }
 0x44d   : > { %v4006_v47 = vpop.f32.mrf.mxu0 }
 0x44e   : > { %1902 = vrot.lane.b32.xlu0 %v1870_v25, %s4679_s25  ;;  %v1873_v14 = vmul.f32 %v4420_v31, %v4006_v47 }
 0x44f   : > { %v1794_v43 = vpop.f32.mrf.mxu0  ;;  %v6046_v56 = vpop.xlane.xlu0 %1713 }
 0x450   : > { %v1871_v33 = vmul.f32 %v4422_v51, %v1794_v43 }
 0x452   : > { %1908 = vrot.lane.b32.xlu0 %v1873_v14, %s4679_s25  ;;  %1904 = vrot.lane.b32.xlu1 %v1871_v33, %s4679_s25 }
 0x453   : > { %v1704_v9 = vpop.xlane.xlu1 %1703  ;;  %v6052_v1 = vpop.xlane.xlu0 %2203 }
 0x457   : > { %v1708_v8 = vpop.xlane.xlu1 %1707  ;;  %v6059_v2 = vpop.xlane.xlu0 %2207 }
 0x45b   : > { %v6038_v10 = vpop.xlane.xlu1 %2197 }
 0x45c   : > { %v6077_v25 = vpop.f32.mrf.mxu1 }
 0x45e   : > { %v1377_v51 = vpop.f32.mrf.mxu1 }
 0x45f   : > { %v6040_v12 = vpop.xlane.xlu1 %2201 }
 0x460   : > { %v6080_v33 = vpop.f32.mrf.mxu1 }
 0x463   : > { %v6044_v38 = vpop.xlane.xlu1 %2683 }
 0x467   : > { %v6048_v11 = vpop.xlane.xlu1 %2687 }
 0x469   : > { %v4009_v0 = vpop.f32.mrf.mxu0 }
 0x46a   : > { %v1876_v3 = vmul.f32 %v4424_v48, %v4009_v0  ;;  %v4432_v0 = vpop.eup %4431 }
 0x46b   : > { %v6050_v63 = vpop.xlane.xlu1 %1711  ;;  %v1807_v29 = vpop.f32.mrf.mxu0 }
 0x46c   : > { %1914 = vrot.lane.b32.xlu1 %v1876_v3, %s4679_s25  ;;  %v1874_v58 = vmul.f32 %v4426_v18, %v1807_v29  ;;  %v1380_v3 = vpop.f32.mrf.mxu1 }
 0x46d   : > { %v4010_v15 = vpop.f32.mrf.mxu0 }
 0x46e   : > { %v1877_v17 = vmul.f32 %v4428_v35, %v4010_v15 }
 0x46f   : > { %v6055_v5 = vpop.xlane.xlu1 %1715  ;;  %v1810_v37 = vpop.f32.mrf.mxu0 }
 0x470   : > { %1910 = vrot.lane.b32.xlu1 %v1874_v58, %s4679_s25  ;;  %1916 = vrot.lane.b32.xlu0 %v1877_v17, %s4679_s25  ;;  %v1875_v6 = vmul.f32 %v4430_v46, %v1810_v37 }
 0x473   : > { %v6061_v60 = vpop.xlane.xlu1 %2205  ;;  %v6064_v24 = vpop.xlane.xlu0 %2689 }
 0x474   : > { %1912 = vrot.lane.b32.xlu0 %v1875_v6, %s4679_s25 }
 0x477   : > { %v6066_v59 = vpop.xlane.xlu1 %2209 }
 0x47b   : > { %v6070_v54 = vpop.xlane.xlu0 %2693  ;;  %v6072_v40 = vpop.xlane.xlu1 %2691 }
 0x47f   : > { %v1288_v39 = vpop.xlane.xlu0 %1287  ;;  %v6075_v44 = vpop.xlane.xlu1 %2695 }
 0x480   : > { %4433 = vrcp.f32 %v1288_v39 }
 0x481   : > { %4435 = vrcp.f32 %v6016_v23 }
 0x482   : > { %4437 = vrcp.f32 %v1708_v8  ;;  %v6082_v8 = vpop.f32.mrf.mxu1 }
 0x483   : > { %v1292_v47 = vpop.xlane.xlu0 %1291  ;;  %v1290_v31 = vpop.xlane.xlu1 %1289 }
 0x484   : > { %4439 = vrcp.f32 %v1292_v47  ;;  %v1393_v47 = vpop.f32.mrf.mxu1 }
 0x485   : > { %4441 = vrcp.f32 %v1290_v31 }
 0x486   : > { %4443 = vrcp.f32 %v1704_v9 }
 0x487   : > { %v1296_v43 = vpop.xlane.xlu0 %1295  ;;  %v1294_v14 = vpop.xlane.xlu1 %1293 }
 0x488   : > { %4445 = vrcp.f32 %v1296_v43 }
 0x489   : > { %4447 = vrcp.f32 %v1294_v14 }
 0x48b   : > { %v1300_v22 = vpop.xlane.xlu0 %1299  ;;  %v1298_v48 = vpop.xlane.xlu1 %1297 }
 0x48c   : > { %4449 = vrcp.f32 %v1300_v22 }
 0x48d   : > { %v4434_v29 = vpop.eup %4433  ;;  %4451 = vrcp.f32 %v1298_v48  ;;  %v4013_v23 = vpop.f32.mrf.mxu0 }
 0x48e   : > { %v1880_v18 = vmul.f32 %v4432_v0, %v4013_v23  ;;  %v1440_v35 = vmul.f32 %v4434_v29, %v1361_v30  ;;  %v4436_v9 = vpop.eup %4435 }
 0x48f   : > { %v1823_v15 = vpop.f32.mrf.mxu0  ;;  %v1304_v58 = vpop.xlane.xlu0 %1303 }
 0x490   : > { %v4438_v17 = vpop.eup %4437  ;;  %4453 = vrcp.f32 %v1304_v58  ;;  %v1302_v37 = vpop.xlane.xlu1 %1301  ;;  %1922 = vrot.lane.b32.xlu1 %v1880_v18, %s4679_s25  ;;  %1457 = vst.msk [vmem:[#allocation2] sm:$0xff] %vm1456_vm1, %v1440_v35  ;;  %v1878_v31 = vmul.f32 %v4436_v9, %v1823_v15 }
 0x491   : > { %v4440_v46 = vpop.eup %4439  ;;  %4455 = vrcp.f32 %v1302_v37  ;;  %v4014_v6 = vpop.f32.mrf.mxu0 }
 0x492   : > { %v4442_v39 = vpop.eup %4441  ;;  %v1881_v43 = vmul.f32 %v4438_v17, %v4014_v6  ;;  %v1442_v14 = vmul.f32 %v4440_v46, %v3973_v41  ;;  %v3982_v35 = vpop.f32.mrf.mxu1 }
 0x493   : > { %v1826_v22 = vpop.f32.mrf.mxu0  ;;  %v1308_v30 = vpop.xlane.xlu0 %1307  ;;  %v1441_v48 = vmul.f32 %v4442_v39, %v1364_v45 }
 0x494   : > { %v4444_v0 = vpop.eup %4443  ;;  %4457 = vrcp.f32 %v1308_v30  ;;  %v1306_v29 = vpop.xlane.xlu1 %1305  ;;  %1918 = vrot.lane.b32.xlu1 %v1878_v31, %s4679_s25  ;;  %1924 = vrot.lane.b32.xlu0 %v1881_v43, %s4679_s25  ;;  %1459 = vst.msk [vmem:[#allocation2 + $0x10] sm:$0xff] %vm1456_vm1, %v1442_v14 }
 0x495   : > { %v4446_v23 = vpop.eup %4445  ;;  %4459 = vrcp.f32 %v1306_v29  ;;  %1458 = vst.msk [vmem:[#allocation2 + $0x8] sm:$0xff] %vm1456_vm1, %v1441_v48  ;;  %v1879_v9 = vmul.f32 %v4444_v0, %v1826_v22  ;;  %v1396_v46 = vpop.f32.mrf.mxu1 }
 0x496   : > { %v4448_v18 = vpop.eup %4447  ;;  %v1444_v41 = vmul.f32 %v4446_v23, %v1377_v51  ;;  %4461 = vrcp.f32 %v6046_v56 }
 0x497   : > { %v1312_v45 = vpop.xlane.xlu0 %1311  ;;  %v1443_v15 = vmul.f32 %v4448_v18, %v6068_v13 }
 0x498   : > { %4463 = vrcp.f32 %v1312_v45  ;;  %v1310_v58 = vpop.xlane.xlu1 %1309  ;;  %1920 = vrot.lane.b32.xlu0 %v1879_v9, %s4679_s25  ;;  %1461 = vst.msk [vmem:[#allocation2 + $0x20] sm:$0xff] %vm1456_vm1, %v1444_v41 }
 0x499   : > { %v4450_v17 = vpop.eup %4449  ;;  %4465 = vrcp.f32 %v1310_v58  ;;  %1460 = vst.msk [vmem:[#allocation2 + $0x18] sm:$0xff] %vm1456_vm1, %v1443_v15 }
 0x49a   : > { %v4452_v37 = vpop.eup %4451  ;;  %4467 = vrcp.f32 %v6042_v21  ;;  %v1446_v51 = vmul.f32 %v4450_v17, %v6077_v25 }
 0x49b   : > { %4469 = vrcp.f32 %v6055_v5  ;;  %v1316_v56 = vpop.xlane.xlu0 %1315  ;;  %v1445_v13 = vmul.f32 %v4452_v37, %v1380_v3 }
 0x49c   : > { %4471 = vrcp.f32 %v1316_v56  ;;  %v1314_v6 = vpop.xlane.xlu1 %1313  ;;  %v3985_v39 = vpop.f32.mrf.mxu1  ;;  %1463 = vst.msk [vmem:[#allocation2 + $0x30] sm:$0xff] %vm1456_vm1, %v1446_v51 }
 0x49d   : > { %v4454_v31 = vpop.eup %4453  ;;  %4473 = vrcp.f32 %v1314_v6  ;;  %1462 = vst.msk [vmem:[#allocation2 + $0x28] sm:$0xff] %vm1456_vm1, %v1445_v13 }
 0x49e   : > { %v4456_v43 = vpop.eup %4455  ;;  %v1409_v14 = vpop.f32.mrf.mxu1  ;;  %v1448_v22 = vmul.f32 %v4454_v31, %v1393_v47  ;;  %4475 = vrcp.f32 %v5975_v19 }
 0x49f   : > { %v1447_v21 = vmul.f32 %v4456_v43, %v6080_v33  ;;  %4477 = vrcp.f32 %v6050_v63 }
 0x4a0   : > { %v1318_v5 = vpop.xlane.xlu1 %1317  ;;  %v3986_v25 = vpop.f32.mrf.mxu1  ;;  %1465 = vst.msk [vmem:[#allocation2 + $0x40] sm:$0xff] %vm1456_vm1, %v1448_v22 }
 0x4a1   : > { %v4458_v3 = vpop.eup %4457  ;;  %4479 = vrcp.f32 %v1318_v5  ;;  %1464 = vst.msk [vmem:[#allocation2 + $0x38] sm:$0xff] %vm1456_vm1, %v1447_v21 }
 0x4a2   : > { %v4460_v30 = vpop.eup %4459  ;;  %v1412_v48 = vpop.f32.mrf.mxu1  ;;  %v1450_v0 = vmul.f32 %v4458_v3, %v6082_v8  ;;  %4481 = vrcp.f32 %v5995_v36 }
 0x4a3   : > { %v1449_v47 = vmul.f32 %v4460_v30, %v1396_v46  ;;  %v4462_v19 = vpop.eup %4461  ;;  %4483 = vrcp.f32 %v5998_v27 }
 0x4a4   : > { %1467 = vst.msk [vmem:[#allocation2 + $0x50] sm:$0xff] %vm1456_vm1, %v1450_v0  ;;  %v4037_v33 = vpop.f32.mrf.mxu1  ;;  %4485 = vrcp.f32 %v6006_v52 }
 0x4a5   : > { %v4464_v63 = vpop.eup %4463  ;;  %v4017_v29 = vpop.f32.mrf.mxu0  ;;  %1466 = vst.msk [vmem:[#allocation2 + $0x48] sm:$0xff] %vm1456_vm1, %v1449_v47  ;;  %4487 = vrcp.f32 %v5983_v42 }
 0x4a6   : > { %v4466_v23 = vpop.eup %4465  ;;  %v1452_v18 = vmul.f32 %v4464_v63, %v1409_v14  ;;  %v1884_v9 = vmul.f32 %v4462_v19, %v4017_v29  ;;  %v2277_v15 = vpop.f32.mrf.mxu1  ;;  %4489 = vrcp.f32 %v5991_v55 }
 0x4a7   : > { %v4468_v41 = vpop.eup %4467  ;;  %v1839_v8 = vpop.f32.mrf.mxu0  ;;  %v1451_v45 = vmul.f32 %v4466_v23, %v3982_v35  ;;  %4491 = vrcp.f32 %v6000_v32 }
 0x4a8   : > { %v4470_v36 = vpop.eup %4469  ;;  %1469 = vst.msk [vmem:[#allocation2 + $0x60] sm:$0xff] %vm1456_vm1, %v1452_v18  ;;  %1930 = vrot.lane.b32.xlu1 %v1884_v9, %s4679_s25  ;;  %v1882_v46 = vmul.f32 %v4468_v41, %v1839_v8  ;;  %v4038_v13 = vpop.f32.mrf.mxu1  ;;  %4493 = vrcp.f32 %v6008_v20  ;;  %v4279_v20 = vld [vmem:[%s6399_s6 + $0x38] sm:$0xff]  }
 0x4a9   : > { %v4472_v27 = vpop.eup %4471  ;;  %v4018_v58 = vpop.f32.mrf.mxu0  ;;  %1468 = vst.msk [vmem:[#allocation2 + $0x58] sm:$0xff] %vm1456_vm1, %v1451_v45  ;;  %4495 = vrcp.f32 %v6002_v7  ;;  %4083 = vmatprep.subr.bf16.mxu1 %v4279_v20 }
 0x4aa   : > { %v4474_v17 = vpop.eup %4473  ;;  %v1454_v37 = vmul.f32 %v4472_v27, %v3985_v39  ;;  %v1885_v51 = vmul.f32 %v4470_v36, %v4018_v58  ;;  %v2280_v22 = vpop.f32.mrf.mxu1  ;;  %4497 = vrcp.f32 %v6012_v53  ;;  %4084 = vmatpush3.bf16.msra.mxu1 %v4279_v20  ;;  %v4280_v53 = vld [vmem:[%s6399_s6 + $0x30] sm:$0xff]  }
 0x4ab   : > { %v1453_v52 = vmul.f32 %v4474_v17, %v1412_v48  ;;  %v1842_v35 = vpop.f32.mrf.mxu0  ;;  %v4476_v56 = vpop.eup %4475  ;;  %4499 = vrcp.f32 %v6018_v4  ;;  %4085 = vmatprep.subr.bf16.mxu1 %v4280_v53 }
 0x4ac   : > { %1471 = vst.msk [vmem:[#allocation2 + $0x70] sm:$0xff] %vm1456_vm1, %v1454_v37  ;;  %1926 = vrot.lane.b32.xlu1 %v1882_v46, %s4679_s25  ;;  %1932 = vrot.lane.b32.xlu0 %v1885_v51, %s4679_s25  ;;  %v4478_v42 = vpop.eup %4477  ;;  %v2358_v39 = vmul.f32 %v4476_v56, %v4037_v33  ;;  %v4041_v48 = vpop.f32.mrf.mxu1  ;;  %4501 = vrcp.f32 %v6004_v50  ;;  %v4281_v50 = vld [vmem:[%s6399_s6 + $0x28] sm:$0xff]  }
 0x4ad   : > { %1470 = vst.msk [vmem:[#allocation2 + $0x68] sm:$0xff] %vm1456_vm1, %v1453_v52  ;;  %v1883_v31 = vmul.f32 %v4478_v42, %v1842_v35  ;;  %4503 = vrcp.f32 %v6028_v61 }
 0x4ae   : > { %v4480_v6 = vpop.eup %4479  ;;  %v2293_v33 = vpop.f32.mrf.mxu1  ;;  %4086 = vmatpush3.bf16.msra.mxu1 %v4280_v53  ;;  %4505 = vrcp.f32 %v6010_v28  ;;  %v4282_v28 = vld [vmem:[%s6399_s6 + $0x20] sm:$0xff]  }
 0x4af   : > { %v1455_v55 = vmul.f32 %v4480_v6, %v3986_v25  ;;  %v4482_v43 = vpop.eup %4481  ;;  %4507 = vrcp.f32 %v6014_v26  ;;  %4087 = vmatprep.subr.bf16.mxu1 %v4281_v50 }
 0x4b0   : > { %v4069_v32 = vpop.f32.mrf.mxu0  ;;  %1928 = vrot.lane.b32.xlu0 %v1883_v31, %s4679_s25  ;;  %2392 = vrot.lane.b32.xlu1 %v2358_v39, %s4678_s12  ;;  %v4484_v14 = vpop.eup %4483  ;;  %4509 = vrcp.f32 %v6030_v49 }
 0x4b1   : > { %1472 = vst.msk [vmem:[#allocation2 + $0x78] sm:$0xff] %vm1456_vm1, %v1455_v55  ;;  %v2844_v21 = vmul.f32 %v4482_v43, %v4069_v32  ;;  %v2359_v5 = vmul.f32 %v4484_v14, %v4038_v13  ;;  %v4486_v25 = vpop.eup %4485  ;;  %v4042_v41 = vpop.f32.mrf.mxu1  ;;  %4511 = vrcp.f32 %v6022_v34  ;;  %v4283_v34 = vld [vmem:[%s6399_s6 + $0x18] sm:$0xff]  }
 0x4b2   : > { %v2763_v3 = vpop.f32.mrf.mxu0  ;;  %v4488_v30 = vpop.eup %4487  ;;  %4088 = vmatpush3.bf16.msra.mxu1 %v4281_v50  ;;  %4513 = vrcp.f32 %v6036_v62 }
 0x4b3   : > { %v2356_v47 = vmul.f32 %v4488_v30, %v2277_v15  ;;  %v4490_v63 = vpop.eup %4489  ;;  %4089 = vmatprep.subr.bf16.mxu1 %v4282_v28  ;;  %v2296_v49 = vpop.f32.mrf.mxu1  ;;  %4515 = vrcp.f32 %v6040_v12  ;;  %v4284_v12 = vld [vmem:[%s6399_s6 + $0x10] sm:$0xff]  }
 0x4b4   : > { %v4070_v7 = vpop.f32.mrf.mxu0  ;;  %2878 = vrot.lane.b32.xlu1 %v2844_v21, %s4677_s24  ;;  %2394 = vrot.lane.b32.xlu0 %v2359_v5, %s4678_s12  ;;  %v4492_v4 = vpop.eup %4491  ;;  %v2842_v23 = vmul.f32 %v4490_v63, %v2763_v3  ;;  %4517 = vrcp.f32 %v6024_v16  ;;  %v4285_v16 = vld [vmem:[%s6399_s6 + $0x8] sm:$0xff]  }
 0x4b5   : > { %v2845_v0 = vmul.f32 %v4486_v25, %v4070_v7  ;;  %v2357_v29 = vmul.f32 %v4492_v4, %v2280_v22  ;;  %v4494_v9 = vpop.eup %4493  ;;  %v4045_v13 = vpop.f32.mrf.mxu1  ;;  %4519 = vrcp.f32 %v6048_v11 }
 0x4b6   : > { %v2766_v19 = vpop.f32.mrf.mxu0  ;;  %v4496_v61 = vpop.eup %4495  ;;  %v2362_v8 = vmul.f32 %v4494_v9, %v4041_v48  ;;  %4090 = vmatpush3.bf16.msra.mxu1 %v4282_v28  ;;  %4521 = vrcp.f32 %v6034_v57  ;;  %v4286_v57 = vld [vmem:[%s6399_s6] sm:$0xff]  }
 0x4b7   : > { %v2843_v45 = vmul.f32 %v4496_v61, %v2766_v19  ;;  %v4498_v26 = vpop.eup %4497  ;;  %4091 = vmatprep.subr.bf16.mxu1 %v4283_v34  ;;  %v2309_v43 = vpop.f32.mrf.mxu1  ;;  %4523 = vrcp.f32 %v6038_v10 }
 0x4b8   : > { %2388 = vrot.lane.b32.xlu1 %v2356_v47, %s4678_s12  ;;  %2880 = vrot.lane.b32.xlu0 %v2845_v0, %s4677_s24  ;;  %v4073_v18 = vpop.f32.mrf.mxu0  ;;  %v4500_v58 = vpop.eup %4499  ;;  %4525 = vrcp.f32 %v6059_v2 }
 0x4b9   : > { %v2363_v17 = vmul.f32 %v4500_v58, %v4042_v41  ;;  %v2848_v37 = vmul.f32 %v4498_v26, %v4073_v18  ;;  %v4502_v51 = vpop.eup %4501  ;;  %v4046_v5 = vpop.f32.mrf.mxu1  ;;  %4527 = vrcp.f32 %v6044_v38 }
 0x4ba   : > { %v2779_v36 = vpop.f32.mrf.mxu0  ;;  %v4504_v35 = vpop.eup %4503  ;;  %v2360_v42 = vmul.f32 %v4502_v51, %v2293_v33  ;;  %4092 = vmatpush3.bf16.msra.mxu1 %v4283_v34  ;;  %4529 = vrcp.f32 %v6052_v1 }
 0x4bb   : > { %v4506_v39 = vpop.eup %4505  ;;  %4093 = vmatprep.subr.bf16.mxu1 %v4284_v12  ;;  %v2312_v30 = vpop.f32.mrf.mxu1  ;;  %4531 = vrcp.f32 %v6066_v59 }
 0x4bc   : > { %2874 = vrot.lane.b32.xlu1 %v2842_v23, %s4677_s24  ;;  %2390 = vrot.lane.b32.xlu0 %v2357_v29, %s4678_s12  ;;  %v4074_v46 = vpop.f32.mrf.mxu0  ;;  %v4508_v31 = vpop.eup %4507  ;;  %v2846_v32 = vmul.f32 %v4506_v39, %v2779_v36  ;;  %4533 = vrcp.f32 %v6064_v24 }
 0x4bd   : > { %v2849_v62 = vmul.f32 %v4504_v35, %v4074_v46  ;;  %v2361_v55 = vmul.f32 %v4508_v31, %v2296_v49  ;;  %v4510_v22 = vpop.eup %4509  ;;  %v4049_v19 = vpop.f32.mrf.mxu1  ;;  %4535 = vrcp.f32 %v6061_v60 }
 0x4be   : > { %v1907_v27 = vpop.permute.xlu1 %1906  ;;  %v2782_v6 = vpop.f32.mrf.mxu0  ;;  %4094 = vmatpush3.bf16.msra.mxu1 %v4284_v12  ;;  %v2366_v21 = vmul.f32 %v4510_v22, %v4045_v13  ;;  %4537 = vrcp.f32 %v6070_v54 }
 0x4bf   : > { %1953 = vst.msk [vmem:[#allocation2 + $0x10] sm:$0xff] %vm1950_vm2, %v1907_v27  ;;  %v4512_v11 = vpop.eup %4511  ;;  %4095 = vmatprep.subr.bf16.mxu1 %v4285_v16  ;;  %v2325_v33 = vpop.f32.mrf.mxu1  ;;  %4539 = vrcp.f32 %v6072_v40 }
 0x4c0   : > { %v1903_v15 = vpop.permute.xlu0 %1902  ;;  %2876 = vrot.lane.b32.xlu0 %v2843_v45, %s4677_s24  ;;  %2400 = vrot.lane.b32.xlu1 %v2362_v8, %s4678_s12  ;;  %v4077_v14 = vpop.f32.mrf.mxu0  ;;  %v2847_v3 = vmul.f32 %v4512_v11, %v2782_v6  ;;  %4541 = vrcp.f32 %v6075_v44  ;;  %v6229_v11 = vld [vmem:[%s450_s26] ss:$0 sm:$0xff] }
 0x4c1   : > { %1951 = vst.msk [vmem:[#allocation2] sm:$0xff] %vm1950_vm2, %v1903_v15  ;;  %v4514_v25 = vpop.eup %4513  ;;  %v4050_v50 = vpop.f32.mrf.mxu1 }
 0x4c2   : > { %v2795_v20 = vpop.f32.mrf.mxu0  ;;  %4096 = vmatpush3.bf16.msra.mxu1 %v4285_v16  ;;  %v4516_v10 = vpop.eup %4515  ;;  %v2852_v48 = vmul.f32 %v4514_v25, %v4077_v14 }
 0x4c3   : > { %4097 = vmatprep.subr.bf16.mxu1 %v4286_v57  ;;  %v2367_v7 = vmul.f32 %v4516_v10, %v4046_v5  ;;  %v4518_v2 = vpop.eup %4517  ;;  %v2328_v36 = vpop.f32.mrf.mxu1 }
 0x4c4   : > { %v1909_v52 = vpop.permute.xlu0 %1908  ;;  %2886 = vrot.lane.b32.xlu1 %v2848_v37, %s4677_s24  ;;  %2402 = vrot.lane.b32.xlu0 %v2363_v17, %s4678_s12  ;;  %v1905_v56 = vpop.permute.xlu1 %1904  ;;  %v2364_v47 = vmul.f32 %v4518_v2, %v2309_v43 }
 0x4c5   : > { %1954 = vst.msk [vmem:[#allocation2 + $0x18] sm:$0xff] %vm1950_vm2, %v1909_v52  ;;  %1952 = vst.msk [vmem:[#allocation2 + $0x8] sm:$0xff] %vm1950_vm2, %v1905_v56  ;;  %v4078_v0 = vpop.f32.mrf.mxu0  ;;  %v4520_v38 = vpop.eup %4519 }
 0x4c6   : > { %4098 = vmatpush3.bf16.msra.mxu1 %v4286_v57  ;;  %v2853_v53 = vmul.f32 %v4520_v38, %v4078_v0  ;;  %v4522_v4 = vpop.eup %4521 }
 0x4c7   : > { %v2798_v63 = vpop.f32.mrf.mxu0  ;;  %v4524_v1 = vpop.eup %4523  ;;  %v2850_v29 = vmul.f32 %v4522_v4, %v2795_v20 }
 0x4c8   : > { %2396 = vrot.lane.b32.xlu1 %v2360_v42, %s4678_s12  ;;  %2888 = vrot.lane.b32.xlu0 %v2849_v62, %s4677_s24  ;;  %v2365_v59 = vmul.f32 %v4524_v1, %v2312_v30  ;;  %v4526_v18 = vpop.eup %4525 }
 0x4c9   : > { %v4081_v23 = vpop.f32.mrf.mxu0  ;;  %v4528_v24 = vpop.eup %4527  ;;  %v2370_v60 = vmul.f32 %v4526_v18, %v4049_v19 }
 0x4ca   : > { %v2851_v9 = vmul.f32 %v4528_v24, %v2798_v63  ;;  %v4530_v8 = vpop.eup %4529 }
 0x4cb   : > { %v2811_v61 = vpop.f32.mrf.mxu0  ;;  %v4532_v54 = vpop.eup %4531  ;;  %v2368_v40 = vmul.f32 %v4530_v8, %v2325_v33 }
 0x4cc   : > { %2882 = vrot.lane.b32.xlu1 %v2846_v32, %s4677_s24  ;;  %2398 = vrot.lane.b32.xlu0 %v2361_v55, %s4678_s12  ;;  %v2371_v45 = vmul.f32 %v4532_v54, %v4050_v50  ;;  %v4534_v15 = vpop.eup %4533 }
 0x4cd   : > { %v4082_v27 = vpop.f32.mrf.mxu0  ;;  %v4536_v44 = vpop.eup %4535  ;;  %v2854_v17 = vmul.f32 %v4534_v15, %v2811_v61 }
 0x4ce   : > { %v2369_v58 = vmul.f32 %v4536_v44, %v2328_v36  ;;  %v4538_v46 = vpop.eup %4537 }
 0x4cf   : > { %v2814_v49 = vpop.f32.mrf.mxu0  ;;  %v4540_v34 = vpop.eup %4539  ;;  %v2856_v51 = vmul.f32 %v4538_v46, %v4081_v23 }
 0x4d0   : > { %2884 = vrot.lane.b32.xlu0 %v2847_v3, %s4677_s24  ;;  %2408 = vrot.lane.b32.xlu1 %v2366_v21, %s4678_s12  ;;  %v2855_v52 = vmul.f32 %v4540_v34, %v2814_v49  ;;  %v4542_v35 = vpop.eup %4541 }
 0x4d1   : > { %v2857_v56 = vmul.f32 %v4542_v35, %v4082_v27 }
 0x4d4   : > { %2894 = vrot.lane.b32.xlu1 %v2852_v48, %s4677_s24  ;;  %2410 = vrot.lane.b32.xlu0 %v2367_v7, %s4678_s12 }
 0x4d8   : > { %2404 = vrot.lane.b32.xlu1 %v2364_v47, %s4678_s12  ;;  %2896 = vrot.lane.b32.xlu0 %v2853_v53, %s4677_s24 }
 0x4dc   : > { %2890 = vrot.lane.b32.xlu1 %v2850_v29, %s4677_s24  ;;  %2406 = vrot.lane.b32.xlu0 %v2365_v59, %s4678_s12 }
 0x4de   : > { %v1915_v41 = vpop.permute.xlu1 %1914 }
 0x4df   : > { %1957 = vst.msk [vmem:[#allocation2 + $0x30] sm:$0xff] %vm1950_vm2, %v1915_v41 }
 0x4e0   : > { %2892 = vrot.lane.b32.xlu0 %v2851_v9, %s4677_s24  ;;  %2416 = vrot.lane.b32.xlu1 %v2370_v60, %s4678_s12 }
 0x4e2   : > { %v1917_v28 = vpop.permute.xlu0 %1916  ;;  %v1911_v26 = vpop.permute.xlu1 %1910 }
 0x4e3   : > { %1958 = vst.msk [vmem:[#allocation2 + $0x38] sm:$0xff] %vm1950_vm2, %v1917_v28  ;;  %1955 = vst.msk [vmem:[#allocation2 + $0x20] sm:$0xff] %vm1950_vm2, %v1911_v26 }
 0x4e4   : > { %2412 = vrot.lane.b32.xlu1 %v2368_v40, %s4678_s12  ;;  %2418 = vrot.lane.b32.xlu0 %v2371_v45, %s4678_s12 }
 0x4e6   : > { %v1913_v37 = vpop.permute.xlu0 %1912 }
 0x4e7   : > { %1956 = vst.msk [vmem:[#allocation2 + $0x28] sm:$0xff] %vm1950_vm2, %v1913_v37 }
 0x4e8   : > { %2898 = vrot.lane.b32.xlu1 %v2854_v17, %s4677_s24  ;;  %2414 = vrot.lane.b32.xlu0 %v2369_v58, %s4678_s12 }
 0x4ec   : > { %2902 = vrot.lane.b32.xlu1 %v2856_v51, %s4677_s24  ;;  %2900 = vrot.lane.b32.xlu0 %v2855_v52, %s4677_s24 }
 0x4f0   : > { %2904 = vrot.lane.b32.xlu0 %v2857_v56, %s4677_s24 }
 0x502   : > { %v1923_v42 = vpop.permute.xlu1 %1922 }
 0x503   : > { %1961 = vst.msk [vmem:[#allocation2 + $0x50] sm:$0xff] %vm1950_vm2, %v1923_v42 }
 0x506   : > { %v1925_v13 = vpop.permute.xlu0 %1924  ;;  %v1919_v62 = vpop.permute.xlu1 %1918 }
 0x507   : > { %1962 = vst.msk [vmem:[#allocation2 + $0x58] sm:$0xff] %vm1950_vm2, %v1925_v13  ;;  %1959 = vst.msk [vmem:[#allocation2 + $0x40] sm:$0xff] %vm1950_vm2, %v1919_v62 }
 0x50a   : > { %v1921_v6 = vpop.permute.xlu0 %1920 }
 0x50b   : > { %1960 = vst.msk [vmem:[#allocation2 + $0x48] sm:$0xff] %vm1950_vm2, %v1921_v6 }
 0x51a   : > { %v1931_v12 = vpop.permute.xlu1 %1930 }
 0x51b   : > { %1965 = vst.msk [vmem:[#allocation2 + $0x70] sm:$0xff] %vm1950_vm2, %v1931_v12 }
 0x51e   : > { %v1933_v39 = vpop.permute.xlu0 %1932  ;;  %v1927_v31 = vpop.permute.xlu1 %1926 }
 0x51f   : > { %1966 = vst.msk [vmem:[#allocation2 + $0x78] sm:$0xff] %vm1950_vm2, %v1933_v39  ;;  %1963 = vst.msk [vmem:[#allocation2 + $0x60] sm:$0xff] %vm1950_vm2, %v1927_v31 }
 0x522   : > { %v1929_v55 = vpop.permute.xlu0 %1928  ;;  %v2393_v43 = vpop.permute.xlu1 %2392 }
 0x523   : > { %1964 = vst.msk [vmem:[#allocation2 + $0x68] sm:$0xff] %vm1950_vm2, %v1929_v55 }
 0x524   : > { %2439 = vst.msk [vmem:[#allocation2 + $0x10] sm:$0xff] %vm2436_vm3, %v2393_v43 }
 0x526   : > { %v2879_v32 = vpop.permute.xlu1 %2878  ;;  %v2395_v14 = vpop.permute.xlu0 %2394 }
 0x527   : > { %2925 = vst.msk [vmem:[#allocation2 + $0x10] sm:$0xff] %vm2922_vm4, %v2879_v32 }
 0x528   : > { %2440 = vst.msk [vmem:[#allocation2 + $0x18] sm:$0xff] %vm2436_vm3, %v2395_v14 }
 0x52a   : > { %v2389_v16 = vpop.permute.xlu1 %2388  ;;  %v2881_v22 = vpop.permute.xlu0 %2880 }
 0x52b   : > { %2437 = vst.msk [vmem:[#allocation2] sm:$0xff] %vm2436_vm3, %v2389_v16 }
 0x52c   : > { %2926 = vst.msk [vmem:[#allocation2 + $0x18] sm:$0xff] %vm2922_vm4, %v2881_v22 }
 0x52e   : > { %v2875_v21 = vpop.permute.xlu1 %2874  ;;  %v2391_v5 = vpop.permute.xlu0 %2390  ;;  %v2941_v3 = vld [vmem:[#allocation2 + $0x10] sm:$0xff] }
 0x52f   : > { %2923 = vst.msk [vmem:[#allocation2] sm:$0xff] %vm2922_vm4, %v2875_v21  ;;  %v2964_v20 = vadd.f32 %v6229_v11, %v2941_v3 }
 0x530   : > { %2438 = vst.msk [vmem:[#allocation2 + $0x8] sm:$0xff] %vm2436_vm3, %v2391_v5 }
 0x531   : > { %v2996_v57 = vmin.f32 %v2964_v20, 0.0  ;;  %vm2980_vm5 = vcmp.gt.f32.partialorder %v2964_v20, 0.0 }
 0x532   : > { %v2877_v25 = vpop.permute.xlu0 %2876  ;;  %v2401_v10 = vpop.permute.xlu1 %2400 }
 0x533   : > { %v2942_v7 = vld [vmem:[#allocation2 + $0x18] sm:$0xff]  ;;  %2924 = vst.msk [vmem:[#allocation2 + $0x8] sm:$0xff] %vm2922_vm4, %v2877_v25  ;;  %v3014_v48 = vmul.f32 1.442695, %v2996_v57 }
 0x534   : > { %2443 = vst.msk [vmem:[#allocation2 + $0x30] sm:$0xff] %vm2436_vm3, %v2401_v10  ;;  %v2965_v30 = vadd.f32 %v6229_v11, %v2942_v7 }
 0x535   : > { %4543 = vpow2.f32 %v3014_v48 }
 0x536   : > { %v2997_v0 = vmin.f32 %v2965_v30, 0.0  ;;  %v2887_v2 = vpop.permute.xlu1 %2886  ;;  %v2403_v38 = vpop.permute.xlu0 %2402  ;;  %v2939_v47 = vld [vmem:[#allocation2] sm:$0xff]  ;;  %vm2981_vm6 = vcmp.gt.f32.partialorder %v2965_v30, 0.0 }
 0x537   : > { %2929 = vst.msk [vmem:[#allocation2 + $0x30] sm:$0xff] %vm2922_vm4, %v2887_v2  ;;  %v6240_v19 = vadd.f32 %v6229_v11, %v2939_v47 }
 0x538   : > { %2444 = vst.msk [vmem:[#allocation2 + $0x38] sm:$0xff] %vm2436_vm3, %v2403_v38  ;;  %v3016_v53 = vmul.f32 1.442695, %v2997_v0 }
 0x539   : > { %v2994_v63 = vmin.f32 %v6240_v19, 0.0  ;;  %vm2978_vm7 = vcmp.gt.f32.partialorder %v6240_v19, 0.0 }
 0x53a   : > { %4545 = vpow2.f32 %v3016_v53  ;;  %v2397_v4 = vpop.permute.xlu1 %2396  ;;  %v2889_v1 = vpop.permute.xlu0 %2888  ;;  %v2940_v59 = vld [vmem:[#allocation2 + $0x8] sm:$0xff] }
 0x53b   : > { %2441 = vst.msk [vmem:[#allocation2 + $0x20] sm:$0xff] %vm2436_vm3, %v2397_v4  ;;  %v6246_v33 = vadd.f32 %v6229_v11, %v2940_v59  ;;  %v3010_v29 = vmul.f32 1.442695, %v2994_v63 }
 0x53c   : > { %2930 = vst.msk [vmem:[#allocation2 + $0x38] sm:$0xff] %vm2922_vm4, %v2889_v1 }
 0x53d   : > { %v2995_v23 = vmin.f32 %v6246_v33, 0.0  ;;  %4547 = vpow2.f32 %v3010_v29  ;;  %vm2979_vm8 = vcmp.gt.f32.partialorder %v6246_v33, 0.0 }
 0x53e   : > { %v2883_v18 = vpop.permute.xlu1 %2882  ;;  %v2399_v24 = vpop.permute.xlu0 %2398  ;;  %v2945_v60 = vld [vmem:[#allocation2 + $0x30] sm:$0xff] }
 0x53f   : > { %2927 = vst.msk [vmem:[#allocation2 + $0x20] sm:$0xff] %vm2922_vm4, %v2883_v18  ;;  %v3012_v50 = vmul.f32 1.442695, %v2995_v23  ;;  %v6252_v9 = vadd.f32 %v6229_v11, %v2945_v60 }
 0x540   : > { %2442 = vst.msk [vmem:[#allocation2 + $0x28] sm:$0xff] %vm2436_vm3, %v2399_v24 }
 0x541   : > { %4549 = vpow2.f32 %v3012_v50  ;;  %v3000_v61 = vmin.f32 %v6252_v9, 0.0  ;;  %vm2984_vm9 = vcmp.gt.f32.partialorder %v6252_v9, 0.0 }
 0x542   : > { %v4544_v41 = vpop.eup %4543  ;;  %v2885_v8 = vpop.permute.xlu0 %2884 }
 0x543   : > { %v2409_v54 = vpop.permute.xlu1 %2408  ;;  %v2946_v40 = vld [vmem:[#allocation2 + $0x38] sm:$0xff]  ;;  %2928 = vst.msk [vmem:[#allocation2 + $0x28] sm:$0xff] %vm2922_vm4, %v2885_v8  ;;  %v3022_v36 = vmul.f32 1.442695, %v3000_v61  ;;  %v3626_v27 = vadd.f32 -1.0, %v4544_v41 }
 0x544   : > { %2447 = vst.msk [vmem:[#allocation2 + $0x50] sm:$0xff] %vm2436_vm3, %v2409_v54  ;;  %v6258_v45 = vadd.f32 %v6229_v11, %v2946_v40 }
 0x545   : > { %4551 = vpow2.f32 %v3022_v36  ;;  %v3060_v46 = vsel %vm2980_vm5, %v2964_v20, %v3626_v27 }
 0x546   : > { %v3001_v28 = vmin.f32 %v6258_v45, 0.0  ;;  %v2411_v44 = vpop.permute.xlu0 %2410  ;;  %v2943_v58 = vld [vmem:[#allocation2 + $0x20] sm:$0xff]  ;;  %vm2985_vm10 = vcmp.gt.f32.partialorder %v6258_v45, 0.0 }
 0x547   : > { %v4546_v26 = vpop.eup %4545  ;;  %v2895_v15 = vpop.permute.xlu1 %2894  ;;  %2448 = vst.msk [vmem:[#allocation2 + $0x58] sm:$0xff] %vm2436_vm3, %v2411_v44  ;;  %v6264_v49 = vadd.f32 %v6229_v11, %v2943_v58 }
 0x548   : > { %2933 = vst.msk [vmem:[#allocation2 + $0x50] sm:$0xff] %vm2922_vm4, %v2895_v15  ;;  %v3627_v17 = vadd.f32 -1.0, %v4546_v26  ;;  %v3024_v37 = vmul.f32 1.442695, %v3001_v28 }
 0x549   : > { %v2998_v51 = vmin.f32 %v6264_v49, 0.0  ;;  %vm2982_vm11 = vcmp.gt.f32.partialorder %v6264_v49, 0.0 }
 0x54a   : > { %v3061_v34 = vsel %vm2981_vm6, %v2965_v30, %v3627_v17  ;;  %4553 = vpow2.f32 %v3024_v37  ;;  %v4548_v52 = vpop.eup %4547  ;;  %v2897_v56 = vpop.permute.xlu0 %2896  ;;  %v2944_v13 = vld [vmem:[#allocation2 + $0x28] sm:$0xff] }
 0x54b   : > { %v2405_v35 = vpop.permute.xlu1 %2404  ;;  %v3075_v42 = vpack.c.bf16 %v3061_v34, %v3060_v46  ;;  %2934 = vst.msk [vmem:[#allocation2 + $0x58] sm:$0xff] %vm2922_vm4, %v2897_v56  ;;  %v6277_v62 = vadd.f32 %v6229_v11, %v2944_v13  ;;  %v3018_v6 = vmul.f32 1.442695, %v2998_v51  ;;  %v3624_v12 = vadd.f32 -1.0, %v4548_v52 }
 0x54c   : > { %2445 = vst.msk [vmem:[#allocation2 + $0x40] sm:$0xff] %vm2436_vm3, %v2405_v35 }
 0x54d   : > { %3727 = vst [vmem:[%s6271_s16 + $0x8] sm:$0xff] %v3075_v42   ;;  %v2999_v39 = vmin.f32 %v6277_v62, 0.0  ;;  %4555 = vpow2.f32 %v3018_v6  ;;  %v3058_v21 = vsel %vm2978_vm7, %v6240_v19, %v3624_v12  ;;  %vm2983_vm12 = vcmp.gt.f32.partialorder %v6277_v62, 0.0 }
 0x54e   : > { %v4550_v31 = vpop.eup %4549  ;;  %v2407_v43 = vpop.permute.xlu0 %2406 }
 0x54f   : > { %v2891_v55 = vpop.permute.xlu1 %2890  ;;  %v2949_v32 = vld [vmem:[#allocation2 + $0x50] sm:$0xff]  ;;  %2446 = vst.msk [vmem:[#allocation2 + $0x48] sm:$0xff] %vm2436_vm3, %v2407_v43  ;;  %v3625_v14 = vadd.f32 -1.0, %v4550_v31  ;;  %v3020_v16 = vmul.f32 1.442695, %v2999_v39 }
 0x550   : > { %2931 = vst.msk [vmem:[#allocation2 + $0x40] sm:$0xff] %vm2922_vm4, %v2891_v55  ;;  %v6284_v22 = vadd.f32 %v6229_v11, %v2949_v32 }
 0x551   : > { %v3059_v5 = vsel %vm2979_vm8, %v6246_v33, %v3625_v14  ;;  %4557 = vpow2.f32 %v3020_v16 }
 0x552   : > { %v3004_v3 = vmin.f32 %v6284_v22, 0.0  ;;  %v4552_v20 = vpop.eup %4551  ;;  %v2893_v57 = vpop.permute.xlu0 %2892  ;;  %v3074_v10 = vpack.c.bf16 %v3059_v5, %v3058_v21  ;;  %v2950_v7 = vld [vmem:[#allocation2 + $0x58] sm:$0xff]  ;;  %vm2988_vm13 = vcmp.gt.f32.partialorder %v6284_v22, 0.0 }
 0x553   : > { %v2417_v25 = vpop.permute.xlu1 %2416  ;;  %2932 = vst.msk [vmem:[#allocation2 + $0x48] sm:$0xff] %vm2922_vm4, %v2893_v57  ;;  %v6294_v30 = vadd.f32 %v6229_v11, %v2950_v7  ;;  %v3630_v0 = vadd.f32 -1.0, %v4552_v20 }
 0x554   : > { %2451 = vst.msk [vmem:[#allocation2 + $0x70] sm:$0xff] %vm2436_vm3, %v2417_v25  ;;  %v3030_v48 = vmul.f32 1.442695, %v3004_v3  ;;  %3691 = vst [vmem:[%s6271_s16] sm:$0xff] %v3074_v10   ;;  %4099 = vmatprep.mubr.bf16.mxu1 %v3074_v10 }
 0x555   : > { %4100 = vmatmul.mubr.bf16.vlgmr.msra.gmra.mxu1 %v3075_v42  ;;  %v3005_v2 = vmin.f32 %v6294_v30, 0.0  ;;  %v3064_v59 = vsel %vm2984_vm9, %v6252_v9, %v3630_v0  ;;  %vm2989_vm14 = vcmp.gt.f32.partialorder %v6294_v30, 0.0 }
 0x556   : > { %4559 = vpow2.f32 %v3030_v48  ;;  %v2419_v19 = vpop.permute.xlu0 %2418 }
 0x557   : > { %v4554_v38 = vpop.eup %4553  ;;  %v2413_v47 = vpop.permute.xlu1 %2412  ;;  %v2947_v53 = vld [vmem:[#allocation2 + $0x40] sm:$0xff]  ;;  %2452 = vst.msk [vmem:[#allocation2 + $0x78] sm:$0xff] %vm2436_vm3, %v2419_v19  ;;  %v3032_v1 = vmul.f32 1.442695, %v3005_v2 }
 0x558   : > { %2449 = vst.msk [vmem:[#allocation2 + $0x60] sm:$0xff] %vm2436_vm3, %v2413_v47  ;;  %v3631_v63 = vadd.f32 -1.0, %v4554_v38  ;;  %v6301_v4 = vadd.f32 %v6229_v11, %v2947_v53 }
 0x559   : > { %4561 = vpow2.f32 %v3032_v1 }
 0x55a   : > { %v3065_v33 = vsel %vm2985_vm10, %v6258_v45, %v3631_v63  ;;  %v3002_v29 = vmin.f32 %v6301_v4, 0.0  ;;  %v4556_v23 = vpop.eup %4555  ;;  %v2415_v24 = vpop.permute.xlu0 %2414  ;;  %v2948_v50 = vld [vmem:[#allocation2 + $0x48] sm:$0xff]  ;;  %vm2986_vm15 = vcmp.gt.f32.partialorder %v6301_v4, 0.0 }
 0x55b   : > { %v2899_v18 = vpop.permute.xlu1 %2898  ;;  %v3077_v60 = vpack.c.bf16 %v3065_v33, %v3064_v59  ;;  %2450 = vst.msk [vmem:[#allocation2 + $0x68] sm:$0xff] %vm2436_vm3, %v2415_v24  ;;  %v2971_v61 = vadd.f32 %v6229_v11, %v2948_v50  ;;  %v3628_v8 = vadd.f32 -1.0, %v4556_v23 }
 0x55c   : > { %2935 = vst.msk [vmem:[#allocation2 + $0x60] sm:$0xff] %vm2922_vm4, %v2899_v18  ;;  %v3026_v41 = vmul.f32 1.442695, %v3002_v29  ;;  %v6337_v29 = vld [vmem:[%s6400_s7] ss:$0 sm:$0xff] }
 0x55d   : > { %3729 = vst [vmem:[%s6271_s16 + $0x18] sm:$0xff] %v3077_v60   ;;  %v3003_v9 = vmin.f32 %v2971_v61, 0.0  ;;  %v3062_v28 = vsel %vm2982_vm11, %v6264_v49, %v3628_v8  ;;  %vm2987_vm0 = vcmp.gt.f32.partialorder %v2971_v61, 0.0 }
 0x55e   : > { %4563 = vpow2.f32 %v3026_v41  ;;  %v4558_v54 = vpop.eup %4557  ;;  %v2901_v45 = vpop.permute.xlu0 %2900 }
 0x55f   : > { %v2903_v40 = vpop.permute.xlu1 %2902  ;;  %2936 = vst.msk [vmem:[#allocation2 + $0x68] sm:$0xff] %vm2922_vm4, %v2901_v45  ;;  %v3629_v36 = vadd.f32 -1.0, %v4558_v54  ;;  %v3028_v27 = vmul.f32 1.442695, %v3003_v9  ;;  %v6347_v45 = vld [vmem:[%s6401_s8] ss:$0 sm:$0xff] }
 0x560   : > { %2937 = vst.msk [vmem:[#allocation2 + $0x70] sm:$0xff] %vm2922_vm4, %v2903_v40 }
 0x561   : > { %v3063_v26 = vsel %vm2983_vm12, %v6277_v62, %v3629_v36  ;;  %4565 = vpow2.f32 %v3028_v27 }
 0x562   : > { %v2905_v44 = vpop.permute.xlu0 %2904  ;;  %v3076_v58 = vpack.c.bf16 %v3063_v26, %v3062_v28 }
 0x563   : > { %v4560_v15 = vpop.eup %4559  ;;  %v2951_v17 = vld [vmem:[#allocation2 + $0x60] sm:$0xff]  ;;  %2938 = vst.msk [vmem:[#allocation2 + $0x78] sm:$0xff] %vm2922_vm4, %v2905_v44 }
 0x564   : > { %v2974_v37 = vadd.f32 %v6229_v11, %v2951_v17  ;;  %3728 = vst [vmem:[%s6271_s16 + $0x10] sm:$0xff] %v3076_v58   ;;  %4103 = vmatprep.mubr.bf16.mxu1 %v3076_v58  ;;  %v3634_v46 = vadd.f32 -1.0, %v4560_v15 }
 0x565   : > { %4104 = vmatmul.mubr.bf16.gmra.mxu1 %v3077_v60 }
 0x566   : > { %v3006_v34 = vmin.f32 %v2974_v37, 0.0  ;;  %v4562_v51 = vpop.eup %4561  ;;  %v2952_v52 = vld [vmem:[#allocation2 + $0x68] sm:$0xff]  ;;  %v3068_v62 = vsel %vm2988_vm13, %v6284_v22, %v3634_v46  ;;  %vm2990_vm1 = vcmp.gt.f32.partialorder %v2974_v37, 0.0 }
 0x567   : > { %v2953_v35 = vld [vmem:[#allocation2 + $0x70] sm:$0xff]  ;;  %v3635_v49 = vadd.f32 -1.0, %v4562_v51  ;;  %v2975_v56 = vadd.f32 %v6229_v11, %v2952_v52 }
 0x568   : > { %v3034_v42 = vmul.f32 1.442695, %v3006_v34  ;;  %v2976_v13 = vadd.f32 %v6229_v11, %v2953_v35 }
 0x569   : > { %v3069_v6 = vsel %vm2989_vm14, %v6294_v30, %v3635_v49  ;;  %v3007_v12 = vmin.f32 %v2975_v56, 0.0  ;;  %vm2991_vm2 = vcmp.gt.f32.partialorder %v2975_v56, 0.0 }
 0x56a   : > { %4567 = vpow2.f32 %v3034_v42  ;;  %v3079_v31 = vpack.c.bf16 %v3069_v6, %v3068_v62  ;;  %v2954_v55 = vld [vmem:[#allocation2 + $0x78] sm:$0xff]  ;;  %v3008_v43 = vmin.f32 %v2976_v13, 0.0  ;;  %vm2992_vm3 = vcmp.gt.f32.partialorder %v2976_v13, 0.0 }
 0x56b   : > { %v4564_v39 = vpop.eup %4563  ;;  %v3036_v32 = vmul.f32 1.442695, %v3007_v12  ;;  %v2977_v14 = vadd.f32 %v6229_v11, %v2954_v55 }
 0x56c   : > { %3731 = vst [vmem:[%s6271_s16 + $0x28] sm:$0xff] %v3079_v31   ;;  %v3038_v16 = vmul.f32 1.442695, %v3008_v43  ;;  %v3632_v21 = vadd.f32 -1.0, %v4564_v39 }
 0x56d   : > { %4569 = vpow2.f32 %v3036_v32  ;;  %v3009_v5 = vmin.f32 %v2977_v14, 0.0  ;;  %vm2993_vm4 = vcmp.gt.f32.partialorder %v2977_v14, 0.0 }
 0x56e   : > { %v4566_v3 = vpop.eup %4565  ;;  %4571 = vpow2.f32 %v3038_v16  ;;  %v3066_v57 = vsel %vm2986_vm15, %v6301_v4, %v3632_v21 }
 0x56f   : > { %v3633_v22 = vadd.f32 -1.0, %v4566_v3  ;;  %v3040_v20 = vmul.f32 1.442695, %v3009_v5 }
 0x571   : > { %v3067_v25 = vsel %vm2987_vm0, %v2971_v61, %v3633_v22  ;;  %4573 = vpow2.f32 %v3040_v20 }
 0x572   : > { %v3078_v10 = vpack.c.bf16 %v3067_v25, %v3066_v57 }
 0x574   : > { %3730 = vst [vmem:[%s6271_s16 + $0x20] sm:$0xff] %v3078_v10   ;;  %4107 = vmatprep.mubr.bf16.mxu1 %v3078_v10 }
 0x575   : > { %4108 = vmatmul.mubr.bf16.gmra.mxu1 %v3079_v31 }
 0x577   : > { %v4568_v11 = vpop.eup %4567 }
 0x578   : > { %v3636_v7 = vadd.f32 -1.0, %v4568_v11 }
 0x57a   : > { %v4570_v30 = vpop.eup %4569  ;;  %v3070_v2 = vsel %vm2990_vm1, %v2974_v37, %v3636_v7 }
 0x57b   : > { %v4572_v48 = vpop.eup %4571  ;;  %v3637_v0 = vadd.f32 -1.0, %v4570_v30 }
 0x57c   : > { %v3638_v47 = vadd.f32 -1.0, %v4572_v48 }
 0x57d   : > { %v3071_v38 = vsel %vm2991_vm2, %v2975_v56, %v3637_v0 }
 0x57e   : > { %v4574_v19 = vpop.eup %4573  ;;  %v3080_v53 = vpack.c.bf16 %v3071_v38, %v3070_v2  ;;  %v3072_v4 = vsel %vm2992_vm3, %v2976_v13, %v3638_v47 }
 0x57f   : > { %v3639_v63 = vadd.f32 -1.0, %v4574_v19 }
 0x580   : > { %3732 = vst [vmem:[%s6271_s16 + $0x30] sm:$0xff] %v3080_v53   ;;  %4111 = vmatprep.mubr.bf16.mxu1 %v3080_v53 }
 0x581   : > { %v3073_v1 = vsel %vm2993_vm4, %v2977_v14, %v3639_v63 }
 0x582   : > { %v3081_v59 = vpack.c.bf16 %v3073_v1, %v3072_v4 }
 0x584   : > { %3733 = vst [vmem:[%s6271_s16 + $0x38] sm:$0xff] %v3081_v59   ;;  %4112 = vmatmul.mubr.bf16.gmra.mxu1 %v3081_v59 }
 0x615   : > { %v4101_v33 = vpop.f32.mrf.mxu1 }
 0x616   : > { %v3268_v61 = vadd.f32 %v4101_v33, %v6337_v29 }
 0x617   : > { %v3259_v23 = vpop.f32.mrf.mxu1 }
 0x618   : > { %v3260_v18 = vadd.f32 %v6337_v29, %v3259_v23 }
 0x619   : > { %v4102_v24 = vpop.f32.mrf.mxu1 }
 0x61a   : > { %4575 = vtanh.f32 %v3260_v18  ;;  %v3271_v60 = vadd.f32 %v4102_v24, %v6337_v29 }
 0x61b   : > { %v3262_v50 = vpop.f32.mrf.mxu1 }
 0x61c   : > { %4577 = vtanh.f32 %v3271_v60  ;;  %v3263_v41 = vadd.f32 %v6337_v29, %v3262_v50 }
 0x61e   : > { %4579 = vtanh.f32 %v3263_v41 }
 0x61f   : > { %4581 = vtanh.f32 %v3268_v61 }
 0x625   : > { %v4105_v8 = vpop.f32.mrf.mxu1 }
 0x626   : > { %v3284_v54 = vadd.f32 %v4105_v8, %v6337_v29 }
 0x627   : > { %v4576_v9 = vpop.eup %4575  ;;  %v3275_v40 = vpop.f32.mrf.mxu1 }
 0x628   : > { %v3276_v36 = vadd.f32 %v6337_v29, %v3275_v40  ;;  %v3345_v27 = vmul.f32 %v4576_v9, %v6347_v45 }
 0x629   : > { %v4578_v28 = vpop.eup %4577  ;;  %v4106_v26 = vpop.f32.mrf.mxu1 }
 0x62a   : > { %4583 = vtanh.f32 %v3276_v36  ;;  %3361 = vadd.xlane.f32.xlu1 %v3345_v27  ;;  %v3287_v58 = vadd.f32 %v4106_v26, %v6337_v29  ;;  %v3348_v37 = vmul.f32 %v4578_v28, %v6347_v45 }
 0x62b   : > { %v4580_v15 = vpop.eup %4579  ;;  %4585 = vtanh.f32 %v3284_v54  ;;  %v3278_v44 = vpop.f32.mrf.mxu1 }
 0x62c   : > { %v3279_v17 = vadd.f32 %v6337_v29, %v3278_v44  ;;  %v3346_v46 = vmul.f32 %v4580_v15, %v6347_v45  ;;  %v4582_v34 = vpop.eup %4581 }
 0x62d   : > { %v3347_v51 = vmul.f32 %v4582_v34, %v6347_v45 }
 0x62e   : > { %4587 = vtanh.f32 %v3279_v17  ;;  %3367 = vadd.xlane.f32.xlu1 %v3348_v37  ;;  %3363 = vadd.xlane.f32.xlu0 %v3346_v46 }
 0x62f   : > { %4589 = vtanh.f32 %v3287_v58 }
 0x632   : > { %3365 = vadd.xlane.f32.xlu0 %v3347_v51 }
 0x635   : > { %v4109_v52 = vpop.f32.mrf.mxu1 }
 0x636   : > { %v3300_v42 = vadd.f32 %v4109_v52, %v6337_v29 }
 0x637   : > { %v4584_v35 = vpop.eup %4583  ;;  %v3291_v49 = vpop.f32.mrf.mxu1 }
 0x638   : > { %v4586_v56 = vpop.eup %4585  ;;  %v3292_v13 = vadd.f32 %v6337_v29, %v3291_v49  ;;  %v3349_v62 = vmul.f32 %v4584_v35, %v6347_v45 }
 0x639   : > { %v4110_v6 = vpop.f32.mrf.mxu1  ;;  %v3351_v31 = vmul.f32 %v4586_v56, %v6347_v45 }
 0x63a   : > { %4591 = vtanh.f32 %v3292_v13  ;;  %3369 = vadd.xlane.f32.xlu0 %v3349_v62  ;;  %v3303_v55 = vadd.f32 %v4110_v6, %v6337_v29 }
 0x63b   : > { %v4588_v12 = vpop.eup %4587  ;;  %v3294_v39 = vpop.f32.mrf.mxu1  ;;  %4593 = vtanh.f32 %v3300_v42 }
 0x63c   : > { %v3295_v43 = vadd.f32 %v6337_v29, %v3294_v39  ;;  %v3350_v32 = vmul.f32 %v4588_v12, %v6347_v45  ;;  %v4590_v14 = vpop.eup %4589 }
 0x63d   : > { %v3352_v16 = vmul.f32 %v4590_v14, %v6347_v45 }
 0x63e   : > { %4595 = vtanh.f32 %v3295_v43  ;;  %3371 = vadd.xlane.f32.xlu1 %v3350_v32  ;;  %3373 = vadd.xlane.f32.xlu0 %v3351_v31 }
 0x63f   : > { %4597 = vtanh.f32 %v3303_v55 }
 0x642   : > { %3375 = vadd.xlane.f32.xlu1 %v3352_v16 }
 0x644   : > { %v4113_v21 = vpop.f32.mrf.mxu1 }
 0x645   : > { %v3316_v22 = vadd.f32 %v4113_v21, %v6337_v29 }
 0x646   : > { %v3307_v5 = vpop.f32.mrf.mxu1 }
 0x647   : > { %v4592_v3 = vpop.eup %4591  ;;  %v3308_v20 = vadd.f32 %v6337_v29, %v3307_v5 }
 0x648   : > { %v4114_v57 = vpop.f32.mrf.mxu1  ;;  %v3353_v25 = vmul.f32 %v4592_v3, %v6347_v45  ;;  %v4594_v10 = vpop.eup %4593 }
 0x649   : > { %4599 = vtanh.f32 %v3308_v20  ;;  %v3319_v30 = vadd.f32 %v4114_v57, %v6337_v29  ;;  %v3355_v2 = vmul.f32 %v4594_v10, %v6347_v45 }
 0x64a   : > { %3377 = vadd.xlane.f32.xlu0 %v3353_v25  ;;  %v3310_v11 = vpop.f32.mrf.mxu1  ;;  %4601 = vtanh.f32 %v3316_v22 }
 0x64b   : > { %v4596_v7 = vpop.eup %4595  ;;  %v3311_v48 = vadd.f32 %v6337_v29, %v3310_v11 }
 0x64c   : > { %v3354_v0 = vmul.f32 %v4596_v7, %v6347_v45  ;;  %v4598_v38 = vpop.eup %4597 }
 0x64d   : > { %4603 = vtanh.f32 %v3311_v48  ;;  %v3356_v47 = vmul.f32 %v4598_v38, %v6347_v45 }
 0x64e   : > { %3379 = vadd.xlane.f32.xlu1 %v3354_v0  ;;  %3381 = vadd.xlane.f32.xlu0 %v3355_v2  ;;  %4605 = vtanh.f32 %v3319_v30 }
 0x652   : > { %3383 = vadd.xlane.f32.xlu1 %v3356_v47 }
 0x656   : > { %v4600_v19 = vpop.eup %4599 }
 0x657   : > { %v3357_v53 = vmul.f32 %v4600_v19, %v6347_v45  ;;  %v4602_v63 = vpop.eup %4601 }
 0x658   : > { %v3359_v59 = vmul.f32 %v4602_v63, %v6347_v45 }
 0x659   : > { %3385 = vadd.xlane.f32.xlu0 %v3357_v53 }
 0x65a   : > { %v4604_v4 = vpop.eup %4603 }
 0x65b   : > { %v3358_v1 = vmul.f32 %v4604_v4, %v6347_v45  ;;  %v4606_v33 = vpop.eup %4605 }
 0x65c   : > { %v3360_v29 = vmul.f32 %v4606_v33, %v6347_v45 }
 0x65d   : > { %3387 = vadd.xlane.f32.xlu1 %v3358_v1  ;;  %3389 = vadd.xlane.f32.xlu0 %v3359_v59 }
 0x661   : > { %3391 = vadd.xlane.f32.xlu1 %v3360_v29 }
 0x6b3   : > { %v3362_v18 = vpop.xlane.xlu1 %3361 }
 0x6b7   : > { %v3364_v23 = vpop.xlane.xlu0 %3363  ;;  %v3368_v61 = vpop.xlane.xlu1 %3367 }
 0x6b8   : > { %v3393_v60 = vadd.f32 %v3364_v23, %v3362_v18 }
 0x6bb   : > { %v3366_v24 = vpop.xlane.xlu0 %3365 }
 0x6bc   : > { %v3394_v50 = vadd.f32 %v3393_v60, %v3366_v24 }
 0x6be   : > { %v3395_v8 = vadd.f32 %v3394_v50, %v3368_v61 }
 0x6c3   : > { %v3370_v41 = vpop.xlane.xlu0 %3369 }
 0x6c4   : > { %v3396_v54 = vadd.f32 %v3395_v8, %v3370_v41 }
 0x6c7   : > { %v3372_v9 = vpop.xlane.xlu1 %3371  ;;  %v3374_v36 = vpop.xlane.xlu0 %3373 }
 0x6c8   : > { %v3397_v40 = vadd.f32 %v3396_v54, %v3372_v9 }
 0x6ca   : > { %v3398_v27 = vadd.f32 %v3397_v40, %v3374_v36 }
 0x6cb   : > { %v3376_v28 = vpop.xlane.xlu1 %3375 }
 0x6cc   : > { %v3399_v15 = vadd.f32 %v3398_v27, %v3376_v28 }
 0x6d3   : > { %v3378_v26 = vpop.xlane.xlu0 %3377 }
 0x6d4   : > { %v3400_v58 = vadd.f32 %v3399_v15, %v3378_v26 }
 0x6d7   : > { %v3380_v44 = vpop.xlane.xlu1 %3379  ;;  %v3382_v17 = vpop.xlane.xlu0 %3381 }
 0x6d8   : > { %v3401_v45 = vadd.f32 %v3400_v58, %v3380_v44 }
 0x6da   : > { %v3402_v37 = vadd.f32 %v3401_v45, %v3382_v17 }
 0x6db   : > { %v3384_v46 = vpop.xlane.xlu1 %3383 }
 0x6dc   : > { %v3403_v51 = vadd.f32 %v3402_v37, %v3384_v46 }
 0x6e2   : > { %v3386_v34 = vpop.xlane.xlu0 %3385 }
 0x6e3   : > { %v3404_v52 = vadd.f32 %v3403_v51, %v3386_v34 }
 0x6e6   : > { %v3388_v35 = vpop.xlane.xlu1 %3387  ;;  %v3390_v56 = vpop.xlane.xlu0 %3389 }
 0x6e7   : > { %v3405_v49 = vadd.f32 %v3404_v52, %v3388_v35 }
 0x6e9   : > { %v3406_v42 = vadd.f32 %v3405_v49, %v3390_v56 }
 0x6ea   : > { %v3392_v13 = vpop.xlane.xlu1 %3391 }
 0x6eb   : > { %v3407_v62 = vadd.f32 %v3406_v42, %v3392_v13 }
 0x6ed   : > { %v3408_v6 = vrot.slane %v3407_v62, 4 }
 0x6ef   : > { %v3409_v12 = vadd.f32 %v3408_v6, %v3407_v62 }
 0x6f1   : > { %v3410_v39 = vrot.slane %v3409_v12, 2 }
 0x6f3   : > { %v3411_v31 = vadd.f32 %v3410_v39, %v3409_v12 }
 0x6f5   : > { %v3412_v55 = vrot.slane %v3411_v31, 1 }
 0x6f7   : > { %v3413_v43 = vadd.f32 %v3412_v55, %v3411_v31 }
 0x6f9   : > { %v3414_v32 = vmul.f32 0.0078125, %v3413_v43 }
 0x6fb   : > { %3415 = vst [vmem:[%s458_s13] sm:$0x1] %v3414_v32 }
 0x6fc PF: > { %p21_p0 = scmp.ge.s32.totalorder %s4761_s18, 12   ;;  %s6549_s13 = smov %s4661_s14 }
 0x6fd   : > { %s6550_s14 = smov %s4665_s15  ;;  %s6551_s15 = smov %s4771_s21 }
 0x6fe   : > { %s6552_s16 = smov %s4761_s18  ;;  %23 = sbr.rel (!%p21_p0) target bundleno = 3 (0x3), region = 120 }
 0x703   :  { %3449 = vsyncpa [#allocation4], 1 }
 0x704   :  { %3451 = vsyncpa [#allocation4 + $0x1], 1 }

</bundles_post_ra>
